<compile_context>
chip_gen: v6e
topology: v6e:2x2x1
jax: 0.10.0
libtpu: 0.0.40
codegen_flags: <defaults>
</compile_context>

<pallas_src>
import jax
import jax.numpy as jnp
from jax.experimental import pallas as pl
from jax.experimental.pallas import tpu as pltpu

LANE = 128
_BN_EPS = 1e-5


def _round_up(x, m):
    return ((x + m - 1) // m) * m


# ----------------------------------------------------------------------------
# Parameter construction (deterministic, synthetic; BN folded, pre-placed into
# full 128x128 lane-packed blocks at BUILD time).
# ----------------------------------------------------------------------------
def _bn_fold(key, cout):
    kg, kb, km, kv = jax.random.split(key, 4)
    gamma = jax.random.uniform(kg, (cout,), jnp.float32, 0.8, 1.2)
    beta = 0.1 * jax.random.normal(kb, (cout,), jnp.float32)
    mean = 0.1 * jax.random.normal(km, (cout,), jnp.float32)
    var = jax.random.uniform(kv, (cout,), jnp.float32, 0.5, 1.5)
    scale = gamma / jnp.sqrt(var + _BN_EPS)
    return scale, beta - mean * scale


def _conv_bn_folded(key, cin, cout):
    """1x1 conv (no bias) + BN(eval) folded -> (cin, cout) weight, (cout,) bias."""
    kw, kb = jax.random.split(key)
    w = jax.random.normal(kw, (cin, cout), jnp.float32) / jnp.sqrt(float(cin))
    scale, bias = _bn_fold(kb, cout)
    return w * scale[None, :], bias


def _fr_folded(key, cin, cout):
    """FactorizedReduce: two 1x1 stride-2 convs (even / odd grids) + BN folded."""
    k1, k2, kb = jax.random.split(key, 3)
    half = cout // 2
    w1 = jax.random.normal(k1, (cin, half), jnp.float32) / jnp.sqrt(float(cin))
    w2 = jax.random.normal(k2, (cin, half), jnp.float32) / jnp.sqrt(float(cin))
    scale, bias = _bn_fold(kb, cout)
    return w1 * scale[:half][None, :], w2 * scale[half:cout][None, :], bias


def _sel_matrix(batch, H, W, factor, phase):
    """0/1 row-selection matrix implementing x[:, phase::factor, phase::factor]
    on a (batch*H*W, C) row-major flattened activation.  Exact under bf16."""
    h2, w2 = H // factor, W // factor
    b = jnp.arange(batch)[:, None, None]
    i = jnp.arange(h2)[None, :, None]
    j = jnp.arange(w2)[None, None, :]
    src = (b * H * W + (factor * i + phase) * W + (factor * j + phase)).reshape(-1)
    return jax.nn.one_hot(src, batch * H * W, dtype=jnp.float32).astype(jnp.bfloat16)


def build_darts_like_net(key, *, chn_in, chn, n_classes, layers,
                         channel_multiplier, n_nodes, in_hw, batch):
    """Replicates DARTSLikeNet.__init__ channel / reduction bookkeeping exactly.

    Returns (params, arch): `params` is a pytree of jnp arrays only (the kernel
    operands); `arch` is static Python metadata driving kernel tracing.
    """
    assert in_hw % 4 == 0 and n_classes <= LANE
    keys = iter(jax.random.split(key, 4096))

    chn_stem = chn * channel_multiplier
    assert chn_stem <= LANE
    k_real = 9 * chn_in
    k_stem = _round_up(k_real, 8)

    # --- stem: Conv3x3 (stride 1, pad 1, no bias) + BN, folded; consumes im2col.
    w3 = (jax.random.normal(next(keys), (3, 3, chn_in, chn_stem), jnp.float32)
          / jnp.sqrt(9.0 * chn_in))
    sc, bi = _bn_fold(next(keys), chn_stem)
    W_stem = jnp.zeros((k_stem, LANE), jnp.float32)
    W_stem = W_stem.at[:k_real, :chn_stem].set(w3.reshape(k_real, chn_stem) * sc[None, :])
    b_stem = jnp.zeros((1, LANE), jnp.float32).at[0, :chn_stem].set(bi)

    params = {"stem": {"w": W_stem.astype(jnp.bfloat16), "b": b_stem},
              "sel": {}, "cells": []}
    meta_cells = []

    def get_sel(H, W, factor, phase):
        if factor == 1 and phase == 0:
            return None
        name = "s%dx%d_f%d_p%d" % (H, W, factor, phase)
        if name not in params["sel"]:
            params["sel"][name] = _sel_matrix(batch, H, W, factor, phase)
        return name

    # Tensor descriptors: which intermediate (tid), real channels C, lane
    # offset of those channels, spatial H, W.
    stem_d = dict(tid=0, C=chn_stem, off=0, H=in_hw, W=in_hw)
    d_pp, d_p = stem_d, stem_d                   # s0 = stem0(x), s1 = identity(s0)
    chn_pp = chn_p = chn_stem
    chn_cur = chn
    reduction_p = False
    tid_next = 1

    for i in range(layers):
        stride = 1
        reduction = i in (layers // 3, 2 * layers // 3)
        if reduction:
            stride = 2
            chn_cur *= 2
        cc = chn_cur
        assert (2 + n_nodes) * cc <= LANE, "lane-packed cell state exceeds 128 lanes"
        # mirror the PyTorch chn_in bookkeeping
        assert d_pp["C"] == chn_pp and d_p["C"] == chn_p

        H_nodes, W_nodes = d_p["H"] // stride, d_p["W"] // stride

        w = {}
        m = {"cc": cc, "n_nodes": n_nodes, "fr": reduction_p,
             "in0": d_pp["tid"], "in1": d_p["tid"], "merged_preproc": False}

        # preproc1: StdConv(chn_p -> cc), output lanes [cc:2cc]
        w1f, b1f = _conv_bn_folded(next(keys), d_p["C"], cc)
        W_p1 = jnp.zeros((LANE, LANE), jnp.float32).at[
            d_p["off"]:d_p["off"] + d_p["C"], cc:2 * cc].set(w1f)
        pb = jnp.zeros((1, LANE), jnp.float32).at[0, cc:2 * cc].set(b1f)
        m["sel1"] = get_sel(d_p["H"], d_p["W"], stride, 0)

        if reduction_p:
            # preproc0 = FactorizedReduce(chn_pp -> cc); computed directly at
            # the cell's node resolution (FR stride 2 composed with the node
            # edge stride) via two phase-selection matmuls.
            half = cc // 2
            w_a, w_b, b0f = _fr_folded(next(keys), d_pp["C"], cc)
            W_a = jnp.zeros((LANE, LANE), jnp.float32).at[
                d_pp["off"]:d_pp["off"] + d_pp["C"], 0:half].set(w_a)
            W_b = jnp.zeros((LANE, LANE), jnp.float32).at[
                d_pp["off"]:d_pp["off"] + d_pp["C"], half:cc].set(w_b)
            pb = pb.at[0, 0:cc].add(b0f)
            f0 = 2 * stride
            assert d_pp["H"] // f0 == H_nodes and d_pp["W"] // f0 == W_nodes
            m["sel0a"] = get_sel(d_pp["H"], d_pp["W"], f0, 0)
            m["sel0b"] = get_sel(d_pp["H"], d_pp["W"], f0, 1)
            w["p0a_w"] = W_a.astype(jnp.bfloat16)
            w["p0b_w"] = W_b.astype(jnp.bfloat16)
            w["p1_w"] = W_p1.astype(jnp.bfloat16)
        else:
            w0f, b0f = _conv_bn_folded(next(keys), d_pp["C"], cc)
            W_p0 = jnp.zeros((LANE, LANE), jnp.float32).at[
                d_pp["off"]:d_pp["off"] + d_pp["C"], 0:cc].set(w0f)
            pb = pb.at[0, 0:cc].add(b0f)
            assert d_pp["H"] // stride == H_nodes and d_pp["W"] // stride == W_nodes
            m["sel0"] = get_sel(d_pp["H"], d_pp["W"], stride, 0)
            if d_pp["tid"] == d_p["tid"] and m["sel0"] == m["sel1"]:
                # Both preprocs read the same tensor: one matmul with the two
                # weight blocks (disjoint output columns) summed at build time.
                m["merged_preproc"] = True
                w["p_w"] = (W_p0 + W_p1).astype(jnp.bfloat16)
            else:
                w["p0_w"] = W_p0.astype(jnp.bfloat16)
                w["p1_w"] = W_p1.astype(jnp.bfloat16)
        w["pb"] = pb

        # Nodes: node j sums a StdConv(cc->cc) edge from every previous state.
        # Edges stack along K (disjoint input lane blocks) and the folded BN
        # biases add; output columns land at the node's concat position, so the
        # cell-output channel concat is implicit.
        # TODO(synk): fixed StdConv edge op (cell_cls mix not provided).
        nodes = []
        for j in range(n_nodes):
            Wn = jnp.zeros((LANE, LANE), jnp.float32)
            bn = jnp.zeros((1, LANE), jnp.float32)
            c0 = (2 + j) * cc
            for e in range(2 + j):
                wef, bef = _conv_bn_folded(next(keys), cc, cc)
                Wn = Wn.at[e * cc:(e + 1) * cc, c0:c0 + cc].add(wef)
                bn = bn.at[0, c0:c0 + cc].add(bef)
            nodes.append({"w": Wn.astype(jnp.bfloat16), "b": bn})
        w["nodes"] = nodes

        params["cells"].append(w)
        meta_cells.append(m)

        out_d = dict(tid=tid_next, C=n_nodes * cc, off=2 * cc, H=H_nodes, W=W_nodes)
        tid_next += 1
        chn_pp, chn_p = chn_p, n_nodes * cc
        d_pp, d_p = d_p, out_d
        reduction_p = reduction

    # --- conv_last = AdaptiveAvgPool2d(1) -> flatten -> fc, all as MXU matmuls.
    HW = d_p["H"] * d_p["W"]
    params["avg"] = (jnp.repeat(jnp.eye(batch, dtype=jnp.float32), HW, axis=1)
                     / float(HW)).astype(jnp.bfloat16)
    kfw, kfb = jax.random.split(next(keys))
    fcw = jax.random.normal(kfw, (d_p["C"], n_classes), jnp.float32) / jnp.sqrt(float(d_p["C"]))
    fcb = 0.1 * jax.random.normal(kfb, (n_classes,), jnp.float32)
    W_fc = jnp.zeros((LANE, LANE), jnp.float32).at[
        d_p["off"]:d_p["off"] + d_p["C"], :n_classes].set(fcw)
    b_fc = jnp.zeros((1, LANE), jnp.float32).at[0, :n_classes].set(fcb)
    params["fc"] = {"w": W_fc.astype(jnp.bfloat16), "b": b_fc}

    arch = {"cells": meta_cells, "batch": batch, "in_hw": in_hw,
            "chn_in": chn_in, "k_stem": k_stem, "n_classes": n_classes}
    return params, arch


# ----------------------------------------------------------------------------
# Fused forward: one pallas_call for the whole network.
# ----------------------------------------------------------------------------
def make_darts_forward(params, arch):
    leaves, treedef = jax.tree_util.tree_flatten(params)
    cells_meta = arch["cells"]
    batch, in_hw = arch["batch"], arch["in_hw"]
    chn_in, k_stem = arch["chn_in"], arch["k_stem"]
    n_classes = arch["n_classes"]

    def kernel(x_ref, *rest):
        out_ref = rest[-1]
        p = jax.tree_util.tree_unflatten(treedef, list(rest[:-1]))

        def mm(a, b):                      # bf16 MXU matmul, f32 accumulate
            return jnp.dot(a, b, preferred_element_type=jnp.float32)

        def bf(x):
            return x.astype(jnp.bfloat16)

        # stem: 3x3 conv (im2col matmul) + folded BN, no ReLU.
        stem_out = mm(x_ref[...], p["stem"]["w"][...]) + p["stem"]["b"][...]

        vals = [stem_out]                  # tid -> f32 (M, 128) activation
        relu_cache = {}                    # ReLU computed once per tensor

        def relu_of(tid):
            if tid not in relu_cache:
                relu_cache[tid] = bf(jnp.maximum(vals[tid], 0.0))
            return relu_cache[tid]

        def subsample(x, sel_name):        # stride-2 / stride-4 spatial select
            if sel_name is None:
                return x
            return bf(mm(p["sel"][sel_name][...], x))

        for cm, cw in zip(cells_meta, p["cells"]):
            # Preprocessed states 0 / 1 land in disjoint lane blocks of `s`.
            if cm["fr"]:
                r0 = relu_of(cm["in0"])    # FactorizedReduce: even + odd branches
                pre0 = (mm(subsample(r0, cm["sel0a"]), cw["p0a_w"][...]) +
                        mm(subsample(r0, cm["sel0b"]), cw["p0b_w"][...]))
                pre1 = mm(subsample(relu_of(cm["in1"]), cm["sel1"]), cw["p1_w"][...])
                s = pre0 + pre1 + cw["pb"][...]
            elif cm["merged_preproc"]:
                s = (mm(subsample(relu_of(cm["in0"]), cm["sel0"]), cw["p_w"][...])
                     + cw["pb"][...])
            else:
                pre0 = mm(subsample(relu_of(cm["in0"]), cm["sel0"]), cw["p0_w"][...])
                pre1 = mm(subsample(relu_of(cm["in1"]), cm["sel1"]), cw["p1_w"][...])
                s = pre0 + pre1 + cw["pb"][...]

            r = bf(jnp.maximum(s, 0.0))    # all current states, relu'd, lane-packed
            out = None
            for j in range(cm["n_nodes"]):
                nj = mm(r, cw["nodes"][j]["w"][...]) + cw["nodes"][j]["b"][...]
                out = nj if out is None else out + nj     # disjoint lanes -> concat
                if j + 1 < cm["n_nodes"]:
                    r = r + bf(jnp.maximum(nj, 0.0))      # append state (disjoint)
            vals.append(out)

        # AdaptiveAvgPool2d(1) + flatten + fc (no ReLU), all on the MXU.
        last = vals[-1]
        pooled = mm(p["avg"][...], bf(last))              # (B, 128) spatial mean
        logits = mm(bf(pooled), p["fc"]["w"][...]) + p["fc"]["b"][...]
        out_ref[...] = logits

    call = pl.pallas_call(
        kernel,
        out_shape=jax.ShapeDtypeStruct((batch, LANE), jnp.float32),
        # No grid: whole arrays resident in VMEM, single program.
        in_specs=[pl.BlockSpec(memory_space=pltpu.MemorySpace.VMEM)] * (1 + len(leaves)),
        out_specs=pl.BlockSpec(memory_space=pltpu.MemorySpace.VMEM),
        compiler_params=pltpu.CompilerParams(vmem_limit_bytes=32 * 1024 * 1024),
    )

    def forward(x_nchw):
        # NCHW (PyTorch) -> NHWC, then 3x3 im2col (one-time, tiny 3-channel input).
        x = jnp.transpose(x_nchw, (0, 2, 3, 1)).astype(jnp.float32)
        xp = jnp.pad(x, ((0, 0), (1, 1), (1, 1), (0, 0)))
        H = W = in_hw
        cols = [xp[:, dy:dy + H, dx:dx + W, :] for dy in range(3) for dx in range(3)]
        pad_c = k_stem - 9 * chn_in
        if pad_c:
            cols.append(jnp.zeros((batch, H, W, pad_c), jnp.float32))
        x_stem = (jnp.concatenate(cols, axis=-1)
                  .reshape(batch * H * W, k_stem).astype(jnp.bfloat16))
        out = call(x_stem, *leaves)
        return out[:, :n_classes]

    return forward


# ----------------------------------------------------------------------------
# Main
# ----------------------------------------------------------------------------
if __name__ == "__main__":
    key = jax.random.PRNGKey(0)
    kp, kx = jax.random.split(key)

    # Small DARTSLikeNet config:
    #   chn_in=3, chn=4, n_classes=10, layers=3, channel_multiplier=3,
    #   n_nodes=2, auxiliary=False (aux_pos=-1), shared_a irrelevant to forward.
    params, arch = build_darts_like_net(
        kp, chn_in=3, chn=4, n_classes=10, layers=3,
        channel_multiplier=3, n_nodes=2, in_hw=16, batch=2)

    # Input: (batch=2, channels=3, spatial=16x16), NCHW as in PyTorch.
    x = jax.random.normal(kx, (2, 3, 16, 16), jnp.float32)

    fwd = jax.jit(make_darts_forward(params, arch))
    logits = jax.block_until_ready(fwd(x))

    assert logits.shape == (2, 10), logits.shape
    assert bool(jnp.all(jnp.isfinite(logits)))
    print("KERNEL_OK")
</pallas_src>

<mosaic_0001>
module attributes {stable_mosaic.version = 11 : i64} {
  func.func @kernel(%arg0: memref<512x32xbf16, #tpu.memory_space<vmem>>, %arg1: memref<2x32xbf16, #tpu.memory_space<vmem>>, %arg2: memref<1x128xf32, #tpu.memory_space<vmem>>, %arg3: memref<128x128xbf16, #tpu.memory_space<vmem>>, %arg4: memref<1x128xf32, #tpu.memory_space<vmem>>, %arg5: memref<128x128xbf16, #tpu.memory_space<vmem>>, %arg6: memref<128x128xbf16, #tpu.memory_space<vmem>>, %arg7: memref<1x128xf32, #tpu.memory_space<vmem>>, %arg8: memref<1x128xf32, #tpu.memory_space<vmem>>, %arg9: memref<128x128xbf16, #tpu.memory_space<vmem>>, %arg10: memref<1x128xf32, #tpu.memory_space<vmem>>, %arg11: memref<128x128xbf16, #tpu.memory_space<vmem>>, %arg12: memref<128x128xbf16, #tpu.memory_space<vmem>>, %arg13: memref<128x128xbf16, #tpu.memory_space<vmem>>, %arg14: memref<1x128xf32, #tpu.memory_space<vmem>>, %arg15: memref<1x128xf32, #tpu.memory_space<vmem>>, %arg16: memref<128x128xbf16, #tpu.memory_space<vmem>>, %arg17: memref<1x128xf32, #tpu.memory_space<vmem>>, %arg18: memref<128x128xbf16, #tpu.memory_space<vmem>>, %arg19: memref<128x128xbf16, #tpu.memory_space<vmem>>, %arg20: memref<128x128xbf16, #tpu.memory_space<vmem>>, %arg21: memref<128x128xbf16, #tpu.memory_space<vmem>>, %arg22: memref<1x128xf32, #tpu.memory_space<vmem>>, %arg23: memref<1x128xf32, #tpu.memory_space<vmem>>, %arg24: memref<128x128xbf16, #tpu.memory_space<vmem>>, %arg25: memref<128x512xbf16, #tpu.memory_space<vmem>>, %arg26: memref<32x512xbf16, #tpu.memory_space<vmem>>, %arg27: memref<32x512xbf16, #tpu.memory_space<vmem>>, %arg28: memref<32x128xbf16, #tpu.memory_space<vmem>>, %arg29: memref<1x128xf32, #tpu.memory_space<vmem>>, %arg30: memref<32x128xbf16, #tpu.memory_space<vmem>>, %arg31: memref<2x128xf32, #tpu.memory_space<vmem>>) attributes {dimension_semantics = [], scalar_prefetch = 0 : i64, scratch_operands = 0 : i64, tpu.core_type = #tpu.core_type<tc>} {
    %c0 = arith.constant 0 : index
    %c0_0 = arith.constant 0 : index
    %0 = vector.load %arg0[%c0, %c0_0] : memref<512x32xbf16, #tpu.memory_space<vmem>>, vector<512x32xbf16>
    %c0_1 = arith.constant 0 : index
    %c0_2 = arith.constant 0 : index
    %1 = vector.load %arg30[%c0_1, %c0_2] : memref<32x128xbf16, #tpu.memory_space<vmem>>, vector<32x128xbf16>
    %cst = arith.constant dense<0.000000e+00> : vector<512x128xf32>
    %2 = tpu.matmul %0, %1, %cst {dimension_numbers = #tpu.dot_dimension_numbers<[1], [0], [0], [1], [0, 0, 1, 1], [], []>} : vector<512x32xbf16>, vector<32x128xbf16>, vector<512x128xf32> -> vector<512x128xf32>
    %c0_3 = arith.constant 0 : index
    %c0_4 = arith.constant 0 : index
    %3 = vector.load %arg29[%c0_3, %c0_4] : memref<1x128xf32, #tpu.memory_space<vmem>>, vector<1x128xf32>
    %4 = vector.broadcast %3 : vector<1x128xf32> to vector<512x128xf32>
    %5 = arith.addf %2, %4 : vector<512x128xf32>
    %cst_5 = arith.constant 0.000000e+00 : f32
    %6 = vector.broadcast %cst_5 : f32 to vector<512x128xf32>
    %7 = arith.maximumf %5, %6 : vector<512x128xf32>
    %8 = arith.truncf %7 : vector<512x128xf32> to vector<512x128xbf16>
    %c0_6 = arith.constant 0 : index
    %c0_7 = arith.constant 0 : index
    %9 = vector.load %arg6[%c0_6, %c0_7] : memref<128x128xbf16, #tpu.memory_space<vmem>>, vector<128x128xbf16>
    %cst_8 = arith.constant dense<0.000000e+00> : vector<512x128xf32>
    %10 = tpu.matmul %8, %9, %cst_8 {dimension_numbers = #tpu.dot_dimension_numbers<[1], [0], [0], [1], [0, 0, 1, 1], [], []>} : vector<512x128xbf16>, vector<128x128xbf16>, vector<512x128xf32> -> vector<512x128xf32>
    %c0_9 = arith.constant 0 : index
    %c0_10 = arith.constant 0 : index
    %11 = vector.load %arg7[%c0_9, %c0_10] : memref<1x128xf32, #tpu.memory_space<vmem>>, vector<1x128xf32>
    %12 = vector.broadcast %11 : vector<1x128xf32> to vector<512x128xf32>
    %13 = arith.addf %10, %12 : vector<512x128xf32>
    %cst_11 = arith.constant 0.000000e+00 : f32
    %14 = vector.broadcast %cst_11 : f32 to vector<512x128xf32>
    %15 = arith.maximumf %13, %14 : vector<512x128xf32>
    %16 = arith.truncf %15 : vector<512x128xf32> to vector<512x128xbf16>
    %c0_12 = arith.constant 0 : index
    %c0_13 = arith.constant 0 : index
    %17 = vector.load %arg3[%c0_12, %c0_13] : memref<128x128xbf16, #tpu.memory_space<vmem>>, vector<128x128xbf16>
    %cst_14 = arith.constant dense<0.000000e+00> : vector<512x128xf32>
    %18 = tpu.matmul %16, %17, %cst_14 {dimension_numbers = #tpu.dot_dimension_numbers<[1], [0], [0], [1], [0, 0, 1, 1], [], []>} : vector<512x128xbf16>, vector<128x128xbf16>, vector<512x128xf32> -> vector<512x128xf32>
    %c0_15 = arith.constant 0 : index
    %c0_16 = arith.constant 0 : index
    %19 = vector.load %arg2[%c0_15, %c0_16] : memref<1x128xf32, #tpu.memory_space<vmem>>, vector<1x128xf32>
    %20 = vector.broadcast %19 : vector<1x128xf32> to vector<512x128xf32>
    %21 = arith.addf %18, %20 : vector<512x128xf32>
    %cst_17 = arith.constant 0.000000e+00 : f32
    %22 = vector.broadcast %cst_17 : f32 to vector<512x128xf32>
    %23 = arith.maximumf %21, %22 : vector<512x128xf32>
    %24 = arith.truncf %23 : vector<512x128xf32> to vector<512x128xbf16>
    %25 = arith.addf %16, %24 : vector<512x128xbf16>
    %c0_18 = arith.constant 0 : index
    %c0_19 = arith.constant 0 : index
    %26 = vector.load %arg5[%c0_18, %c0_19] : memref<128x128xbf16, #tpu.memory_space<vmem>>, vector<128x128xbf16>
    %cst_20 = arith.constant dense<0.000000e+00> : vector<512x128xf32>
    %27 = tpu.matmul %25, %26, %cst_20 {dimension_numbers = #tpu.dot_dimension_numbers<[1], [0], [0], [1], [0, 0, 1, 1], [], []>} : vector<512x128xbf16>, vector<128x128xbf16>, vector<512x128xf32> -> vector<512x128xf32>
    %c0_21 = arith.constant 0 : index
    %c0_22 = arith.constant 0 : index
    %28 = vector.load %arg4[%c0_21, %c0_22] : memref<1x128xf32, #tpu.memory_space<vmem>>, vector<1x128xf32>
    %29 = vector.broadcast %28 : vector<1x128xf32> to vector<512x128xf32>
    %30 = arith.addf %27, %29 : vector<512x128xf32>
    %31 = arith.addf %21, %30 : vector<512x128xf32>
    %c0_23 = arith.constant 0 : index
    %c0_24 = arith.constant 0 : index
    %32 = vector.load %arg25[%c0_23, %c0_24] : memref<128x512xbf16, #tpu.memory_space<vmem>>, vector<128x512xbf16>
    %cst_25 = arith.constant dense<0.000000e+00> : vector<128x128xf32>
    %33 = tpu.matmul %32, %8, %cst_25 {dimension_numbers = #tpu.dot_dimension_numbers<[1], [0], [0], [1], [0, 0, 1, 1], [], []>} : vector<128x512xbf16>, vector<512x128xbf16>, vector<128x128xf32> -> vector<128x128xf32>
    %34 = arith.truncf %33 : vector<128x128xf32> to vector<128x128xbf16>
    %c0_26 = arith.constant 0 : index
    %c0_27 = arith.constant 0 : index
    %35 = vector.load %arg12[%c0_26, %c0_27] : memref<128x128xbf16, #tpu.memory_space<vmem>>, vector<128x128xbf16>
    %cst_28 = arith.constant dense<0.000000e+00> : vector<128x128xf32>
    %36 = tpu.matmul %34, %35, %cst_28 {dimension_numbers = #tpu.dot_dimension_numbers<[1], [0], [0], [1], [0, 0, 1, 1], [], []>} : vector<128x128xbf16>, vector<128x128xbf16>, vector<128x128xf32> -> vector<128x128xf32>
    %cst_29 = arith.constant 0.000000e+00 : f32
    %37 = vector.broadcast %cst_29 : f32 to vector<512x128xf32>
    %38 = arith.maximumf %31, %37 : vector<512x128xf32>
    %39 = arith.truncf %38 : vector<512x128xf32> to vector<512x128xbf16>
    %c0_30 = arith.constant 0 : index
    %c0_31 = arith.constant 0 : index
    %40 = vector.load %arg25[%c0_30, %c0_31] : memref<128x512xbf16, #tpu.memory_space<vmem>>, vector<128x512xbf16>
    %cst_32 = arith.constant dense<0.000000e+00> : vector<128x128xf32>
    %41 = tpu.matmul %40, %39, %cst_32 {dimension_numbers = #tpu.dot_dimension_numbers<[1], [0], [0], [1], [0, 0, 1, 1], [], []>} : vector<128x512xbf16>, vector<512x128xbf16>, vector<128x128xf32> -> vector<128x128xf32>
    %42 = arith.truncf %41 : vector<128x128xf32> to vector<128x128xbf16>
    %c0_33 = arith.constant 0 : index
    %c0_34 = arith.constant 0 : index
    %43 = vector.load %arg13[%c0_33, %c0_34] : memref<128x128xbf16, #tpu.memory_space<vmem>>, vector<128x128xbf16>
    %cst_35 = arith.constant dense<0.000000e+00> : vector<128x128xf32>
    %44 = tpu.matmul %42, %43, %cst_35 {dimension_numbers = #tpu.dot_dimension_numbers<[1], [0], [0], [1], [0, 0, 1, 1], [], []>} : vector<128x128xbf16>, vector<128x128xbf16>, vector<128x128xf32> -> vector<128x128xf32>
    %45 = arith.addf %36, %44 : vector<128x128xf32>
    %c0_36 = arith.constant 0 : index
    %c0_37 = arith.constant 0 : index
    %46 = vector.load %arg14[%c0_36, %c0_37] : memref<1x128xf32, #tpu.memory_space<vmem>>, vector<1x128xf32>
    %47 = vector.broadcast %46 : vector<1x128xf32> to vector<128x128xf32>
    %48 = arith.addf %45, %47 : vector<128x128xf32>
    %cst_38 = arith.constant 0.000000e+00 : f32
    %49 = vector.broadcast %cst_38 : f32 to vector<128x128xf32>
    %50 = arith.maximumf %48, %49 : vector<128x128xf32>
    %51 = arith.truncf %50 : vector<128x128xf32> to vector<128x128xbf16>
    %c0_39 = arith.constant 0 : index
    %c0_40 = arith.constant 0 : index
    %52 = vector.load %arg9[%c0_39, %c0_40] : memref<128x128xbf16, #tpu.memory_space<vmem>>, vector<128x128xbf16>
    %cst_41 = arith.constant dense<0.000000e+00> : vector<128x128xf32>
    %53 = tpu.matmul %51, %52, %cst_41 {dimension_numbers = #tpu.dot_dimension_numbers<[1], [0], [0], [1], [0, 0, 1, 1], [], []>} : vector<128x128xbf16>, vector<128x128xbf16>, vector<128x128xf32> -> vector<128x128xf32>
    %c0_42 = arith.constant 0 : index
    %c0_43 = arith.constant 0 : index
    %54 = vector.load %arg8[%c0_42, %c0_43] : memref<1x128xf32, #tpu.memory_space<vmem>>, vector<1x128xf32>
    %55 = vector.broadcast %54 : vector<1x128xf32> to vector<128x128xf32>
    %56 = arith.addf %53, %55 : vector<128x128xf32>
    %cst_44 = arith.constant 0.000000e+00 : f32
    %57 = vector.broadcast %cst_44 : f32 to vector<128x128xf32>
    %58 = arith.maximumf %56, %57 : vector<128x128xf32>
    %59 = arith.truncf %58 : vector<128x128xf32> to vector<128x128xbf16>
    %60 = arith.addf %51, %59 : vector<128x128xbf16>
    %c0_45 = arith.constant 0 : index
    %c0_46 = arith.constant 0 : index
    %61 = vector.load %arg11[%c0_45, %c0_46] : memref<128x128xbf16, #tpu.memory_space<vmem>>, vector<128x128xbf16>
    %cst_47 = arith.constant dense<0.000000e+00> : vector<128x128xf32>
    %62 = tpu.matmul %60, %61, %cst_47 {dimension_numbers = #tpu.dot_dimension_numbers<[1], [0], [0], [1], [0, 0, 1, 1], [], []>} : vector<128x128xbf16>, vector<128x128xbf16>, vector<128x128xf32> -> vector<128x128xf32>
    %c0_48 = arith.constant 0 : index
    %c0_49 = arith.constant 0 : index
    %63 = vector.load %arg10[%c0_48, %c0_49] : memref<1x128xf32, #tpu.memory_space<vmem>>, vector<1x128xf32>
    %64 = vector.broadcast %63 : vector<1x128xf32> to vector<128x128xf32>
    %65 = arith.addf %62, %64 : vector<128x128xf32>
    %66 = arith.addf %56, %65 : vector<128x128xf32>
    %c0_50 = arith.constant 0 : index
    %c0_51 = arith.constant 0 : index
    %67 = vector.load %arg26[%c0_50, %c0_51] : memref<32x512xbf16, #tpu.memory_space<vmem>>, vector<32x512xbf16>
    %cst_52 = arith.constant dense<0.000000e+00> : vector<32x128xf32>
    %68 = tpu.matmul %67, %39, %cst_52 {dimension_numbers = #tpu.dot_dimension_numbers<[1], [0], [0], [1], [0, 0, 1, 1], [], []>} : vector<32x512xbf16>, vector<512x128xbf16>, vector<32x128xf32> -> vector<32x128xf32>
    %69 = arith.truncf %68 : vector<32x128xf32> to vector<32x128xbf16>
    %c0_53 = arith.constant 0 : index
    %c0_54 = arith.constant 0 : index
    %70 = vector.load %arg19[%c0_53, %c0_54] : memref<128x128xbf16, #tpu.memory_space<vmem>>, vector<128x128xbf16>
    %cst_55 = arith.constant dense<0.000000e+00> : vector<32x128xf32>
    %71 = tpu.matmul %69, %70, %cst_55 {dimension_numbers = #tpu.dot_dimension_numbers<[1], [0], [0], [1], [0, 0, 1, 1], [], []>} : vector<32x128xbf16>, vector<128x128xbf16>, vector<32x128xf32> -> vector<32x128xf32>
    %c0_56 = arith.constant 0 : index
    %c0_57 = arith.constant 0 : index
    %72 = vector.load %arg27[%c0_56, %c0_57] : memref<32x512xbf16, #tpu.memory_space<vmem>>, vector<32x512xbf16>
    %cst_58 = arith.constant dense<0.000000e+00> : vector<32x128xf32>
    %73 = tpu.matmul %72, %39, %cst_58 {dimension_numbers = #tpu.dot_dimension_numbers<[1], [0], [0], [1], [0, 0, 1, 1], [], []>} : vector<32x512xbf16>, vector<512x128xbf16>, vector<32x128xf32> -> vector<32x128xf32>
    %74 = arith.truncf %73 : vector<32x128xf32> to vector<32x128xbf16>
    %c0_59 = arith.constant 0 : index
    %c0_60 = arith.constant 0 : index
    %75 = vector.load %arg20[%c0_59, %c0_60] : memref<128x128xbf16, #tpu.memory_space<vmem>>, vector<128x128xbf16>
    %cst_61 = arith.constant dense<0.000000e+00> : vector<32x128xf32>
    %76 = tpu.matmul %74, %75, %cst_61 {dimension_numbers = #tpu.dot_dimension_numbers<[1], [0], [0], [1], [0, 0, 1, 1], [], []>} : vector<32x128xbf16>, vector<128x128xbf16>, vector<32x128xf32> -> vector<32x128xf32>
    %77 = arith.addf %71, %76 : vector<32x128xf32>
    %cst_62 = arith.constant 0.000000e+00 : f32
    %78 = vector.broadcast %cst_62 : f32 to vector<128x128xf32>
    %79 = arith.maximumf %66, %78 : vector<128x128xf32>
    %80 = arith.truncf %79 : vector<128x128xf32> to vector<128x128xbf16>
    %c0_63 = arith.constant 0 : index
    %c0_64 = arith.constant 0 : index
    %81 = vector.load %arg28[%c0_63, %c0_64] : memref<32x128xbf16, #tpu.memory_space<vmem>>, vector<32x128xbf16>
    %cst_65 = arith.constant dense<0.000000e+00> : vector<32x128xf32>
    %82 = tpu.matmul %81, %80, %cst_65 {dimension_numbers = #tpu.dot_dimension_numbers<[1], [0], [0], [1], [0, 0, 1, 1], [], []>} : vector<32x128xbf16>, vector<128x128xbf16>, vector<32x128xf32> -> vector<32x128xf32>
    %83 = arith.truncf %82 : vector<32x128xf32> to vector<32x128xbf16>
    %c0_66 = arith.constant 0 : index
    %c0_67 = arith.constant 0 : index
    %84 = vector.load %arg21[%c0_66, %c0_67] : memref<128x128xbf16, #tpu.memory_space<vmem>>, vector<128x128xbf16>
    %cst_68 = arith.constant dense<0.000000e+00> : vector<32x128xf32>
    %85 = tpu.matmul %83, %84, %cst_68 {dimension_numbers = #tpu.dot_dimension_numbers<[1], [0], [0], [1], [0, 0, 1, 1], [], []>} : vector<32x128xbf16>, vector<128x128xbf16>, vector<32x128xf32> -> vector<32x128xf32>
    %86 = arith.addf %77, %85 : vector<32x128xf32>
    %c0_69 = arith.constant 0 : index
    %c0_70 = arith.constant 0 : index
    %87 = vector.load %arg22[%c0_69, %c0_70] : memref<1x128xf32, #tpu.memory_space<vmem>>, vector<1x128xf32>
    %88 = vector.broadcast %87 : vector<1x128xf32> to vector<32x128xf32>
    %89 = arith.addf %86, %88 : vector<32x128xf32>
    %cst_71 = arith.constant 0.000000e+00 : f32
    %90 = vector.broadcast %cst_71 : f32 to vector<32x128xf32>
    %91 = arith.maximumf %89, %90 : vector<32x128xf32>
    %92 = arith.truncf %91 : vector<32x128xf32> to vector<32x128xbf16>
    %c0_72 = arith.constant 0 : index
    %c0_73 = arith.constant 0 : index
    %93 = vector.load %arg16[%c0_72, %c0_73] : memref<128x128xbf16, #tpu.memory_space<vmem>>, vector<128x128xbf16>
    %cst_74 = arith.constant dense<0.000000e+00> : vector<32x128xf32>
    %94 = tpu.matmul %92, %93, %cst_74 {dimension_numbers = #tpu.dot_dimension_numbers<[1], [0], [0], [1], [0, 0, 1, 1], [], []>} : vector<32x128xbf16>, vector<128x128xbf16>, vector<32x128xf32> -> vector<32x128xf32>
    %c0_75 = arith.constant 0 : index
    %c0_76 = arith.constant 0 : index
    %95 = vector.load %arg15[%c0_75, %c0_76] : memref<1x128xf32, #tpu.memory_space<vmem>>, vector<1x128xf32>
    %96 = vector.broadcast %95 : vector<1x128xf32> to vector<32x128xf32>
    %97 = arith.addf %94, %96 : vector<32x128xf32>
    %cst_77 = arith.constant 0.000000e+00 : f32
    %98 = vector.broadcast %cst_77 : f32 to vector<32x128xf32>
    %99 = arith.maximumf %97, %98 : vector<32x128xf32>
    %100 = arith.truncf %99 : vector<32x128xf32> to vector<32x128xbf16>
    %101 = arith.addf %92, %100 : vector<32x128xbf16>
    %c0_78 = arith.constant 0 : index
    %c0_79 = arith.constant 0 : index
    %102 = vector.load %arg18[%c0_78, %c0_79] : memref<128x128xbf16, #tpu.memory_space<vmem>>, vector<128x128xbf16>
    %cst_80 = arith.constant dense<0.000000e+00> : vector<32x128xf32>
    %103 = tpu.matmul %101, %102, %cst_80 {dimension_numbers = #tpu.dot_dimension_numbers<[1], [0], [0], [1], [0, 0, 1, 1], [], []>} : vector<32x128xbf16>, vector<128x128xbf16>, vector<32x128xf32> -> vector<32x128xf32>
    %c0_81 = arith.constant 0 : index
    %c0_82 = arith.constant 0 : index
    %104 = vector.load %arg17[%c0_81, %c0_82] : memref<1x128xf32, #tpu.memory_space<vmem>>, vector<1x128xf32>
    %105 = vector.broadcast %104 : vector<1x128xf32> to vector<32x128xf32>
    %106 = arith.addf %103, %105 : vector<32x128xf32>
    %107 = arith.addf %97, %106 : vector<32x128xf32>
    %c0_83 = arith.constant 0 : index
    %c0_84 = arith.constant 0 : index
    %108 = vector.load %arg1[%c0_83, %c0_84] : memref<2x32xbf16, #tpu.memory_space<vmem>>, vector<2x32xbf16>
    %109 = arith.truncf %107 : vector<32x128xf32> to vector<32x128xbf16>
    %cst_85 = arith.constant dense<0.000000e+00> : vector<2x128xf32>
    %110 = tpu.matmul %108, %109, %cst_85 {dimension_numbers = #tpu.dot_dimension_numbers<[1], [0], [0], [1], [0, 0, 1, 1], [], []>} : vector<2x32xbf16>, vector<32x128xbf16>, vector<2x128xf32> -> vector<2x128xf32>
    %111 = arith.truncf %110 : vector<2x128xf32> to vector<2x128xbf16>
    %c0_86 = arith.constant 0 : index
    %c0_87 = arith.constant 0 : index
    %112 = vector.load %arg24[%c0_86, %c0_87] : memref<128x128xbf16, #tpu.memory_space<vmem>>, vector<128x128xbf16>
    %cst_88 = arith.constant dense<0.000000e+00> : vector<2x128xf32>
    %113 = tpu.matmul %111, %112, %cst_88 {dimension_numbers = #tpu.dot_dimension_numbers<[1], [0], [0], [1], [0, 0, 1, 1], [], []>} : vector<2x128xbf16>, vector<128x128xbf16>, vector<2x128xf32> -> vector<2x128xf32>
    %c0_89 = arith.constant 0 : index
    %c0_90 = arith.constant 0 : index
    %114 = vector.load %arg23[%c0_89, %c0_90] : memref<1x128xf32, #tpu.memory_space<vmem>>, vector<1x128xf32>
    %115 = vector.broadcast %114 : vector<1x128xf32> to vector<2x128xf32>
    %116 = arith.addf %113, %115 : vector<2x128xf32>
    %c0_91 = arith.constant 0 : index
    %c0_92 = arith.constant 0 : index
    %117 = vector.load %arg31[%c0_91, %c0_92] : memref<2x128xf32, #tpu.memory_space<vmem>>, vector<2x128xf32>
    tpu.vector_store %arg31[%c0_91, %c0_92], %116 {strides = array<i32>} : memref<2x128xf32, #tpu.memory_space<vmem>>, vector<2x128xf32>,
    return
  }
}

</mosaic_0001>

<bundles_post_ra>
// kernel: forward.1
= control target key start
LH: loop header
LB: loop body
LE: loop exit
PB: predicated region body
PF: predicated region fallthrough
CT: control target
= control target key end

     0   :  { %s6619_s6 = smov 1   ;;  %s6620_s10 = smov 2   ;;  %s8516_s0 = inlined_call_operand.smem [shape: u32[32], index: -1, kind: input, shape index: {}] }
   0x1   :  { %s6661_s5 = sld [smem:[%s8516_s0]]   ;;  %s6621_s14 = smov 3  }
   0x2   :  { %s6666_s9 = sld [smem:[%s8516_s0 + %s6619_s6]]   ;;  %s6622_s18 = smov 4  }
   0x3   :  { %s6671_s13 = sld [smem:[%s8516_s0 + %s6620_s10]]   ;;  %s6623_s22 = smov 5  }
   0x4   :  { %s6676_s17 = sld [smem:[%s8516_s0 + %s6621_s14]]   ;;  %s6624_s26 = smov 6  }
   0x5   :  { %s6681_s21 = sld [smem:[%s8516_s0 + %s6622_s18]]   ;;  %s6625_s30 = smov 7  }
   0x6   :  { %s6686_s25 = sld [smem:[%s8516_s0 + %s6623_s22]]   ;;  %s6626_s4 = smov 8  }
   0x7   :  { %s6691_s29 = sld [smem:[%s8516_s0 + %s6624_s26]]   ;;  %s6627_s10 = smov 9  }
   0x8   :  { %8640 = sst [smem:[#allocation5_spill]] %s6666_s9  ;;  %s6628_s15 = smov 10  }
   0x9   :  { %s6696_s3 = sld [smem:[%s8516_s0 + %s6625_s30]]   ;;  %s6629_s20 = smov 11  }
   0xa   :  { %s6701_s8 = sld [smem:[%s8516_s0 + %s6626_s4]]   ;;  %s6630_s26 = smov 12  }
   0xb   :  { %s6706_s14 = sld [smem:[%s8516_s0 + %s6627_s10]]   ;;  %s6631_s1 = smov 13  }
   0xc   :  { %s6711_s19 = sld [smem:[%s8516_s0 + %s6628_s15]]   ;;  %s6632_s7 = smov 14  }
   0xd   :  { %s6716_s24 = sld [smem:[%s8516_s0 + %s6629_s20]]   ;;  %s6633_s15 = smov 15  }
   0xe   :  { %s6721_s30 = sld [smem:[%s8516_s0 + %s6630_s26]]   ;;  %s6634_s22 = smov 16  }
   0xf   :  { %s6726_s6 = sld [smem:[%s8516_s0 + %s6631_s1]]   ;;  %s6635_s28 = smov 17  }
  0x10   :  { %8641 = sst [smem:[#allocation6_spill]] %s6701_s8  ;;  %s6649_s16 = smov 31  }
  0x11   :  { %s6731_s12 = sld [smem:[%s8516_s0 + %s6632_s7]]   ;;  %s6636_s7 = smov 18  }
  0x12   :  { %8642 = sst [smem:[#allocation7_spill]] %s6711_s19 }
  0x13   :  { %s6736_s20 = sld [smem:[%s8516_s0 + %s6633_s15]]   ;;  %s6637_s15 = smov 19  }
  0x14   :  { %s6741_s27 = sld [smem:[%s8516_s0 + %s6634_s22]]   ;;  %s6638_s22 = smov 20  }
  0x15   :  { %s6746_s4 = sld [smem:[%s8516_s0 + %s6635_s28]]   ;;  %s6639_s28 = smov 21  }
  0x16   :  { %s6751_s9 = sld [smem:[%s8516_s0 + %s6636_s7]]   ;;  %s6640_s7 = smov 22  }
  0x19   :  { %8643 = sst [smem:[#allocation8_spill]] %s6736_s20 }
  0x1a   :  { %8644 = sst [smem:[#allocation9_spill]] %s6741_s27 }
  0x1b   :  { %8645 = sst [smem:[#allocation10_spill]] %s6746_s4 }
  0x1c   :  { %8646 = sst [smem:[#allocation11_spill]] %s6751_s9 }
  0x1d   :  { %s6756_s20 = sld [smem:[%s8516_s0 + %s6637_s15]]   ;;  %s6641_s15 = smov 23  }
  0x1e   :  { %s6761_s27 = sld [smem:[%s8516_s0 + %s6638_s22]]   ;;  %s6642_s22 = smov 24  }
  0x1f   :  { %s6766_s4 = sld [smem:[%s8516_s0 + %s6639_s28]]   ;;  %s6643_s28 = smov 25  }
  0x20   :  { %s6771_s9 = sld [smem:[%s8516_s0 + %s6640_s7]]   ;;  %s6644_s7 = smov 26  }
  0x21   :  { %s6776_s19 = sld [smem:[%s8516_s0 + %s6641_s15]]   ;;  %s6645_s15 = smov 27  }
  0x23   :  { %8647 = sst [smem:[#allocation12_spill]] %s6756_s20 }
  0x24   :  { %8648 = sst [smem:[#allocation13_spill]] %s6761_s27 }
  0x25   :  { %8649 = sst [smem:[#allocation14_spill]] %s6766_s4 }
  0x26   :  { %8650 = sst [smem:[#allocation15_spill]] %s6771_s9 }
  0x27   :  { %8651 = sst [smem:[#allocation16_spill]] %s6776_s19 }
  0x28   :  { %s6781_s20 = sld [smem:[%s8516_s0 + %s6642_s22]]   ;;  %s6646_s22 = smov 28  }
  0x29   :  { %s6786_s4 = sld [smem:[%s8516_s0 + %s6643_s28]]   ;;  %s6647_s28 = smov 29  }
  0x2a   :  { %s6791_s9 = sld [smem:[%s8516_s0 + %s6644_s7]]   ;;  %s6648_s7 = smov 30  }
  0x2b   :  { %s6796_s19 = sld [smem:[%s8516_s0 + %s6645_s15]]  }
  0x2c   :  { %s6806_s27 = sld [smem:[%s8516_s0 + %s6647_s28]]  }
  0x2d   :  { %s4875_s8 = sld [smem:[%s8516_s0 + %s6648_s7]]  }
  0x2e   :  { %8652 = sst [smem:[#allocation17_spill]] %s6781_s20 }
  0x2f   :  { %s6801_s20 = sld [smem:[%s8516_s0 + %s6646_s22]]  }
  0x31   :  { %8653 = sst [smem:[#allocation18_spill]] %s6796_s19 }
  0x32   :  { %s6814_s19 = sld [smem:[%s8516_s0 + %s6649_s16]]  }
  0x33   :  { %v6385_v0 = vld [vmem:[%s4875_s8 + $0x8] sm:$0xff]   ;;  %v6386_v1 = vld [vmem:[%s4875_s8] sm:$0xff]   ;;  %vm379_vm0 = vcmask 261120   ;;  %v6389_v4 = vld [vmem:[%s6661_s5 + $0x10] sm:$0xff]  }
  0x34   :  { %5767 = vmatprep.subr.bf16.mxu0 %v6385_v0  ;;  %v6387_v2 = vld [vmem:[%s6661_s5] sm:$0xff]   ;;  %v6388_v3 = vld [vmem:[%s6661_s5 + $0x8] sm:$0xff]   ;;  %v6390_v5 = vld [vmem:[%s6661_s5 + $0x18] sm:$0xff]  }
  0x35   :  { %5768 = vmatpush3.bf16.msra.mxu0 %v6385_v0  ;;  %5771 = vmatprep.mubr.msk.bf16.mxu0 %vm379_vm0, %v6387_v2  ;;  %v6391_v6 = vld [vmem:[%s6661_s5 + $0x20] sm:$0xff]   ;;  %v6392_v7 = vld [vmem:[%s6661_s5 + $0x28] sm:$0xff]   ;;  %v6393_v8 = vld [vmem:[%s6661_s5 + $0x30] sm:$0xff]  }
  0x36   :  { %5769 = vmatprep.subr.bf16.mxu0 %v6386_v1  ;;  %v6394_v9 = vld [vmem:[%s6661_s5 + $0x38] sm:$0xff]   ;;  %v6395_v10 = vld [vmem:[%s6661_s5 + $0x40] sm:$0xff]   ;;  %v6420_v12 = vld [vmem:[%s6691_s29 + $0x30] sm:$0xff]  }
  0x37   :  { %v6419_v11 = vld [vmem:[%s6691_s29 + $0x38] sm:$0xff]   ;;  %v6396_v13 = vld [vmem:[%s6661_s5 + $0x48] sm:$0xff]   ;;  %v6397_v14 = vld [vmem:[%s6661_s5 + $0x50] sm:$0xff]  }
  0x38   :  { %5835 = vmatprep.subr.bf16.mxu1 %v6419_v11  ;;  %v6421_v15 = vld [vmem:[%s6691_s29 + $0x28] sm:$0xff]   ;;  %v6422_v16 = vld [vmem:[%s6691_s29 + $0x20] sm:$0xff]   ;;  %v6398_v17 = vld [vmem:[%s6661_s5 + $0x58] sm:$0xff]  }
  0x39   :  { %5770 = vmatpush3.bf16.msra.mxu0 %v6386_v1  ;;  %5836 = vmatpush3.bf16.msra.mxu1 %v6419_v11  ;;  %v6423_v18 = vld [vmem:[%s6691_s29 + $0x18] sm:$0xff]   ;;  %v6399_v19 = vld [vmem:[%s6661_s5 + $0x60] sm:$0xff]   ;;  %v6400_v20 = vld [vmem:[%s6661_s5 + $0x68] sm:$0xff]  }
  0x3a   :  { %5837 = vmatprep.subr.bf16.mxu1 %v6420_v12  ;;  %v6401_v21 = vld [vmem:[%s6661_s5 + $0x70] sm:$0xff]   ;;  %v6402_v22 = vld [vmem:[%s6661_s5 + $0x78] sm:$0xff]   ;;  %v6403_v23 = vld [vmem:[%s6661_s5 + $0x80] sm:$0xff]  }
  0x3b   :  { %v6404_v24 = vld [vmem:[%s6661_s5 + $0x88] sm:$0xff]   ;;  %v6405_v25 = vld [vmem:[%s6661_s5 + $0x90] sm:$0xff]   ;;  %v6406_v27 = vld [vmem:[%s6661_s5 + $0x98] sm:$0xff]  }
  0x3c   :  { %5772 = vmatmul.mubr.msk.bf16.vlgmr.msra.gmra.mxu0 %vm379_vm0, %v6388_v3  ;;  %v6424_v26 = vld [vmem:[%s6691_s29 + $0x10] sm:$0xff]   ;;  %v6407_v28 = vld [vmem:[%s6661_s5 + $0xa0] sm:$0xff]   ;;  %v6425_v29 = vld [vmem:[%s6691_s29 + $0x8] sm:$0xff]  }
  0x3d   :  { %5775 = vmatprep.mubr.msk.bf16.mxu0 %vm379_vm0, %v6389_v4  ;;  %5838 = vmatpush3.bf16.msra.mxu1 %v6420_v12  ;;  %v6426_v30 = vld [vmem:[%s6691_s29] sm:$0xff]   ;;  %v6408_v31 = vld [vmem:[%s6661_s5 + $0xa8] sm:$0xff]   ;;  %v6409_v32 = vld [vmem:[%s6661_s5 + $0xb0] sm:$0xff]  }
  0x3e   :  { %5839 = vmatprep.subr.bf16.mxu1 %v6421_v15  ;;  %v6410_v33 = vld [vmem:[%s6661_s5 + $0xb8] sm:$0xff]   ;;  %v6411_v34 = vld [vmem:[%s6661_s5 + $0xc0] sm:$0xff]   ;;  %v6412_v35 = vld [vmem:[%s6661_s5 + $0xc8] sm:$0xff]  }
  0x3f   :  { %v6413_v36 = vld [vmem:[%s6661_s5 + $0xd0] sm:$0xff]   ;;  %v6414_v37 = vld [vmem:[%s6661_s5 + $0xd8] sm:$0xff]   ;;  %v6415_v38 = vld [vmem:[%s6661_s5 + $0xe0] sm:$0xff]  }
  0x40   :  { %v6427_v39 = vld [vmem:[%s6676_s17 + $0x38] sm:$0xff]   ;;  %v6428_v40 = vld [vmem:[%s6676_s17 + $0x30] sm:$0xff]   ;;  %v6416_v41 = vld [vmem:[%s6661_s5 + $0xe8] sm:$0xff]  }
  0x41   :  { %5840 = vmatpush3.bf16.msra.mxu1 %v6421_v15  ;;  %5915 = vmatprep.subr.bf16.mxu0 %v6427_v39  ;;  %v6417_v42 = vld [vmem:[%s6661_s5 + $0xf0] sm:$0xff]   ;;  %v6429_v43 = vld [vmem:[%s6676_s17 + $0x28] sm:$0xff]   ;;  %v6430_v44 = vld [vmem:[%s6676_s17 + $0x20] sm:$0xff]  }
  0x42   :  { %5841 = vmatprep.subr.bf16.mxu1 %v6422_v16  ;;  %5916 = vmatpush3.bf16.msra.mxu0 %v6427_v39  ;;  %v6431_v45 = vld [vmem:[%s6676_s17 + $0x18] sm:$0xff]  }
  0x43   :  { %5917 = vmatprep.subr.bf16.mxu0 %v6428_v40 }
  0x44   :  { %5776 = vmatmul.mubr.msk.bf16.gmra.mxu0 %vm379_vm0, %v6390_v5 }
  0x45   :  { %5779 = vmatprep.mubr.msk.bf16.mxu0 %vm379_vm0, %v6391_v6  ;;  %5842 = vmatpush3.bf16.msra.mxu1 %v6422_v16 }
  0x46   :  { %5843 = vmatprep.subr.bf16.mxu1 %v6423_v18  ;;  %5918 = vmatpush3.bf16.msra.mxu0 %v6428_v40 }
  0x47   :  { %5919 = vmatprep.subr.bf16.mxu0 %v6429_v43 }
  0x49   :  { %5844 = vmatpush3.bf16.msra.mxu1 %v6423_v18 }
  0x4a   :  { %5845 = vmatprep.subr.bf16.mxu1 %v6424_v26  ;;  %5920 = vmatpush3.bf16.msra.mxu0 %v6429_v43 }
  0x4b   :  { %5921 = vmatprep.subr.bf16.mxu0 %v6430_v44 }
  0x4c   :  { %5780 = vmatmul.mubr.msk.bf16.gmra.mxu0 %vm379_vm0, %v6392_v7 }
  0x4d   :  { %5783 = vmatprep.mubr.msk.bf16.mxu0 %vm379_vm0, %v6393_v8  ;;  %5846 = vmatpush3.bf16.msra.mxu1 %v6424_v26 }
  0x4e   :  { %5847 = vmatprep.subr.bf16.mxu1 %v6425_v29  ;;  %5922 = vmatpush3.bf16.msra.mxu0 %v6430_v44 }
  0x51   :  { %5848 = vmatpush3.bf16.msra.mxu1 %v6425_v29 }
  0x52   :  { %5849 = vmatprep.subr.bf16.mxu1 %v6426_v30 }
  0x54   :  { %5784 = vmatmul.mubr.msk.bf16.gmra.mxu0 %vm379_vm0, %v6394_v9 }
  0x55   :  { %5787 = vmatprep.mubr.msk.bf16.mxu0 %vm379_vm0, %v6395_v10  ;;  %5850 = vmatpush3.bf16.msra.mxu1 %v6426_v30 }
  0x5c   :  { %5788 = vmatmul.mubr.msk.bf16.gmra.mxu0 %vm379_vm0, %v6396_v13 }
  0x5d   :  { %5791 = vmatprep.mubr.msk.bf16.mxu0 %vm379_vm0, %v6397_v14 }
  0x64   :  { %5792 = vmatmul.mubr.msk.bf16.gmra.mxu0 %vm379_vm0, %v6398_v17 }
  0x65   :  { %5795 = vmatprep.mubr.msk.bf16.mxu0 %vm379_vm0, %v6399_v19 }
  0x6c   :  { %5796 = vmatmul.mubr.msk.bf16.gmra.mxu0 %vm379_vm0, %v6400_v20 }
  0x6d   :  { %5799 = vmatprep.mubr.msk.bf16.mxu0 %vm379_vm0, %v6401_v21 }
  0x74   :  { %5800 = vmatmul.mubr.msk.bf16.gmra.mxu0 %vm379_vm0, %v6402_v22 }
  0x75   :  { %5803 = vmatprep.mubr.msk.bf16.mxu0 %vm379_vm0, %v6403_v23 }
  0x7c   :  { %5804 = vmatmul.mubr.msk.bf16.gmra.mxu0 %vm379_vm0, %v6404_v24 }
  0x7d   :  { %5807 = vmatprep.mubr.msk.bf16.mxu0 %vm379_vm0, %v6405_v25 }
  0x84   :  { %5808 = vmatmul.mubr.msk.bf16.gmra.mxu0 %vm379_vm0, %v6406_v27 }
  0x85   :  { %5811 = vmatprep.mubr.msk.bf16.mxu0 %vm379_vm0, %v6407_v28 }
  0x8c   :  { %5812 = vmatmul.mubr.msk.bf16.gmra.mxu0 %vm379_vm0, %v6408_v31 }
  0x8d   :  { %5815 = vmatprep.mubr.msk.bf16.mxu0 %vm379_vm0, %v6409_v32 }
  0x94   :  { %5816 = vmatmul.mubr.msk.bf16.gmra.mxu0 %vm379_vm0, %v6410_v33 }
  0x95   :  { %5819 = vmatprep.mubr.msk.bf16.mxu0 %vm379_vm0, %v6411_v34 }
  0x9c   :  { %5820 = vmatmul.mubr.msk.bf16.gmra.mxu0 %vm379_vm0, %v6412_v35 }
  0x9d   :  { %5823 = vmatprep.mubr.msk.bf16.mxu0 %vm379_vm0, %v6413_v36 }
  0xa4   :  { %5824 = vmatmul.mubr.msk.bf16.gmra.mxu0 %vm379_vm0, %v6414_v37 }
  0xa5   :  { %5827 = vmatprep.mubr.msk.bf16.mxu0 %vm379_vm0, %v6415_v38 }
  0xac   :  { %5828 = vmatmul.mubr.msk.bf16.gmra.mxu0 %vm379_vm0, %v6416_v41 }
  0xad   :  { %5831 = vmatprep.mubr.msk.bf16.mxu0 %vm379_vm0, %v6417_v42 }
  0xae   :  { %68 = vsyncpa [#allocation3], 0  ;;  %v6418_v46 = vld [vmem:[%s6661_s5 + $0xf8] sm:$0xff]   ;;  %5923 = vmatprep.subr.bf16.mxu0 %v6431_v45  ;;  %v6432_v47 = vld [vmem:[%s6676_s17 + $0x10] sm:$0xff]   ;;  %s8827_s0 = sld [smem:[#allocation18_spill]]  ;;  %vm6651_vm1 = vmmov 0  }
  0xaf   :  { %5924 = vmatpush3.bf16.msra.mxu0 %v6431_v45  ;;  %v6433_v48 = vld [vmem:[%s6676_s17 + $0x8] sm:$0xff]   ;;  %v6434_v49 = vld [vmem:[%s6676_s17] sm:$0xff]   ;;  %v6435_v50 = vld [vmem:[%s6686_s25 + $0x38] sm:$0xff]   ;;  %s8828_s5 = sld [smem:[#allocation6_spill]] }
  0xb0   :  { %5925 = vmatprep.subr.bf16.mxu0 %v6432_v47  ;;  %5995 = vmatprep.subr.bf16.mxu1 %v6435_v50  ;;  %v6898_v53 = vld [vmem:[%s6806_s27] ss:$0 sm:$0xff]  ;;  %v6436_v5 = vld [vmem:[%s6686_s25 + $0x30] sm:$0xff]   ;;  %v6437_v13 = vld [vmem:[%s6686_s25 + $0x28] sm:$0xff]   ;;  %s8846_s17 = sld [smem:[#allocation7_spill]] }
  0xb1   :  { %v6438_v21 = vld [vmem:[%s6686_s25 + $0x20] sm:$0xff]   ;;  %v6439_v29 = vld [vmem:[%s6686_s25 + $0x18] sm:$0xff]   ;;  %v6440_v37 = vld [vmem:[%s6686_s25 + $0x10] sm:$0xff]   ;;  %s8849_s29 = sld [smem:[#allocation11_spill]] }
  0xb2   :  { %v6441_v45 = vld [vmem:[%s6686_s25 + $0x8] sm:$0xff]   ;;  %s8851_s8 = sld [smem:[#allocation8_spill]] }
  0xb3   :  { %5926 = vmatpush3.bf16.msra.mxu0 %v6432_v47 }
  0xb4   :  { %5832 = vmatmul.mubr.msk.bf16.gmra.mxu0 %vm379_vm0, %v6418_v46  ;;  %5927 = vmatprep.subr.bf16.mxu0 %v6433_v48 }
  0xb7   :  { %5928 = vmatpush3.bf16.msra.mxu0 %v6433_v48 }
  0xb8   :  { %5929 = vmatprep.subr.bf16.mxu0 %v6434_v49 }
  0xbb   :  { %5930 = vmatpush3.bf16.msra.mxu0 %v6434_v49 }
  0xfc   :  { %v5773_v51 = vpop.f32.mrf.mxu0 }
  0xfd   :  { %v519_v57 = vadd.f32 %v5773_v51, %v6898_v53 }
  0xfe   :  { %v510_v52 = vpop.f32.mrf.mxu0 }
  0xff   :  { %v511_v55 = vadd.f32 %v6898_v53, %v510_v52  ;;  %v767_v0 = vmax.f32 %v519_v57, 0.0 }
 0x100   :  { %v5774_v54 = vpop.f32.mrf.mxu0 }
 0x101   :  { %v522_v56 = vadd.f32 %v5774_v54, %v6898_v53  ;;  %v765_v62 = vmax.f32 %v511_v55, 0.0  ;;  %v6442_v54 = vld [vmem:[%s6686_s25] sm:$0xff]   ;;  %s8848_s25 = sld [smem:[#allocation9_spill]] }
 0x102   :  { %v513_v58 = vpop.f32.mrf.mxu0 }
 0x103   :  { %v514_v59 = vadd.f32 %v6898_v53, %v513_v58  ;;  %v768_v60 = vmax.f32 %v522_v56, 0.0 }
 0x104   :  { %v5777_v61 = vpop.f32.mrf.mxu0 }
 0x105   :  { %v766_v63 = vmax.f32 %v514_v59, 0.0  ;;  %v6906_v3 = vpack.c.bf16 %v768_v60, %v767_v0  ;;  %v535_v8 = vadd.f32 %v5777_v61, %v6898_v53 }
 0x106   :  { %v526_v1 = vpop.f32.mrf.mxu0 }
 0x107   :  { %v6904_v2 = vpack.c.bf16 %v766_v63, %v765_v62  ;;  %v527_v6 = vadd.f32 %v6898_v53, %v526_v1  ;;  %v771_v16 = vmax.f32 %v535_v8, 0.0 }
 0x108   :  { %v5778_v4 = vpop.f32.mrf.mxu0 }
 0x109   :  { %v538_v7 = vadd.f32 %v5778_v4, %v6898_v53  ;;  %5851 = vmatprep.mubr.bf16.mxu1 %v6904_v2  ;;  %v769_v14 = vmax.f32 %v527_v6, 0.0 }
 0x10a   :  { %v529_v9 = vpop.f32.mrf.mxu0  ;;  %5852 = vmatmul.mubr.bf16.vlgmr.msra.gmra.mxu1 %v6906_v3 }
 0x10b   :  { %v530_v10 = vadd.f32 %v6898_v53, %v529_v9  ;;  %5996 = vmatpush3.bf16.msra.mxu1 %v6435_v50  ;;  %v772_v11 = vmax.f32 %v538_v7, 0.0 }
 0x10c   :  { %v5781_v12 = vpop.f32.mrf.mxu0  ;;  %5997 = vmatprep.subr.bf16.mxu1 %v6436_v5 }
 0x10d   :  { %v770_v15 = vmax.f32 %v530_v10, 0.0  ;;  %v6918_v19 = vpack.c.bf16 %v772_v11, %v771_v16  ;;  %v551_v24 = vadd.f32 %v5781_v12, %v6898_v53 }
 0x10e   :  { %v542_v17 = vpop.f32.mrf.mxu0 }
 0x10f   :  { %v6916_v18 = vpack.c.bf16 %v770_v15, %v769_v14  ;;  %5998 = vmatpush3.bf16.msra.mxu1 %v6436_v5  ;;  %v543_v22 = vadd.f32 %v6898_v53, %v542_v17  ;;  %v775_v32 = vmax.f32 %v551_v24, 0.0 }
 0x110   :  { %v5782_v20 = vpop.f32.mrf.mxu0  ;;  %5999 = vmatprep.subr.bf16.mxu1 %v6437_v13 }
 0x111   :  { %v554_v23 = vadd.f32 %v5782_v20, %v6898_v53  ;;  %5855 = vmatprep.mubr.bf16.mxu1 %v6916_v18  ;;  %v773_v30 = vmax.f32 %v543_v22, 0.0 }
 0x112   :  { %v545_v25 = vpop.f32.mrf.mxu0  ;;  %5856 = vmatmul.mubr.bf16.gmra.mxu1 %v6918_v19 }
 0x113   :  { %v546_v26 = vadd.f32 %v6898_v53, %v545_v25  ;;  %6000 = vmatpush3.bf16.msra.mxu1 %v6437_v13  ;;  %v776_v27 = vmax.f32 %v554_v23, 0.0 }
 0x114   :  { %v5785_v28 = vpop.f32.mrf.mxu0  ;;  %6001 = vmatprep.subr.bf16.mxu1 %v6438_v21 }
 0x115   :  { %v774_v31 = vmax.f32 %v546_v26, 0.0  ;;  %v6930_v35 = vpack.c.bf16 %v776_v27, %v775_v32  ;;  %v567_v40 = vadd.f32 %v5785_v28, %v6898_v53 }
 0x116   :  { %v558_v33 = vpop.f32.mrf.mxu0 }
 0x117   :  { %v6928_v34 = vpack.c.bf16 %v774_v31, %v773_v30  ;;  %6002 = vmatpush3.bf16.msra.mxu1 %v6438_v21  ;;  %v559_v38 = vadd.f32 %v6898_v53, %v558_v33  ;;  %v779_v48 = vmax.f32 %v567_v40, 0.0 }
 0x118   :  { %v5786_v36 = vpop.f32.mrf.mxu0  ;;  %6003 = vmatprep.subr.bf16.mxu1 %v6439_v29 }
 0x119   :  { %v570_v39 = vadd.f32 %v5786_v36, %v6898_v53  ;;  %5859 = vmatprep.mubr.bf16.mxu1 %v6928_v34  ;;  %v777_v46 = vmax.f32 %v559_v38, 0.0 }
 0x11a   :  { %v561_v41 = vpop.f32.mrf.mxu0  ;;  %5860 = vmatmul.mubr.bf16.gmra.mxu1 %v6930_v35 }
 0x11b   :  { %v562_v42 = vadd.f32 %v6898_v53, %v561_v41  ;;  %6004 = vmatpush3.bf16.msra.mxu1 %v6439_v29  ;;  %v780_v43 = vmax.f32 %v570_v39, 0.0 }
 0x11c   :  { %v5789_v44 = vpop.f32.mrf.mxu0  ;;  %6005 = vmatprep.subr.bf16.mxu1 %v6440_v37 }
 0x11d   :  { %v778_v47 = vmax.f32 %v562_v42, 0.0  ;;  %v6942_v51 = vpack.c.bf16 %v780_v43, %v779_v48  ;;  %v583_v57 = vadd.f32 %v5789_v44, %v6898_v53 }
 0x11e   :  { %v574_v49 = vpop.f32.mrf.mxu0 }
 0x11f   :  { %v6940_v50 = vpack.c.bf16 %v778_v47, %v777_v46  ;;  %6006 = vmatpush3.bf16.msra.mxu1 %v6440_v37  ;;  %v575_v55 = vadd.f32 %v6898_v53, %v574_v49  ;;  %v783_v0 = vmax.f32 %v583_v57, 0.0 }
 0x120   :  { %v5790_v52 = vpop.f32.mrf.mxu0  ;;  %6007 = vmatprep.subr.bf16.mxu1 %v6441_v45 }
 0x121   :  { %v586_v56 = vadd.f32 %v5790_v52, %v6898_v53  ;;  %5863 = vmatprep.mubr.bf16.mxu1 %v6940_v50  ;;  %v781_v62 = vmax.f32 %v575_v55, 0.0 }
 0x122   :  { %v577_v58 = vpop.f32.mrf.mxu0  ;;  %5864 = vmatmul.mubr.bf16.gmra.mxu1 %v6942_v51 }
 0x123   :  { %v578_v59 = vadd.f32 %v6898_v53, %v577_v58  ;;  %6008 = vmatpush3.bf16.msra.mxu1 %v6441_v45  ;;  %v784_v60 = vmax.f32 %v586_v56, 0.0 }
 0x124   :  { %v5793_v61 = vpop.f32.mrf.mxu0  ;;  %6009 = vmatprep.subr.bf16.mxu1 %v6442_v54 }
 0x125   :  { %v782_v63 = vmax.f32 %v578_v59, 0.0  ;;  %v6953_v5 = vpack.c.bf16 %v784_v60, %v783_v0  ;;  %v599_v9 = vadd.f32 %v5793_v61, %v6898_v53 }
 0x126   :  { %v590_v1 = vpop.f32.mrf.mxu0 }
 0x127   :  { %v6951_v4 = vpack.c.bf16 %v782_v63, %v781_v62  ;;  %6010 = vmatpush3.bf16.msra.mxu1 %v6442_v54  ;;  %v591_v7 = vadd.f32 %v6898_v53, %v590_v1  ;;  %v787_v16 = vmax.f32 %v599_v9, 0.0 }
 0x128   :  { %v5794_v6 = vpop.f32.mrf.mxu0 }
 0x129   :  { %v602_v8 = vadd.f32 %v5794_v6, %v6898_v53  ;;  %5867 = vmatprep.mubr.bf16.mxu1 %v6951_v4  ;;  %v785_v14 = vmax.f32 %v591_v7, 0.0 }
 0x12a   :  { %v593_v10 = vpop.f32.mrf.mxu0  ;;  %5868 = vmatmul.mubr.bf16.gmra.mxu1 %v6953_v5 }
 0x12b   :  { %v594_v11 = vadd.f32 %v6898_v53, %v593_v10  ;;  %v788_v12 = vmax.f32 %v602_v8, 0.0 }
 0x12c   :  { %v5797_v13 = vpop.f32.mrf.mxu0 }
 0x12d   :  { %v786_v15 = vmax.f32 %v594_v11, 0.0  ;;  %v6963_v21 = vpack.c.bf16 %v788_v12, %v787_v16  ;;  %v615_v25 = vadd.f32 %v5797_v13, %v6898_v53 }
 0x12e   :  { %v606_v17 = vpop.f32.mrf.mxu0 }
 0x12f   :  { %v6961_v20 = vpack.c.bf16 %v786_v15, %v785_v14  ;;  %v607_v23 = vadd.f32 %v6898_v53, %v606_v17  ;;  %v791_v32 = vmax.f32 %v615_v25, 0.0 }
 0x130   :  { %v5798_v22 = vpop.f32.mrf.mxu0 }
 0x131   :  { %v618_v24 = vadd.f32 %v5798_v22, %v6898_v53  ;;  %5871 = vmatprep.mubr.bf16.mxu1 %v6961_v20  ;;  %v789_v30 = vmax.f32 %v607_v23, 0.0 }
 0x132   :  { %v609_v26 = vpop.f32.mrf.mxu0  ;;  %5872 = vmatmul.mubr.bf16.gmra.mxu1 %v6963_v21 }
 0x133   :  { %v610_v27 = vadd.f32 %v6898_v53, %v609_v26  ;;  %v792_v28 = vmax.f32 %v618_v24, 0.0 }
 0x134   :  { %v5801_v29 = vpop.f32.mrf.mxu0 }
 0x135   :  { %v790_v31 = vmax.f32 %v610_v27, 0.0  ;;  %v631_v36 = vadd.f32 %v5801_v29, %v6898_v53  ;;  %v6974_v38 = vpack.c.bf16 %v792_v28, %v791_v32 }
 0x136   :  { %v622_v33 = vpop.f32.mrf.mxu0 }
 0x137   :  { %v6972_v37 = vpack.c.bf16 %v790_v31, %v789_v30  ;;  %v623_v40 = vadd.f32 %v6898_v53, %v622_v33  ;;  %v795_v43 = vmax.f32 %v631_v36, 0.0 }
 0x138   :  { %v5802_v39 = vpop.f32.mrf.mxu0 }
 0x139   :  { %v634_v41 = vadd.f32 %v5802_v39, %v6898_v53  ;;  %5875 = vmatprep.mubr.bf16.mxu1 %v6972_v37  ;;  %v793_v47 = vmax.f32 %v623_v40, 0.0 }
 0x13a   :  { %v625_v42 = vpop.f32.mrf.mxu0  ;;  %5876 = vmatmul.mubr.bf16.gmra.mxu1 %v6974_v38 }
 0x13b   :  { %v796_v44 = vmax.f32 %v634_v41, 0.0  ;;  %v626_v45 = vadd.f32 %v6898_v53, %v625_v42 }
 0x13c   :  { %v5805_v46 = vpop.f32.mrf.mxu0 }
 0x13d   :  { %v844_v48 = vpack.c.bf16 %v796_v44, %v795_v43  ;;  %v794_v49 = vmax.f32 %v626_v45, 0.0  ;;  %v647_v58 = vadd.f32 %v5805_v46, %v6898_v53 }
 0x13e   :  { %v638_v52 = vpop.f32.mrf.mxu0 }
 0x13f   :  { %5263 = vmatprep.subr.bf16.mxu0 %v844_v48  ;;  %v6981_v54 = vpack.c.bf16 %v794_v49, %v793_v47  ;;  %v639_v56 = vadd.f32 %v6898_v53, %v638_v52  ;;  %v799_v1 = vmax.f32 %v647_v58, 0.0 }
 0x140   :  { %v5806_v55 = vpop.f32.mrf.mxu0 }
 0x141   :  { %v650_v57 = vadd.f32 %v5806_v55, %v6898_v53  ;;  %5879 = vmatprep.mubr.bf16.mxu1 %v6981_v54  ;;  %v797_v63 = vmax.f32 %v639_v56, 0.0 }
 0x142   :  { %v641_v59 = vpop.f32.mrf.mxu0  ;;  %5880 = vmatmul.mubr.bf16.gmra.mxu1 %v844_v48 }
 0x143   :  { %v642_v60 = vadd.f32 %v6898_v53, %v641_v59  ;;  %v800_v61 = vmax.f32 %v650_v57, 0.0 }
 0x144   :  { %v5809_v62 = vpop.f32.mrf.mxu0 }
 0x145   :  { %v798_v0 = vmax.f32 %v642_v60, 0.0  ;;  %v6990_v8 = vpack.c.bf16 %v800_v61, %v799_v1  ;;  %v663_v12 = vadd.f32 %v5809_v62, %v6898_v53 }
 0x146   :  { %v654_v6 = vpop.f32.mrf.mxu0 }
 0x147   :  { %v6988_v7 = vpack.c.bf16 %v798_v0, %v797_v63  ;;  %v655_v10 = vadd.f32 %v6898_v53, %v654_v6  ;;  %v803_v23 = vmax.f32 %v663_v12, 0.0 }
 0x148   :  { %v5810_v9 = vpop.f32.mrf.mxu0 }
 0x149   :  { %v666_v11 = vadd.f32 %v5810_v9, %v6898_v53  ;;  %5883 = vmatprep.mubr.bf16.mxu1 %v6988_v7  ;;  %v801_v17 = vmax.f32 %v655_v10, 0.0 }
 0x14a   :  { %v657_v13 = vpop.f32.mrf.mxu0  ;;  %5884 = vmatmul.mubr.bf16.gmra.mxu1 %v6990_v8 }
 0x14b   :  { %v658_v14 = vadd.f32 %v6898_v53, %v657_v13  ;;  %v804_v15 = vmax.f32 %v666_v11, 0.0 }
 0x14c   :  { %v5813_v16 = vpop.f32.mrf.mxu0 }
 0x14d   :  { %v802_v22 = vmax.f32 %v658_v14, 0.0  ;;  %v7000_v26 = vpack.c.bf16 %v804_v15, %v803_v23  ;;  %v679_v30 = vadd.f32 %v5813_v16, %v6898_v53 }
 0x14e   :  { %v670_v24 = vpop.f32.mrf.mxu0 }
 0x14f   :  { %v6998_v25 = vpack.c.bf16 %v802_v22, %v801_v17  ;;  %v671_v28 = vadd.f32 %v6898_v53, %v670_v24  ;;  %v807_v41 = vmax.f32 %v679_v30, 0.0 }
 0x150   :  { %v5814_v27 = vpop.f32.mrf.mxu0 }
 0x151   :  { %v682_v29 = vadd.f32 %v5814_v27, %v6898_v53  ;;  %5887 = vmatprep.mubr.bf16.mxu1 %v6998_v25  ;;  %v805_v39 = vmax.f32 %v671_v28, 0.0 }
 0x152   :  { %v673_v31 = vpop.f32.mrf.mxu0  ;;  %5888 = vmatmul.mubr.bf16.gmra.mxu1 %v7000_v26 }
 0x153   :  { %v674_v32 = vadd.f32 %v6898_v53, %v673_v31  ;;  %v808_v33 = vmax.f32 %v682_v29, 0.0 }
 0x154   :  { %v5817_v36 = vpop.f32.mrf.mxu0 }
 0x155   :  { %v806_v40 = vmax.f32 %v674_v32, 0.0  ;;  %v7010_v44 = vpack.c.bf16 %v808_v33, %v807_v41  ;;  %v695_v48 = vadd.f32 %v5817_v36, %v6898_v53 }
 0x156   :  { %v686_v42 = vpop.f32.mrf.mxu0 }
 0x157   :  { %v7008_v43 = vpack.c.bf16 %v806_v40, %v805_v39  ;;  %v687_v46 = vadd.f32 %v6898_v53, %v686_v42  ;;  %v811_v59 = vmax.f32 %v695_v48, 0.0 }
 0x158   :  { %v5818_v45 = vpop.f32.mrf.mxu0 }
 0x159   :  { %v698_v47 = vadd.f32 %v5818_v45, %v6898_v53  ;;  %5891 = vmatprep.mubr.bf16.mxu1 %v7008_v43  ;;  %v809_v57 = vmax.f32 %v687_v46, 0.0 }
 0x15a   :  { %v689_v49 = vpop.f32.mrf.mxu0  ;;  %5892 = vmatmul.mubr.bf16.gmra.mxu1 %v7010_v44 }
 0x15b   :  { %v690_v52 = vadd.f32 %v6898_v53, %v689_v49  ;;  %v812_v55 = vmax.f32 %v698_v47, 0.0 }
 0x15c   :  { %v5821_v56 = vpop.f32.mrf.mxu0 }
 0x15d   :  { %v810_v58 = vmax.f32 %v690_v52, 0.0  ;;  %v7020_v62 = vpack.c.bf16 %v812_v55, %v811_v59  ;;  %v711_v6 = vadd.f32 %v5821_v56, %v6898_v53 }
 0x15e   :  { %v702_v60 = vpop.f32.mrf.mxu0 }
 0x15f   :  { %v7018_v61 = vpack.c.bf16 %v810_v58, %v809_v57  ;;  %v703_v0 = vadd.f32 %v6898_v53, %v702_v60  ;;  %v815_v15 = vmax.f32 %v711_v6, 0.0 }
 0x160   :  { %v5822_v63 = vpop.f32.mrf.mxu0 }
 0x161   :  { %v714_v1 = vadd.f32 %v5822_v63, %v6898_v53  ;;  %5895 = vmatprep.mubr.bf16.mxu1 %v7018_v61  ;;  %v813_v13 = vmax.f32 %v703_v0, 0.0 }
 0x162   :  { %v705_v9 = vpop.f32.mrf.mxu0  ;;  %5896 = vmatmul.mubr.bf16.gmra.mxu1 %v7020_v62 }
 0x163   :  { %v706_v10 = vadd.f32 %v6898_v53, %v705_v9  ;;  %v816_v11 = vmax.f32 %v714_v1, 0.0 }
 0x164   :  { %v5825_v12 = vpop.f32.mrf.mxu0 }
 0x165   :  { %v814_v14 = vmax.f32 %v706_v10, 0.0  ;;  %v7030_v22 = vpack.c.bf16 %v816_v11, %v815_v15  ;;  %v727_v28 = vadd.f32 %v5825_v12, %v6898_v53 }
 0x166   :  { %v718_v16 = vpop.f32.mrf.mxu0 }
 0x167   :  { %v7028_v17 = vpack.c.bf16 %v814_v14, %v813_v13  ;;  %v719_v24 = vadd.f32 %v6898_v53, %v718_v16  ;;  %v819_v39 = vmax.f32 %v727_v28, 0.0 }
 0x168   :  { %v5826_v23 = vpop.f32.mrf.mxu0 }
 0x169   :  { %v730_v27 = vadd.f32 %v5826_v23, %v6898_v53  ;;  %5899 = vmatprep.mubr.bf16.mxu1 %v7028_v17  ;;  %v817_v33 = vmax.f32 %v719_v24, 0.0 }
 0x16a   :  { %v721_v29 = vpop.f32.mrf.mxu0  ;;  %5900 = vmatmul.mubr.bf16.gmra.mxu1 %v7030_v22 }
 0x16b   :  { %v722_v30 = vadd.f32 %v6898_v53, %v721_v29  ;;  %v820_v31 = vmax.f32 %v730_v27, 0.0  ;;  %v7062_v29 = vld [vmem:[%s6696_s3] ss:$0 sm:$0xff]  ;;  %s8850_s3 = sld [smem:[#allocation15_spill]] }
 0x16c   :  { %v5829_v32 = vpop.f32.mrf.mxu0 }
 0x16d   :  { %v818_v36 = vmax.f32 %v722_v30, 0.0  ;;  %v7040_v42 = vpack.c.bf16 %v820_v31, %v819_v39  ;;  %v743_v48 = vadd.f32 %v5829_v32, %v6898_v53 }
 0x16e   :  { %v734_v40 = vpop.f32.mrf.mxu0 }
 0x16f   :  { %v7038_v41 = vpack.c.bf16 %v818_v36, %v817_v33  ;;  %v735_v46 = vadd.f32 %v6898_v53, %v734_v40  ;;  %v823_v59 = vmax.f32 %v743_v48, 0.0 }
 0x170   :  { %v5830_v45 = vpop.f32.mrf.mxu0 }
 0x171   :  { %v746_v47 = vadd.f32 %v5830_v45, %v6898_v53  ;;  %5903 = vmatprep.mubr.bf16.mxu1 %v7038_v41  ;;  %v821_v57 = vmax.f32 %v735_v46, 0.0 }
 0x172   :  { %v737_v49 = vpop.f32.mrf.mxu0  ;;  %5904 = vmatmul.mubr.bf16.gmra.mxu1 %v7040_v42 }
 0x173   :  { %v738_v52 = vadd.f32 %v6898_v53, %v737_v49  ;;  %v824_v55 = vmax.f32 %v746_v47, 0.0 }
 0x174   :  { %v5833_v56 = vpop.f32.mrf.mxu0 }
 0x175   :  { %v822_v58 = vmax.f32 %v738_v52, 0.0  ;;  %v759_v63 = vadd.f32 %v5833_v56, %v6898_v53  ;;  %v7051_v1 = vpack.c.bf16 %v824_v55, %v823_v59 }
 0x176   :  { %v750_v60 = vpop.f32.mrf.mxu0 }
 0x177   :  { %v7049_v0 = vpack.c.bf16 %v822_v58, %v821_v57  ;;  %v751_v9 = vadd.f32 %v6898_v53, %v750_v60  ;;  %v827_v12 = vmax.f32 %v759_v63, 0.0 }
 0x178   :  { %v5834_v6 = vpop.f32.mrf.mxu0 }
 0x179   :  { %v762_v10 = vadd.f32 %v5834_v6, %v6898_v53  ;;  %5907 = vmatprep.mubr.bf16.mxu1 %v7049_v0  ;;  %v825_v15 = vmax.f32 %v751_v9, 0.0 }
 0x17a   :  { %v753_v11 = vpop.f32.mrf.mxu0  ;;  %5908 = vmatmul.mubr.bf16.gmra.mxu1 %v7051_v1 }
 0x17b   :  { %v828_v13 = vmax.f32 %v762_v10, 0.0  ;;  %v754_v14 = vadd.f32 %v6898_v53, %v753_v11 }
 0x17d   :  { %v860_v16 = vpack.c.bf16 %v828_v13, %v827_v12  ;;  %v826_v23 = vmax.f32 %v754_v14, 0.0 }
 0x17f   :  { %5327 = vmatprep.subr.bf16.mxu1 %v860_v16  ;;  %v7058_v24 = vpack.c.bf16 %v826_v23, %v825_v15 }
 0x181   :  { %5911 = vmatprep.mubr.bf16.mxu1 %v7058_v24 }
 0x182   :  { %5912 = vmatmul.mubr.bf16.gmra.mxu1 %v860_v16 }
 0x1ca   :  { %v5853_v27 = vpop.f32.mrf.mxu1 }
 0x1cb   :  { %v975_v53 = vadd.f32 %v5853_v27, %v7062_v29 }
 0x1cc   :  { %v966_v28 = vpop.f32.mrf.mxu1 }
 0x1cd   :  { %v967_v31 = vadd.f32 %v7062_v29, %v966_v28  ;;  %v1223_v47 = vmax.f32 %v975_v53, 0.0 }
 0x1ce   :  { %v5854_v30 = vpop.f32.mrf.mxu1 }
 0x1cf   :  { %v978_v32 = vadd.f32 %v5854_v30, %v7062_v29  ;;  %v1221_v45 = vmax.f32 %v967_v31, 0.0 }
 0x1d0   :  { %v969_v33 = vpop.f32.mrf.mxu1 }
 0x1d1   :  { %v970_v36 = vadd.f32 %v7062_v29, %v969_v33  ;;  %v1224_v39 = vmax.f32 %v978_v32, 0.0 }
 0x1d2   :  { %v5857_v40 = vpop.f32.mrf.mxu1 }
 0x1d3   :  { %v1222_v46 = vmax.f32 %v970_v36, 0.0  ;;  %v7070_v52 = vpack.c.bf16 %v1224_v39, %v1223_v47  ;;  %v991_v58 = vadd.f32 %v5857_v40, %v7062_v29 }
 0x1d4   :  { %v982_v48 = vpop.f32.mrf.mxu1 }
 0x1d5   :  { %v7068_v49 = vpack.c.bf16 %v1222_v46, %v1221_v45  ;;  %v983_v56 = vadd.f32 %v7062_v29, %v982_v48  ;;  %v1227_v11 = vmax.f32 %v991_v58, 0.0 }
 0x1d6   :  { %v5858_v55 = vpop.f32.mrf.mxu1 }
 0x1d7   :  { %v994_v57 = vadd.f32 %v5858_v55, %v7062_v29  ;;  %5931 = vmatprep.mubr.bf16.mxu0 %v7068_v49  ;;  %v1225_v9 = vmax.f32 %v983_v56, 0.0 }
 0x1d8   :  { %v985_v59 = vpop.f32.mrf.mxu1  ;;  %5932 = vmatmul.mubr.bf16.vlgmr.msra.gmra.mxu0 %v7070_v52 }
 0x1d9   :  { %v986_v60 = vadd.f32 %v7062_v29, %v985_v59  ;;  %5264 = vmatpush3.bf16.msra.mxu0 %v6942_v51  ;;  %v1228_v63 = vmax.f32 %v994_v57, 0.0 }
 0x1da   :  { %5265 = vmatprep.subr.bf16.mxu0 %v6981_v54  ;;  %v5861_v6 = vpop.f32.mrf.mxu1 }
 0x1db   :  { %v1226_v10 = vmax.f32 %v986_v60, 0.0  ;;  %v7083_v14 = vpack.c.bf16 %v1228_v63, %v1227_v11  ;;  %v1007_v54 = vadd.f32 %v5861_v6, %v7062_v29 }
 0x1dc   :  { %v998_v12 = vpop.f32.mrf.mxu1 }
 0x1dd   :  { %5266 = vmatpush3.bf16.msra.mxu0 %v6940_v50  ;;  %v7081_v13 = vpack.c.bf16 %v1226_v10, %v1225_v9  ;;  %v999_v16 = vadd.f32 %v7062_v29, %v998_v12  ;;  %v1231_v31 = vmax.f32 %v1007_v54, 0.0 }
 0x1de   :  { %5267 = vmatprep.subr.bf16.mxu0 %v6974_v38  ;;  %v5862_v15 = vpop.f32.mrf.mxu1 }
 0x1df   :  { %v1010_v51 = vadd.f32 %v5862_v15, %v7062_v29  ;;  %5935 = vmatprep.mubr.bf16.mxu0 %v7081_v13  ;;  %v1229_v28 = vmax.f32 %v999_v16, 0.0 }
 0x1e0   :  { %v1001_v23 = vpop.f32.mrf.mxu1  ;;  %5936 = vmatmul.mubr.bf16.gmra.mxu0 %v7083_v14 }
 0x1e1   :  { %v1002_v50 = vadd.f32 %v7062_v29, %v1001_v23  ;;  %5268 = vmatpush3.bf16.msra.mxu0 %v6930_v35  ;;  %v1232_v27 = vmax.f32 %v1010_v51, 0.0 }
 0x1e2   :  { %5269 = vmatprep.subr.bf16.mxu0 %v6972_v37  ;;  %v5865_v38 = vpop.f32.mrf.mxu1 }
 0x1e3   :  { %v1230_v30 = vmax.f32 %v1002_v50, 0.0  ;;  %v7097_v33 = vpack.c.bf16 %v1232_v27, %v1231_v31  ;;  %v1023_v37 = vadd.f32 %v5865_v38, %v7062_v29 }
 0x1e4   :  { %v1014_v32 = vpop.f32.mrf.mxu1 }
 0x1e5   :  { %5270 = vmatpush3.bf16.msra.mxu0 %v6928_v34  ;;  %v7095_v53 = vpack.c.bf16 %v1230_v30, %v1229_v28  ;;  %v1015_v39 = vadd.f32 %v7062_v29, %v1014_v32  ;;  %v1235_v48 = vmax.f32 %v1023_v37, 0.0 }
 0x1e6   :  { %5271 = vmatprep.subr.bf16.mxu0 %v6963_v21  ;;  %v5866_v36 = vpop.f32.mrf.mxu1 }
 0x1e7   :  { %v1026_v35 = vadd.f32 %v5866_v36, %v7062_v29  ;;  %5939 = vmatprep.mubr.bf16.mxu0 %v7095_v53  ;;  %v1233_v46 = vmax.f32 %v1015_v39, 0.0 }
 0x1e8   :  { %v1017_v40 = vpop.f32.mrf.mxu1  ;;  %5940 = vmatmul.mubr.bf16.gmra.mxu0 %v7097_v33 }
 0x1e9   :  { %v1018_v34 = vadd.f32 %v7062_v29, %v1017_v40  ;;  %5272 = vmatpush3.bf16.msra.mxu0 %v6918_v19  ;;  %v1236_v45 = vmax.f32 %v1026_v35, 0.0 }
 0x1ea   :  { %5273 = vmatprep.subr.bf16.mxu0 %v6961_v20  ;;  %v5869_v21 = vpop.f32.mrf.mxu1 }
 0x1eb   :  { %v1234_v47 = vmax.f32 %v1018_v34, 0.0  ;;  %v7111_v57 = vpack.c.bf16 %v1236_v45, %v1235_v48  ;;  %v1039_v20 = vadd.f32 %v5869_v21, %v7062_v29 }
 0x1ec   :  { %v1030_v55 = vpop.f32.mrf.mxu1 }
 0x1ed   :  { %5274 = vmatpush3.bf16.msra.mxu0 %v6916_v18  ;;  %v7109_v56 = vpack.c.bf16 %v1234_v47, %v1233_v46  ;;  %v1031_v59 = vadd.f32 %v7062_v29, %v1030_v55  ;;  %v1239_v10 = vmax.f32 %v1039_v20, 0.0 }
 0x1ee   :  { %5275 = vmatprep.subr.bf16.mxu0 %v6953_v5  ;;  %v5870_v58 = vpop.f32.mrf.mxu1 }
 0x1ef   :  { %v1042_v19 = vadd.f32 %v5870_v58, %v7062_v29  ;;  %5943 = vmatprep.mubr.bf16.mxu0 %v7109_v56  ;;  %v1237_v6 = vmax.f32 %v1031_v59, 0.0 }
 0x1f0   :  { %v1033_v60 = vpop.f32.mrf.mxu1  ;;  %5944 = vmatmul.mubr.bf16.gmra.mxu0 %v7111_v57 }
 0x1f1   :  { %v1034_v18 = vadd.f32 %v7062_v29, %v1033_v60  ;;  %5276 = vmatpush3.bf16.msra.mxu0 %v6906_v3  ;;  %v1240_v63 = vmax.f32 %v1042_v19, 0.0 }
 0x1f2   :  { %5277 = vmatprep.subr.bf16.mxu0 %v6951_v4  ;;  %v5873_v5 = vpop.f32.mrf.mxu1 }
 0x1f3   :  { %v1238_v9 = vmax.f32 %v1034_v18, 0.0  ;;  %v7125_v15 = vpack.c.bf16 %v1240_v63, %v1239_v10  ;;  %v1055_v3 = vadd.f32 %v5873_v5, %v7062_v29 }
 0x1f4   :  { %v1046_v11 = vpop.f32.mrf.mxu1 }
 0x1f5   :  { %5278 = vmatpush3.bf16.msra.mxu0 %v6904_v2  ;;  %v7123_v12 = vpack.c.bf16 %v1238_v9, %v1237_v6  ;;  %v1047_v51 = vadd.f32 %v7062_v29, %v1046_v11  ;;  %v1243_v28 = vmax.f32 %v1055_v3, 0.0 }
 0x1f6   :  { %v5874_v16 = vpop.f32.mrf.mxu1 }
 0x1f7   :  { %v1058_v54 = vadd.f32 %v5874_v16, %v7062_v29  ;;  %5947 = vmatprep.mubr.bf16.mxu0 %v7123_v12  ;;  %v1241_v27 = vmax.f32 %v1047_v51, 0.0 }
 0x1f8   :  { %v1049_v4 = vpop.f32.mrf.mxu1  ;;  %5948 = vmatmul.mubr.bf16.gmra.mxu0 %v7125_v15 }
 0x1f9   :  { %v1050_v23 = vadd.f32 %v7062_v29, %v1049_v4  ;;  %v1244_v50 = vmax.f32 %v1058_v54, 0.0 }
 0x1fa   :  { %v5877_v2 = vpop.f32.mrf.mxu1 }
 0x1fb   :  { %v1242_v38 = vmax.f32 %v1050_v23, 0.0  ;;  %v7135_v32 = vpack.c.bf16 %v1244_v50, %v1243_v28  ;;  %v1071_v37 = vadd.f32 %v5877_v2, %v7062_v29 }
 0x1fc   :  { %v1062_v30 = vpop.f32.mrf.mxu1 }
 0x1fd   :  { %v7133_v31 = vpack.c.bf16 %v1242_v38, %v1241_v27  ;;  %v1063_v39 = vadd.f32 %v7062_v29, %v1062_v30  ;;  %v1247_v48 = vmax.f32 %v1071_v37, 0.0 }
 0x1fe   :  { %v5878_v36 = vpop.f32.mrf.mxu1 }
 0x1ff   :  { %v1074_v35 = vadd.f32 %v5878_v36, %v7062_v29  ;;  %5951 = vmatprep.mubr.bf16.mxu0 %v7133_v31  ;;  %v1245_v46 = vmax.f32 %v1063_v39, 0.0 }
 0x200   :  { %v1065_v40 = vpop.f32.mrf.mxu1  ;;  %5952 = vmatmul.mubr.bf16.gmra.mxu0 %v7135_v32 }
 0x201   :  { %v1066_v34 = vadd.f32 %v7062_v29, %v1065_v40  ;;  %v1248_v45 = vmax.f32 %v1074_v35, 0.0 }
 0x202   :  { %v5881_v21 = vpop.f32.mrf.mxu1 }
 0x203   :  { %v1246_v47 = vmax.f32 %v1066_v34, 0.0  ;;  %v7145_v59 = vpack.c.bf16 %v1248_v45, %v1247_v48  ;;  %v1087_v18 = vadd.f32 %v5881_v21, %v7062_v29 }
 0x204   :  { %v1078_v55 = vpop.f32.mrf.mxu1 }
 0x205   :  { %v7143_v58 = vpack.c.bf16 %v1246_v47, %v1245_v46  ;;  %v1079_v20 = vadd.f32 %v7062_v29, %v1078_v55  ;;  %v1251_v16 = vmax.f32 %v1087_v18, 0.0 }
 0x206   :  { %v5882_v19 = vpop.f32.mrf.mxu1 }
 0x207   :  { %v1090_v60 = vadd.f32 %v5882_v19, %v7062_v29  ;;  %5955 = vmatprep.mubr.bf16.mxu0 %v7143_v58  ;;  %v1249_v10 = vmax.f32 %v1079_v20, 0.0 }
 0x208   :  { %v1081_v63 = vpop.f32.mrf.mxu1  ;;  %5956 = vmatmul.mubr.bf16.gmra.mxu0 %v7145_v59 }
 0x209   :  { %v1082_v5 = vadd.f32 %v7062_v29, %v1081_v63  ;;  %v1252_v6 = vmax.f32 %v1090_v60, 0.0 }
 0x20a   :  { %v5885_v9 = vpop.f32.mrf.mxu1 }
 0x20b   :  { %v1250_v11 = vmax.f32 %v1082_v5, 0.0  ;;  %v7155_v3 = vpack.c.bf16 %v1252_v6, %v1251_v16  ;;  %v1103_v2 = vadd.f32 %v5885_v9, %v7062_v29 }
 0x20c   :  { %v1094_v51 = vpop.f32.mrf.mxu1 }
 0x20d   :  { %v7153_v54 = vpack.c.bf16 %v1250_v11, %v1249_v10  ;;  %v1095_v23 = vadd.f32 %v7062_v29, %v1094_v51  ;;  %v1255_v35 = vmax.f32 %v1103_v2, 0.0 }
 0x20e   :  { %v5886_v4 = vpop.f32.mrf.mxu1 }
 0x20f   :  { %v1106_v50 = vadd.f32 %v5886_v4, %v7062_v29  ;;  %5959 = vmatprep.mubr.bf16.mxu0 %v7153_v54  ;;  %v1253_v36 = vmax.f32 %v1095_v23, 0.0 }
 0x210   :  { %v1097_v27 = vpop.f32.mrf.mxu1  ;;  %5960 = vmatmul.mubr.bf16.gmra.mxu0 %v7155_v3 }
 0x211   :  { %v1098_v38 = vadd.f32 %v7062_v29, %v1097_v27  ;;  %v1256_v28 = vmax.f32 %v1106_v50, 0.0 }
 0x212   :  { %v5889_v30 = vpop.f32.mrf.mxu1 }
 0x213   :  { %v1254_v39 = vmax.f32 %v1098_v38, 0.0  ;;  %v7165_v34 = vpack.c.bf16 %v1256_v28, %v1255_v35  ;;  %v1119_v47 = vadd.f32 %v5889_v30, %v7062_v29 }
 0x214   :  { %v1110_v37 = vpop.f32.mrf.mxu1 }
 0x215   :  { %v7163_v40 = vpack.c.bf16 %v1254_v39, %v1253_v36  ;;  %v1111_v21 = vadd.f32 %v7062_v29, %v1110_v37  ;;  %v1259_v63 = vmax.f32 %v1119_v47, 0.0 }
 0x216   :  { %v5890_v45 = vpop.f32.mrf.mxu1 }
 0x217   :  { %v1122_v46 = vadd.f32 %v5890_v45, %v7062_v29  ;;  %5963 = vmatprep.mubr.bf16.mxu0 %v7163_v40  ;;  %v1257_v60 = vmax.f32 %v1111_v21, 0.0 }
 0x218   :  { %v1113_v48 = vpop.f32.mrf.mxu1  ;;  %5964 = vmatmul.mubr.bf16.gmra.mxu0 %v7165_v34 }
 0x219   :  { %v1114_v55 = vadd.f32 %v7062_v29, %v1113_v48  ;;  %v1260_v19 = vmax.f32 %v1122_v46, 0.0 }
 0x21a   :  { %v5893_v20 = vpop.f32.mrf.mxu1 }
 0x21b   :  { %v1258_v18 = vmax.f32 %v1114_v55, 0.0  ;;  %v7175_v9 = vpack.c.bf16 %v1260_v19, %v1259_v63  ;;  %v1135_v51 = vadd.f32 %v5893_v20, %v7062_v29 }
 0x21c   :  { %v1126_v5 = vpop.f32.mrf.mxu1 }
 0x21d   :  { %v7173_v6 = vpack.c.bf16 %v1258_v18, %v1257_v60  ;;  %v1127_v11 = vadd.f32 %v7062_v29, %v1126_v5  ;;  %v1263_v28 = vmax.f32 %v1135_v51, 0.0 }
 0x21e   :  { %v5894_v10 = vpop.f32.mrf.mxu1 }
 0x21f   :  { %v1138_v16 = vadd.f32 %v5894_v10, %v7062_v29  ;;  %5967 = vmatprep.mubr.bf16.mxu0 %v7173_v6  ;;  %v1261_v27 = vmax.f32 %v1127_v11, 0.0 }
 0x220   :  { %v1129_v4 = vpop.f32.mrf.mxu1  ;;  %5968 = vmatmul.mubr.bf16.gmra.mxu0 %v7175_v9 }
 0x221   :  { %v1130_v23 = vadd.f32 %v7062_v29, %v1129_v4  ;;  %v1264_v50 = vmax.f32 %v1138_v16, 0.0 }
 0x222   :  { %v5897_v2 = vpop.f32.mrf.mxu1 }
 0x223   :  { %v1262_v38 = vmax.f32 %v1130_v23, 0.0  ;;  %v7185_v39 = vpack.c.bf16 %v1264_v50, %v1263_v28  ;;  %v1151_v21 = vadd.f32 %v5897_v2, %v7062_v29 }
 0x224   :  { %v1142_v30 = vpop.f32.mrf.mxu1 }
 0x225   :  { %v7183_v36 = vpack.c.bf16 %v1262_v38, %v1261_v27  ;;  %v1143_v37 = vadd.f32 %v7062_v29, %v1142_v30  ;;  %v1267_v60 = vmax.f32 %v1151_v21, 0.0 }
 0x226   :  { %v5898_v35 = vpop.f32.mrf.mxu1 }
 0x227   :  { %v1154_v45 = vadd.f32 %v5898_v35, %v7062_v29  ;;  %5971 = vmatprep.mubr.bf16.mxu0 %v7183_v36  ;;  %v1265_v19 = vmax.f32 %v1143_v37, 0.0 }
 0x228   :  { %v1145_v46 = vpop.f32.mrf.mxu1  ;;  %5972 = vmatmul.mubr.bf16.gmra.mxu0 %v7185_v39 }
 0x229   :  { %v1146_v47 = vadd.f32 %v7062_v29, %v1145_v46  ;;  %v1268_v48 = vmax.f32 %v1154_v45, 0.0 }
 0x22a   :  { %v5901_v55 = vpop.f32.mrf.mxu1 }
 0x22b   :  { %v1266_v20 = vmax.f32 %v1146_v47, 0.0  ;;  %v7195_v5 = vpack.c.bf16 %v1268_v48, %v1267_v60  ;;  %v1167_v51 = vadd.f32 %v5901_v55, %v7062_v29 }
 0x22c   :  { %v1158_v18 = vpop.f32.mrf.mxu1 }
 0x22d   :  { %v7193_v63 = vpack.c.bf16 %v1266_v20, %v1265_v19  ;;  %v1159_v11 = vadd.f32 %v7062_v29, %v1158_v18  ;;  %v1271_v28 = vmax.f32 %v1167_v51, 0.0 }
 0x22e   :  { %v5902_v10 = vpop.f32.mrf.mxu1 }
 0x22f   :  { %v1170_v16 = vadd.f32 %v5902_v10, %v7062_v29  ;;  %5975 = vmatprep.mubr.bf16.mxu0 %v7193_v63  ;;  %v1269_v27 = vmax.f32 %v1159_v11, 0.0 }
 0x230   :  { %v1161_v4 = vpop.f32.mrf.mxu1  ;;  %5976 = vmatmul.mubr.bf16.gmra.mxu0 %v7195_v5 }
 0x231   :  { %v1162_v23 = vadd.f32 %v7062_v29, %v1161_v4  ;;  %v1272_v50 = vmax.f32 %v1170_v16, 0.0 }
 0x232   :  { %v5905_v2 = vpop.f32.mrf.mxu1 }
 0x233   :  { %v1270_v38 = vmax.f32 %v1162_v23, 0.0  ;;  %v7205_v37 = vpack.c.bf16 %v1272_v50, %v1271_v28  ;;  %v1183_v47 = vadd.f32 %v5905_v2, %v7062_v29 }
 0x234   :  { %v1174_v30 = vpop.f32.mrf.mxu1 }
 0x235   :  { %v7203_v35 = vpack.c.bf16 %v1270_v38, %v1269_v27  ;;  %v1175_v21 = vadd.f32 %v7062_v29, %v1174_v30  ;;  %v1275_v10 = vmax.f32 %v1183_v47, 0.0 }
 0x236   :  { %v5906_v45 = vpop.f32.mrf.mxu1 }
 0x237   :  { %v1186_v46 = vadd.f32 %v5906_v45, %v7062_v29  ;;  %5979 = vmatprep.mubr.bf16.mxu0 %v7203_v35  ;;  %v1273_v60 = vmax.f32 %v1175_v21, 0.0 }
 0x238   :  { %v1177_v48 = vpop.f32.mrf.mxu1  ;;  %5980 = vmatmul.mubr.bf16.gmra.mxu0 %v7205_v37 }
 0x239   :  { %v1178_v55 = vadd.f32 %v7062_v29, %v1177_v48  ;;  %v1276_v19 = vmax.f32 %v1186_v46, 0.0 }
 0x23a   :  { %v5909_v20 = vpop.f32.mrf.mxu1 }
 0x23b   :  { %v1274_v18 = vmax.f32 %v1178_v55, 0.0  ;;  %v7215_v51 = vpack.c.bf16 %v1276_v19, %v1275_v10  ;;  %v1199_v2 = vadd.f32 %v5909_v20, %v7062_v29 }
 0x23c   :  { %v1190_v11 = vpop.f32.mrf.mxu1 }
 0x23d   :  { %v7213_v16 = vpack.c.bf16 %v1274_v18, %v1273_v60  ;;  %v1191_v23 = vadd.f32 %v7062_v29, %v1190_v11  ;;  %v1279_v46 = vmax.f32 %v1199_v2, 0.0 }
 0x23e   :  { %v5910_v4 = vpop.f32.mrf.mxu1 }
 0x23f   :  { %v1202_v50 = vadd.f32 %v5910_v4, %v7062_v29  ;;  %5983 = vmatprep.mubr.bf16.mxu0 %v7213_v16  ;;  %v1277_v45 = vmax.f32 %v1191_v23, 0.0 }
 0x240   :  { %v1193_v27 = vpop.f32.mrf.mxu1  ;;  %5984 = vmatmul.mubr.bf16.gmra.mxu0 %v7215_v51 }
 0x241   :  { %v1194_v38 = vadd.f32 %v7062_v29, %v1193_v27  ;;  %v1280_v28 = vmax.f32 %v1202_v50, 0.0 }
 0x242   :  { %v5913_v30 = vpop.f32.mrf.mxu1 }
 0x243   :  { %v1278_v21 = vmax.f32 %v1194_v38, 0.0  ;;  %v7225_v55 = vpack.c.bf16 %v1280_v28, %v1279_v46  ;;  %v1215_v18 = vadd.f32 %v5913_v30, %v7062_v29 }
 0x244   :  { %v1206_v47 = vpop.f32.mrf.mxu1 }
 0x245   :  { %v7223_v48 = vpack.c.bf16 %v1278_v21, %v1277_v45  ;;  %v1207_v60 = vadd.f32 %v7062_v29, %v1206_v47  ;;  %v1283_v2 = vmax.f32 %v1215_v18, 0.0  ;;  %v7240_v45 = vld [vmem:[%s6671_s13] ss:$0 sm:$0xff]  ;;  %s8844_s13 = sld [smem:[#allocation13_spill]] }
 0x246   :  { %v5914_v19 = vpop.f32.mrf.mxu1 }
 0x247   :  { %v1218_v20 = vadd.f32 %v5914_v19, %v7062_v29  ;;  %5987 = vmatprep.mubr.bf16.mxu0 %v7223_v48  ;;  %v1281_v23 = vmax.f32 %v1207_v60, 0.0 }
 0x248   :  { %v1209_v10 = vpop.f32.mrf.mxu1  ;;  %5988 = vmatmul.mubr.bf16.gmra.mxu0 %v7225_v55 }
 0x249   :  { %v1210_v11 = vadd.f32 %v7062_v29, %v1209_v10  ;;  %v1284_v4 = vmax.f32 %v1218_v20, 0.0 }
 0x24b   :  { %v1282_v50 = vmax.f32 %v1210_v11, 0.0  ;;  %v7235_v38 = vpack.c.bf16 %v1284_v4, %v1283_v2 }
 0x24d   :  { %v7233_v27 = vpack.c.bf16 %v1282_v50, %v1281_v23 }
 0x24f   :  { %5991 = vmatprep.mubr.bf16.mxu0 %v7233_v27 }
 0x250   :  { %5992 = vmatmul.mubr.bf16.gmra.mxu0 %v7235_v38 }
 0x298   :  { %v5933_v28 = vpop.f32.mrf.mxu0 }
 0x299   :  { %v7243_v21 = vadd.f32 %v5933_v28, %v7240_v45 }
 0x29a   :  { %v1422_v30 = vpop.f32.mrf.mxu0 }
 0x29b   :  { %8654 = vst [vmem:[#allocation19_spill] sm:$0xff] %v7243_v21  ;;  %v7246_v46 = vadd.f32 %v7240_v45, %v1422_v30  ;;  %v1679_v18 = vmax.f32 %v7243_v21, 0.0 }
 0x29c   :  { %v5934_v29 = vpop.f32.mrf.mxu0 }
 0x29d   :  { %8655 = vst [vmem:[#allocation20_spill] sm:$0xff] %v7246_v46  ;;  %v7249_v47 = vadd.f32 %v5934_v29, %v7240_v45  ;;  %v1677_v11 = vmax.f32 %v7246_v46, 0.0 }
 0x29e   :  { %v1425_v19 = vpop.f32.mrf.mxu0 }
 0x29f   :  { %8656 = vst [vmem:[#allocation21_spill] sm:$0xff] %v7249_v47  ;;  %v1680_v60 = vmax.f32 %v7249_v47, 0.0  ;;  %v7253_v20 = vadd.f32 %v7240_v45, %v1425_v19 }
 0x2a0   :  { %v5937_v10 = vpop.f32.mrf.mxu0 }
 0x2a1   :  { %8657 = vst [vmem:[#allocation22_spill] sm:$0xff] %v7253_v20  ;;  %v1678_v4 = vmax.f32 %v7253_v20, 0.0  ;;  %v1742_v23 = vpack.c.bf16 %v1680_v60, %v1679_v18  ;;  %v7259_v28 = vadd.f32 %v5937_v10, %v7240_v45 }
 0x2a2   :  { %v1438_v50 = vpop.f32.mrf.mxu0 }
 0x2a3   :  { %v1741_v2 = vpack.c.bf16 %v1678_v4, %v1677_v11  ;;  %v7262_v29 = vadd.f32 %v7240_v45, %v1438_v50  ;;  %v1774_v21 = vadd.bf16 %v1742_v23, %v7070_v52  ;;  %v1683_v18 = vmax.f32 %v7259_v28, 0.0 }
 0x2a4   :  { %v5938_v30 = vpop.f32.mrf.mxu0 }
 0x2a5   :  { %v7265_v19 = vadd.f32 %v5938_v30, %v7240_v45  ;;  %v1773_v47 = vadd.bf16 %v1741_v2, %v7068_v49  ;;  %v1681_v11 = vmax.f32 %v7262_v29, 0.0 }
 0x2a6   :  { %v1441_v46 = vpop.f32.mrf.mxu0 }
 0x2a7   :  { %v1684_v20 = vmax.f32 %v7265_v19, 0.0  ;;  %v7271_v60 = vadd.f32 %v7240_v45, %v1441_v46  ;;  %6011 = vmatprep.mubr.bf16.mxu1 %v1773_v47 }
 0x2a8   :  { %v5941_v10 = vpop.f32.mrf.mxu0  ;;  %6012 = vmatmul.mubr.bf16.vlgmr.msra.gmra.mxu1 %v1774_v21 }
 0x2a9   :  { %v1682_v4 = vmax.f32 %v7271_v60, 0.0  ;;  %5328 = vmatpush3.bf16.msra.mxu1 %v7020_v62  ;;  %v1744_v49 = vpack.c.bf16 %v1684_v20, %v1683_v18  ;;  %v7279_v50 = vadd.f32 %v5941_v10, %v7240_v45 }
 0x2aa   :  { %5329 = vmatprep.subr.bf16.mxu1 %v7058_v24  ;;  %v1454_v52 = vpop.f32.mrf.mxu0 }
 0x2ab   :  { %v1743_v23 = vpack.c.bf16 %v1682_v4, %v1681_v11  ;;  %v7282_v47 = vadd.f32 %v7240_v45, %v1454_v52  ;;  %v1776_v24 = vadd.bf16 %v1744_v49, %v7083_v14  ;;  %v1687_v18 = vmax.f32 %v7279_v50, 0.0 }
 0x2ac   :  { %v5942_v46 = vpop.f32.mrf.mxu0 }
 0x2ad   :  { %v7285_v21 = vadd.f32 %v5942_v46, %v7240_v45  ;;  %5330 = vmatpush3.bf16.msra.mxu1 %v7018_v61  ;;  %v1775_v2 = vadd.bf16 %v1743_v23, %v7081_v13  ;;  %v1685_v11 = vmax.f32 %v7282_v47, 0.0 }
 0x2ae   :  { %5331 = vmatprep.subr.bf16.mxu1 %v7051_v1  ;;  %v1457_v62 = vpop.f32.mrf.mxu0 }
 0x2af   :  { %v1688_v20 = vmax.f32 %v7285_v21, 0.0  ;;  %v7293_v30 = vadd.f32 %v7240_v45, %v1457_v62  ;;  %6015 = vmatprep.mubr.bf16.mxu1 %v1775_v2 }
 0x2b0   :  { %v5945_v10 = vpop.f32.mrf.mxu0  ;;  %6016 = vmatmul.mubr.bf16.gmra.mxu1 %v1776_v24 }
 0x2b1   :  { %v1686_v61 = vmax.f32 %v7293_v30, 0.0  ;;  %5332 = vmatpush3.bf16.msra.mxu1 %v7010_v44  ;;  %v1746_v1 = vpack.c.bf16 %v1688_v20, %v1687_v18  ;;  %v7301_v4 = vadd.f32 %v5945_v10, %v7240_v45 }
 0x2b2   :  { %5333 = vmatprep.subr.bf16.mxu1 %v7049_v0  ;;  %v1470_v13 = vpop.f32.mrf.mxu0 }
 0x2b3   :  { %v1745_v14 = vpack.c.bf16 %v1686_v61, %v1685_v11  ;;  %v7304_v52 = vadd.f32 %v7240_v45, %v1470_v13  ;;  %v1778_v0 = vadd.bf16 %v1746_v1, %v7097_v33  ;;  %v1691_v24 = vmax.f32 %v7301_v4, 0.0 }
 0x2b4   :  { %v5946_v49 = vpop.f32.mrf.mxu0 }
 0x2b5   :  { %v7307_v23 = vadd.f32 %v5946_v49, %v7240_v45  ;;  %5334 = vmatpush3.bf16.msra.mxu1 %v7008_v43  ;;  %v1777_v46 = vadd.bf16 %v1745_v14, %v7095_v53  ;;  %v1689_v18 = vmax.f32 %v7304_v52, 0.0 }
 0x2b6   :  { %5335 = vmatprep.subr.bf16.mxu1 %v7040_v42  ;;  %v1473_v44 = vpop.f32.mrf.mxu0 }
 0x2b7   :  { %v1692_v2 = vmax.f32 %v7307_v23, 0.0  ;;  %v7315_v62 = vadd.f32 %v7240_v45, %v1473_v44  ;;  %6019 = vmatprep.mubr.bf16.mxu1 %v1777_v46 }
 0x2b8   :  { %v5949_v20 = vpop.f32.mrf.mxu0  ;;  %6020 = vmatmul.mubr.bf16.gmra.mxu1 %v1778_v0 }
 0x2b9   :  { %v1690_v43 = vmax.f32 %v7315_v62, 0.0  ;;  %5336 = vmatpush3.bf16.msra.mxu1 %v7000_v26  ;;  %v1748_v42 = vpack.c.bf16 %v1692_v2, %v1691_v24  ;;  %v7323_v10 = vadd.f32 %v5949_v20, %v7240_v45 }
 0x2ba   :  { %5337 = vmatprep.subr.bf16.mxu1 %v7038_v41  ;;  %v1486_v53 = vpop.f32.mrf.mxu0 }
 0x2bb   :  { %v1747_v33 = vpack.c.bf16 %v1690_v43, %v1689_v18  ;;  %v7326_v61 = vadd.f32 %v7240_v45, %v1486_v53  ;;  %v1780_v41 = vadd.bf16 %v1748_v42, %v7111_v57  ;;  %v1695_v46 = vmax.f32 %v7323_v10, 0.0 }
 0x2bc   :  { %v5950_v11 = vpop.f32.mrf.mxu0 }
 0x2bd   :  { %8658 = vst [vmem:[#allocation23_spill] sm:$0xff] %v7326_v61  ;;  %v7329_v1 = vadd.f32 %v5950_v11, %v7240_v45  ;;  %5338 = vmatpush3.bf16.msra.mxu1 %v6998_v25  ;;  %v1779_v13 = vadd.bf16 %v1747_v33, %v7109_v56  ;;  %v1693_v0 = vmax.f32 %v7326_v61, 0.0 }
 0x2be   :  { %5339 = vmatprep.subr.bf16.mxu1 %v7030_v22  ;;  %v1489_v26 = vpop.f32.mrf.mxu0 }
 0x2bf   :  { %v1696_v14 = vmax.f32 %v7329_v1, 0.0  ;;  %v7337_v49 = vadd.f32 %v7240_v45, %v1489_v26  ;;  %6023 = vmatprep.mubr.bf16.mxu1 %v1779_v13 }
 0x2c0   :  { %v5953_v44 = vpop.f32.mrf.mxu0  ;;  %6024 = vmatmul.mubr.bf16.gmra.mxu1 %v1780_v41 }
 0x2c1   :  { %8659 = vst [vmem:[#allocation24_spill] sm:$0xff] %v7337_v49  ;;  %v1694_v25 = vmax.f32 %v7337_v49, 0.0  ;;  %5340 = vmatpush3.bf16.msra.mxu1 %v6990_v8  ;;  %v1750_v22 = vpack.c.bf16 %v1696_v14, %v1695_v46  ;;  %v7345_v2 = vadd.f32 %v5953_v44, %v7240_v45 }
 0x2c2   :  { %5341 = vmatprep.subr.bf16.mxu1 %v7028_v17  ;;  %v1502_v56 = vpop.f32.mrf.mxu0 }
 0x2c3   :  { %v1749_v57 = vpack.c.bf16 %v1694_v25, %v1693_v0  ;;  %v7348_v20 = vadd.f32 %v7240_v45, %v1502_v56  ;;  %v1782_v42 = vadd.bf16 %v1750_v22, %v7125_v15  ;;  %v1699_v33 = vmax.f32 %v7345_v2, 0.0 }
 0x2c4   :  { %v5954_v24 = vpop.f32.mrf.mxu0 }
 0x2c5   :  { %v7351_v18 = vadd.f32 %v5954_v24, %v7240_v45  ;;  %5342 = vmatpush3.bf16.msra.mxu1 %v6988_v7  ;;  %v1781_v43 = vadd.bf16 %v1749_v57, %v7123_v12  ;;  %v1697_v13 = vmax.f32 %v7348_v20, 0.0 }
 0x2c6   :  { %v1505_v8 = vpop.f32.mrf.mxu0 }
 0x2c7   :  { %v1700_v17 = vmax.f32 %v7351_v18, 0.0  ;;  %v7358_v53 = vadd.f32 %v7240_v45, %v1505_v8  ;;  %6027 = vmatprep.mubr.bf16.mxu1 %v1781_v43 }
 0x2c8   :  { %v5957_v11 = vpop.f32.mrf.mxu0  ;;  %6028 = vmatmul.mubr.bf16.gmra.mxu1 %v1782_v42 }
 0x2c9   :  { %v1698_v26 = vmax.f32 %v7358_v53, 0.0  ;;  %v1752_v7 = vpack.c.bf16 %v1700_v17, %v1699_v33  ;;  %v7364_v14 = vadd.f32 %v5957_v11, %v7240_v45 }
 0x2ca   :  { %v1518_v41 = vpop.f32.mrf.mxu0 }
 0x2cb   :  { %v1751_v12 = vpack.c.bf16 %v1698_v26, %v1697_v13  ;;  %v7367_v46 = vadd.f32 %v7240_v45, %v1518_v41  ;;  %v1784_v22 = vadd.bf16 %v1752_v7, %v7135_v32  ;;  %v1703_v24 = vmax.f32 %v7364_v14, 0.0 }
 0x2cc   :  { %v5958_v15 = vpop.f32.mrf.mxu0 }
 0x2cd   :  { %v7370_v44 = vadd.f32 %v5958_v15, %v7240_v45  ;;  %v1783_v0 = vadd.bf16 %v1751_v12, %v7133_v31  ;;  %v1701_v8 = vmax.f32 %v7367_v46, 0.0 }
 0x2ce   :  { %v1521_v25 = vpop.f32.mrf.mxu0 }
 0x2cf   :  { %v1704_v56 = vmax.f32 %v7370_v44, 0.0  ;;  %v7376_v57 = vadd.f32 %v7240_v45, %v1521_v25  ;;  %6031 = vmatprep.mubr.bf16.mxu1 %v1783_v0 }
 0x2d0   :  { %v5961_v43 = vpop.f32.mrf.mxu0  ;;  %6032 = vmatmul.mubr.bf16.gmra.mxu1 %v1784_v22 }
 0x2d1   :  { %v1702_v42 = vmax.f32 %v7376_v57, 0.0  ;;  %v1754_v17 = vpack.c.bf16 %v1704_v56, %v1703_v24  ;;  %v7382_v11 = vadd.f32 %v5961_v43, %v7240_v45 }
 0x2d2   :  { %v1534_v33 = vpop.f32.mrf.mxu0 }
 0x2d3   :  { %v1753_v31 = vpack.c.bf16 %v1702_v42, %v1701_v8  ;;  %v7385_v13 = vadd.f32 %v7240_v45, %v1534_v33  ;;  %v1786_v12 = vadd.bf16 %v1754_v17, %v7145_v59  ;;  %v1707_v25 = vmax.f32 %v7382_v11, 0.0 }
 0x2d4   :  { %v5962_v32 = vpop.f32.mrf.mxu0 }
 0x2d5   :  { %v7388_v26 = vadd.f32 %v5962_v32, %v7240_v45  ;;  %v1785_v7 = vadd.bf16 %v1753_v31, %v7143_v58  ;;  %v1705_v56 = vmax.f32 %v7385_v13, 0.0 }
 0x2d6   :  { %v1537_v41 = vpop.f32.mrf.mxu0 }
 0x2d7   :  { %v1708_v15 = vmax.f32 %v7388_v26, 0.0  ;;  %v7394_v0 = vadd.f32 %v7240_v45, %v1537_v41  ;;  %6035 = vmatprep.mubr.bf16.mxu1 %v1785_v7 }
 0x2d8   :  { %v5965_v22 = vpop.f32.mrf.mxu0  ;;  %6036 = vmatmul.mubr.bf16.gmra.mxu1 %v1786_v12 }
 0x2d9   :  { %v1706_v24 = vmax.f32 %v7394_v0, 0.0  ;;  %v1756_v43 = vpack.c.bf16 %v1708_v15, %v1707_v25  ;;  %v7400_v42 = vadd.f32 %v5965_v22, %v7240_v45 }
 0x2da   :  { %v1550_v8 = vpop.f32.mrf.mxu0 }
 0x2db   :  { %v1755_v58 = vpack.c.bf16 %v1706_v24, %v1705_v56  ;;  %v7403_v17 = vadd.f32 %v7240_v45, %v1550_v8  ;;  %v1788_v7 = vadd.bf16 %v1756_v43, %v7155_v3  ;;  %v1711_v15 = vmax.f32 %v7400_v42, 0.0 }
 0x2dc   :  { %v5966_v59 = vpop.f32.mrf.mxu0 }
 0x2dd   :  { %8660 = vst [vmem:[#allocation25_spill] sm:$0xff] %v7403_v17  ;;  %v7406_v33 = vadd.f32 %v5966_v59, %v7240_v45  ;;  %v1787_v31 = vadd.bf16 %v1755_v58, %v7153_v54  ;;  %v1709_v22 = vmax.f32 %v7403_v17, 0.0 }
 0x2de   :  { %v1553_v32 = vpop.f32.mrf.mxu0 }
 0x2df   :  { %v1712_v41 = vmax.f32 %v7406_v33, 0.0  ;;  %v7412_v12 = vadd.f32 %v7240_v45, %v1553_v32  ;;  %6039 = vmatprep.mubr.bf16.mxu1 %v1787_v31 }
 0x2e0   :  { %v5969_v25 = vpop.f32.mrf.mxu0  ;;  %6040 = vmatmul.mubr.bf16.gmra.mxu1 %v1788_v7 }
 0x2e1   :  { %8661 = vst [vmem:[#allocation26_spill] sm:$0xff] %v7412_v12  ;;  %v1710_v56 = vmax.f32 %v7412_v12, 0.0  ;;  %v1758_v24 = vpack.c.bf16 %v1712_v41, %v1711_v15  ;;  %v7418_v58 = vadd.f32 %v5969_v25, %v7240_v45 }
 0x2e2   :  { %v1566_v8 = vpop.f32.mrf.mxu0 }
 0x2e3   :  { %v1757_v54 = vpack.c.bf16 %v1710_v56, %v1709_v22  ;;  %v7421_v43 = vadd.f32 %v7240_v45, %v1566_v8  ;;  %v1790_v7 = vadd.bf16 %v1758_v24, %v7165_v34  ;;  %v1715_v15 = vmax.f32 %v7418_v58, 0.0 }
 0x2e4   :  { %v5970_v3 = vpop.f32.mrf.mxu0 }
 0x2e5   :  { %8662 = vst [vmem:[#allocation27_spill] sm:$0xff] %v7421_v43  ;;  %v7424_v59 = vadd.f32 %v5970_v3, %v7240_v45  ;;  %v1789_v31 = vadd.bf16 %v1757_v54, %v7163_v40  ;;  %v1713_v22 = vmax.f32 %v7421_v43, 0.0 }
 0x2e6   :  { %v1569_v32 = vpop.f32.mrf.mxu0 }
 0x2e7   :  { %v1716_v17 = vmax.f32 %v7424_v59, 0.0  ;;  %v7430_v41 = vadd.f32 %v7240_v45, %v1569_v32  ;;  %6043 = vmatprep.mubr.bf16.mxu1 %v1789_v31 }
 0x2e8   :  { %v5973_v25 = vpop.f32.mrf.mxu0  ;;  %6044 = vmatmul.mubr.bf16.gmra.mxu1 %v1790_v7 }
 0x2e9   :  { %8663 = vst [vmem:[#allocation28_spill] sm:$0xff] %v7430_v41  ;;  %v1714_v56 = vmax.f32 %v7430_v41, 0.0  ;;  %v1760_v8 = vpack.c.bf16 %v1716_v17, %v1715_v15  ;;  %v7436_v54 = vadd.f32 %v5973_v25, %v7240_v45 }
 0x2ea   :  { %v1582_v3 = vpop.f32.mrf.mxu0 }
 0x2eb   :  { %v1759_v40 = vpack.c.bf16 %v1714_v56, %v1713_v22  ;;  %8664 = vst [vmem:[#allocation29_spill] sm:$0xff] %v7436_v54  ;;  %v7439_v24 = vadd.f32 %v7240_v45, %v1582_v3  ;;  %v1792_v12 = vadd.bf16 %v1760_v8, %v7175_v9  ;;  %v1719_v15 = vmax.f32 %v7436_v54, 0.0 }
 0x2ec   :  { %v5974_v34 = vpop.f32.mrf.mxu0 }
 0x2ed   :  { %8665 = vst [vmem:[#allocation30_spill] sm:$0xff] %v7439_v24  ;;  %v7442_v31 = vadd.f32 %v5974_v34, %v7240_v45  ;;  %v1791_v32 = vadd.bf16 %v1759_v40, %v7173_v6  ;;  %v1717_v22 = vmax.f32 %v7439_v24, 0.0  ;;  %v7465_v24 = vld [vmem:[%s6786_s4 + $0x4] ss:$16 sps:$4 sm:$0xff]  }
 0x2ee   :  { %v1585_v7 = vpop.f32.mrf.mxu0  ;;  %2453 = vmatprep.mubr.bf16.mxu0 %v7465_v24 }
 0x2ef   :  { %8666 = vst [vmem:[#allocation31_spill] sm:$0xff] %v7442_v31  ;;  %v1720_v43 = vmax.f32 %v7442_v31, 0.0  ;;  %v7448_v17 = vadd.f32 %v7240_v45, %v1585_v7  ;;  %6047 = vmatprep.mubr.bf16.mxu1 %v1791_v32 }
 0x2f0   :  { %v5977_v25 = vpop.f32.mrf.mxu0  ;;  %6048 = vmatmul.mubr.bf16.gmra.mxu1 %v1792_v12 }
 0x2f1   :  { %8667 = vst [vmem:[#allocation32_spill] sm:$0xff] %v7448_v17  ;;  %v1718_v56 = vmax.f32 %v7448_v17, 0.0  ;;  %v1762_v6 = vpack.c.bf16 %v1720_v43, %v1719_v15  ;;  %v7454_v9 = vadd.f32 %v5977_v25, %v7240_v45  ;;  %v7472_v25 = vld [vmem:[%s6786_s4] ss:$16 sps:$4 sm:$0xff]  }
 0x2f2   :  { %v1598_v3 = vpop.f32.mrf.mxu0  ;;  %8672 = vst [vmem:[#allocation37_spill] sm:$0xff] %v7472_v25  ;;  %2454 = vmatmul.mubr.bf16.vlgmr.msra.gmra.mxu0 %v7472_v25 }
 0x2f3   :  { %v1761_v40 = vpack.c.bf16 %v1718_v56, %v1717_v22  ;;  %8668 = vst [vmem:[#allocation33_spill] sm:$0xff] %v7454_v9  ;;  %v7457_v34 = vadd.f32 %v7240_v45, %v1598_v3  ;;  %v1794_v41 = vadd.bf16 %v1762_v6, %v7185_v39  ;;  %v1723_v22 = vmax.f32 %v7454_v9, 0.0 }
 0x2f4   :  { %v5978_v8 = vpop.f32.mrf.mxu0 }
 0x2f5   :  { %8669 = vst [vmem:[#allocation34_spill] sm:$0xff] %v7457_v34  ;;  %v7460_v32 = vadd.f32 %v5978_v8, %v7240_v45  ;;  %v1793_v12 = vadd.bf16 %v1761_v40, %v7183_v36  ;;  %v1721_v36 = vmax.f32 %v7457_v34, 0.0  ;;  %v7491_v34 = vld [vmem:[%s6786_s4 + $0x24] ss:$16 sps:$4 sm:$0xff]  }
 0x2f6   :  { %v1601_v7 = vpop.f32.mrf.mxu0  ;;  %8676 = vst [vmem:[#allocation41_spill] sm:$0xff] %v7491_v34  ;;  %2461 = vmatprep.mubr.bf16.mxu0 %v7491_v34 }
 0x2f7   :  { %8670 = vst [vmem:[#allocation35_spill] sm:$0xff] %v7460_v32  ;;  %v1724_v43 = vmax.f32 %v7460_v32, 0.0  ;;  %v7469_v15 = vadd.f32 %v7240_v45, %v1601_v7  ;;  %6051 = vmatprep.mubr.bf16.mxu1 %v1793_v12 }
 0x2f8   :  { %v5981_v56 = vpop.f32.mrf.mxu0  ;;  %6052 = vmatmul.mubr.bf16.gmra.mxu1 %v1794_v41 }
 0x2f9   :  { %8671 = vst [vmem:[#allocation36_spill] sm:$0xff] %v7469_v15  ;;  %v1722_v39 = vmax.f32 %v7469_v15, 0.0  ;;  %v1764_v6 = vpack.c.bf16 %v1724_v43, %v1723_v22  ;;  %v7480_v8 = vadd.f32 %v5981_v56, %v7240_v45  ;;  %v7498_v56 = vld [vmem:[%s6786_s4 + $0x20] ss:$16 sps:$4 sm:$0xff]  }
 0x2fa   :  { %v1614_v3 = vpop.f32.mrf.mxu0  ;;  %8678 = vst [vmem:[#allocation43_spill] sm:$0xff] %v7498_v56  ;;  %2462 = vmatmul.mubr.bf16.gmra.mxu0 %v7498_v56 }
 0x2fb   :  { %v1763_v40 = vpack.c.bf16 %v1722_v39, %v1721_v36  ;;  %8673 = vst [vmem:[#allocation38_spill] sm:$0xff] %v7480_v8  ;;  %v7483_v7 = vadd.f32 %v7240_v45, %v1614_v3  ;;  %v1796_v31 = vadd.bf16 %v1764_v6, %v7195_v5  ;;  %v1727_v36 = vmax.f32 %v7480_v8, 0.0 }
 0x2fc   :  { %v5982_v12 = vpop.f32.mrf.mxu0 }
 0x2fd   :  { %8674 = vst [vmem:[#allocation39_spill] sm:$0xff] %v7483_v7  ;;  %v7486_v41 = vadd.f32 %v5982_v12, %v7240_v45  ;;  %v1795_v17 = vadd.bf16 %v1763_v40, %v7193_v63  ;;  %v1725_v63 = vmax.f32 %v7483_v7, 0.0 }
 0x2fe   :  { %v1617_v54 = vpop.f32.mrf.mxu0 }
 0x2ff   :  { %8675 = vst [vmem:[#allocation40_spill] sm:$0xff] %v7486_v41  ;;  %v1728_v43 = vmax.f32 %v7486_v41, 0.0  ;;  %v7495_v22 = vadd.f32 %v7240_v45, %v1617_v54  ;;  %6055 = vmatprep.mubr.bf16.mxu1 %v1795_v17 }
 0x300   :  { %v5985_v39 = vpop.f32.mrf.mxu0  ;;  %6056 = vmatmul.mubr.bf16.gmra.mxu1 %v1796_v31 }
 0x301   :  { %8677 = vst [vmem:[#allocation42_spill] sm:$0xff] %v7495_v22  ;;  %v1726_v5 = vmax.f32 %v7495_v22, 0.0  ;;  %v1766_v6 = vpack.c.bf16 %v1728_v43, %v1727_v36  ;;  %v7506_v54 = vadd.f32 %v5985_v39, %v7240_v45 }
 0x302   :  { %v1630_v3 = vpop.f32.mrf.mxu0 }
 0x303   :  { %v1765_v40 = vpack.c.bf16 %v1726_v5, %v1725_v63  ;;  %8679 = vst [vmem:[#allocation44_spill] sm:$0xff] %v7506_v54  ;;  %v7509_v12 = vadd.f32 %v7240_v45, %v1630_v3  ;;  %v1798_v7 = vadd.bf16 %v1766_v6, %v7205_v37  ;;  %v1731_v36 = vmax.f32 %v7506_v54, 0.0 }
 0x304   :  { %v5986_v17 = vpop.f32.mrf.mxu0 }
 0x305   :  { %8680 = vst [vmem:[#allocation45_spill] sm:$0xff] %v7509_v12  ;;  %v7512_v31 = vadd.f32 %v5986_v17, %v7240_v45  ;;  %v1797_v8 = vadd.bf16 %v1765_v40, %v7203_v35  ;;  %v1729_v63 = vmax.f32 %v7509_v12, 0.0 }
 0x306   :  { %v1633_v22 = vpop.f32.mrf.mxu0 }
 0x307   :  { %8681 = vst [vmem:[#allocation46_spill] sm:$0xff] %v7512_v31  ;;  %v1732_v41 = vmax.f32 %v7512_v31, 0.0  ;;  %v7518_v43 = vadd.f32 %v7240_v45, %v1633_v22  ;;  %6059 = vmatprep.mubr.bf16.mxu1 %v1797_v8  ;;  %v8711_v31 = vld [vmem:[#allocation19_spill] sm:$0xff] }
 0x308   :  { %v5989_v39 = vpop.f32.mrf.mxu0  ;;  %6060 = vmatmul.mubr.bf16.gmra.mxu1 %v1798_v7 }
 0x309   :  { %8682 = vst [vmem:[#allocation47_spill] sm:$0xff] %v7518_v43  ;;  %v1730_v5 = vmax.f32 %v7518_v43, 0.0  ;;  %v1768_v3 = vpack.c.bf16 %v1732_v41, %v1731_v36  ;;  %v7524_v37 = vadd.f32 %v5989_v39, %v7240_v45 }
 0x30a   :  { %v1646_v17 = vpop.f32.mrf.mxu0 }
 0x30b   :  { %v1767_v35 = vpack.c.bf16 %v1730_v5, %v1729_v63  ;;  %8683 = vst [vmem:[#allocation48_spill] sm:$0xff] %v7524_v37  ;;  %v7527_v40 = vadd.f32 %v7240_v45, %v1646_v17  ;;  %v1800_v7 = vadd.bf16 %v1768_v3, %v7215_v51  ;;  %v1735_v36 = vmax.f32 %v7524_v37, 0.0  ;;  %v8713_v37 = vld [vmem:[#allocation21_spill] sm:$0xff] }
 0x30c   :  { %v5990_v6 = vpop.f32.mrf.mxu0 }
 0x30d   :  { %8684 = vst [vmem:[#allocation49_spill] sm:$0xff] %v7527_v40  ;;  %v7530_v8 = vadd.f32 %v5990_v6, %v7240_v45  ;;  %v1799_v22 = vadd.bf16 %v1767_v35, %v7213_v16  ;;  %v1733_v63 = vmax.f32 %v7527_v40, 0.0 }
 0x30e   :  { %v1649_v12 = vpop.f32.mrf.mxu0 }
 0x30f   :  { %8685 = vst [vmem:[#allocation50_spill] sm:$0xff] %v7530_v8  ;;  %v1736_v43 = vmax.f32 %v7530_v8, 0.0  ;;  %v7536_v41 = vadd.f32 %v7240_v45, %v1649_v12  ;;  %6063 = vmatprep.mubr.bf16.mxu1 %v1799_v22  ;;  %v7659_v8 = vld [vmem:[%s6786_s4 + $0xc0] ss:$16 sps:$4 sm:$0xff]  }
 0x310   :  { %v5993_v39 = vpop.f32.mrf.mxu0  ;;  %6064 = vmatmul.mubr.bf16.gmra.mxu1 %v1800_v7  ;;  %8716 = vst [vmem:[#allocation77_spill] sm:$0xff] %v7659_v8 }
 0x311   :  { %8686 = vst [vmem:[#allocation51_spill] sm:$0xff] %v7536_v41  ;;  %v1734_v5 = vmax.f32 %v7536_v41, 0.0  ;;  %v1770_v17 = vpack.c.bf16 %v1736_v43, %v1735_v36  ;;  %v7542_v51 = vadd.f32 %v5993_v39, %v7240_v45 }
 0x312   :  { %v1662_v6 = vpop.f32.mrf.mxu0 }
 0x313   :  { %v1769_v16 = vpack.c.bf16 %v1734_v5, %v1733_v63  ;;  %8687 = vst [vmem:[#allocation52_spill] sm:$0xff] %v7542_v51  ;;  %v7545_v12 = vadd.f32 %v7240_v45, %v1662_v6  ;;  %v1802_v7 = vadd.bf16 %v1770_v17, %v7225_v55  ;;  %v1739_v39 = vmax.f32 %v7542_v51, 0.0  ;;  %v7561_v6 = vld [vmem:[%s6786_s4 + $0xc] ss:$16 sps:$4 sm:$0xff]  }
 0x314   :  { %v5994_v3 = vpop.f32.mrf.mxu0 }
 0x315   :  { %8688 = vst [vmem:[#allocation53_spill] sm:$0xff] %v7545_v12  ;;  %v7548_v35 = vadd.f32 %v5994_v3, %v7240_v45  ;;  %v1801_v22 = vadd.bf16 %v1769_v16, %v7223_v48  ;;  %v1737_v63 = vmax.f32 %v7545_v12, 0.0  ;;  %v7569_v16 = vld [vmem:[%s6786_s4 + $0x2c] ss:$16 sps:$4 sm:$0xff]   ;;  %v7685_v12 = vld [vmem:[%s6786_s4 + $0xe0] ss:$16 sps:$4 sm:$0xff]  }
 0x316   :  { %v1665_v54 = vpop.f32.mrf.mxu0  ;;  %8692 = vst [vmem:[#allocation57_spill] sm:$0xff] %v7569_v16  ;;  %v7581_v3 = vld [vmem:[%s6786_s4 + $0x4c] ss:$16 sps:$4 sm:$0xff]   ;;  %8721 = vst [vmem:[#allocation82_spill] sm:$0xff] %v7685_v12 }
 0x317   :  { %8689 = vst [vmem:[#allocation54_spill] sm:$0xff] %v7548_v35  ;;  %v1740_v43 = vmax.f32 %v7548_v35, 0.0  ;;  %v7554_v36 = vadd.f32 %v7240_v45, %v1665_v54  ;;  %6067 = vmatprep.mubr.bf16.mxu1 %v1801_v22  ;;  %v7566_v54 = vld [vmem:[%s6786_s4 + $0x8] ss:$16 sps:$4 sm:$0xff]   ;;  %8695 = vst [vmem:[#allocation60_spill] sm:$0xff] %v7581_v3 }
 0x318   :  { %6068 = vmatmul.mubr.bf16.gmra.mxu1 %v1802_v7  ;;  %8691 = vst [vmem:[#allocation56_spill] sm:$0xff] %v7566_v54  ;;  %v7584_v22 = vld [vmem:[%s6786_s4 + $0x40] ss:$16 sps:$4 sm:$0xff]   ;;  %v7587_v7 = vld [vmem:[%s6786_s4 + $0x48] ss:$16 sps:$4 sm:$0xff]  }
 0x319   :  { %8690 = vst [vmem:[#allocation55_spill] sm:$0xff] %v7554_v36  ;;  %v1738_v48 = vmax.f32 %v7554_v36, 0.0  ;;  %v1772_v55 = vpack.c.bf16 %v1740_v43, %v1739_v39  ;;  %8696 = vst [vmem:[#allocation61_spill] sm:$0xff] %v7584_v22  ;;  %v7594_v43 = vld [vmem:[%s6786_s4 + $0x64] ss:$16 sps:$4 sm:$0xff]  }
 0x31a   :  { %8697 = vst [vmem:[#allocation62_spill] sm:$0xff] %v7587_v7  ;;  %8698 = vst [vmem:[#allocation63_spill] sm:$0xff] %v7594_v43  ;;  %v7597_v39 = vld [vmem:[%s6786_s4 + $0x6c] ss:$16 sps:$4 sm:$0xff]  }
 0x31b   :  { %v1771_v5 = vpack.c.bf16 %v1738_v48, %v1737_v63  ;;  %v1804_v45 = vadd.bf16 %v1772_v55, %v7235_v38  ;;  %v7578_v38 = vld [vmem:[%s6786_s4 + $0x44] ss:$16 sps:$4 sm:$0xff]   ;;  %8699 = vst [vmem:[#allocation64_spill] sm:$0xff] %v7597_v39  ;;  %v7600_v63 = vld [vmem:[%s6786_s4 + $0x60] ss:$16 sps:$4 sm:$0xff]  }
 0x31c   :  { %8694 = vst [vmem:[#allocation59_spill] sm:$0xff] %v7578_v38  ;;  %2469 = vmatprep.mubr.bf16.mxu0 %v7578_v38  ;;  %8700 = vst [vmem:[#allocation65_spill] sm:$0xff] %v7600_v63  ;;  %v7603_v48 = vld [vmem:[%s6786_s4 + $0x68] ss:$16 sps:$4 sm:$0xff]   ;;  %v7610_v55 = vld [vmem:[%s6786_s4 + $0x84] ss:$16 sps:$4 sm:$0xff]  }
 0x31d   :  { %v1803_v17 = vadd.bf16 %v1771_v5, %v7233_v27  ;;  %v7574_v27 = vld [vmem:[%s6786_s4 + $0x28] ss:$16 sps:$4 sm:$0xff]   ;;  %2470 = vmatmul.mubr.bf16.gmra.mxu0 %v7584_v22  ;;  %8701 = vst [vmem:[#allocation66_spill] sm:$0xff] %v7603_v48  ;;  %8702 = vst [vmem:[#allocation67_spill] sm:$0xff] %v7610_v55  ;;  %v7613_v5 = vld [vmem:[%s6786_s4 + $0x8c] ss:$16 sps:$4 sm:$0xff]  }
 0x31e   :  { %8693 = vst [vmem:[#allocation58_spill] sm:$0xff] %v7574_v27  ;;  %2477 = vmatprep.mubr.bf16.mxu0 %v7594_v43  ;;  %8703 = vst [vmem:[#allocation68_spill] sm:$0xff] %v7613_v5 }
 0x31f   :  { %6071 = vmatprep.mubr.bf16.mxu1 %v1803_v17  ;;  %v7616_v17 = vld [vmem:[%s6786_s4 + $0x80] ss:$16 sps:$4 sm:$0xff]  }
 0x320   :  { %6072 = vmatmul.mubr.bf16.gmra.mxu1 %v1804_v45  ;;  %8704 = vst [vmem:[#allocation69_spill] sm:$0xff] %v7616_v17  ;;  %v7619_v45 = vld [vmem:[%s6786_s4 + $0x88] ss:$16 sps:$4 sm:$0xff]  }
 0x321   :  { %2550 = vmatprep.mubr.bf16.mxu1 %v7561_v6  ;;  %8705 = vst [vmem:[#allocation70_spill] sm:$0xff] %v7619_v45 }
 0x325   :  { %2478 = vmatmul.mubr.bf16.gmra.mxu0 %v7600_v63 }
 0x326   :  { %2485 = vmatprep.mubr.bf16.mxu0 %v7610_v55 }
 0x328   :  { %2551 = vmatmul.mubr.bf16.vlgmr.msra.gmra.mxu1 %v7566_v54 }
 0x329   :  { %2558 = vmatprep.mubr.bf16.mxu1 %v7569_v16  ;;  %v7638_v16 = vld [vmem:[%s6786_s4 + $0xa8] ss:$16 sps:$4 sm:$0xff]  }
 0x32a   :  { %8709 = vst [vmem:[#allocation74_spill] sm:$0xff] %v7638_v16 }
 0x32d   :  { %2486 = vmatmul.mubr.bf16.gmra.mxu0 %v7616_v17 }
 0x330   :  { %2559 = vmatmul.mubr.bf16.gmra.mxu1 %v7574_v27  ;;  %v7635_v27 = vld [vmem:[%s6786_s4 + $0xa0] ss:$16 sps:$4 sm:$0xff]  }
 0x331   :  { %2566 = vmatprep.mubr.bf16.mxu1 %v7581_v3  ;;  %8708 = vst [vmem:[#allocation73_spill] sm:$0xff] %v7635_v27 }
 0x338   :  { %2567 = vmatmul.mubr.bf16.gmra.mxu1 %v7587_v7  ;;  %v7629_v7 = vld [vmem:[%s6786_s4 + $0xa4] ss:$16 sps:$4 sm:$0xff]  }
 0x339   :  { %2574 = vmatprep.mubr.bf16.mxu1 %v7597_v39  ;;  %v7626_v39 = vld [vmem:[%s6681_s21] ss:$0 sm:$0xff]  ;;  %8706 = vst [vmem:[#allocation71_spill] sm:$0xff] %v7629_v7  ;;  %2493 = vmatprep.mubr.bf16.mxu0 %v7629_v7  ;;  %v7656_v7 = vld [vmem:[%s6786_s4 + $0xcc] ss:$16 sps:$4 sm:$0xff]   ;;  %s8847_s21 = sld [smem:[#allocation14_spill]] }
 0x33a   :  { %2494 = vmatmul.mubr.bf16.gmra.mxu0 %v7635_v27  ;;  %8715 = vst [vmem:[#allocation76_spill] sm:$0xff] %v7656_v7  ;;  %v7662_v27 = vld [vmem:[%s6786_s4 + $0xc8] ss:$16 sps:$4 sm:$0xff]  }
 0x33b   :  { %8717 = vst [vmem:[#allocation78_spill] sm:$0xff] %v7662_v27 }
 0x340   :  { %2575 = vmatmul.mubr.bf16.gmra.mxu1 %v7603_v48  ;;  %v7632_v48 = vld [vmem:[%s6786_s4 + $0xac] ss:$16 sps:$4 sm:$0xff]  }
 0x341   :  { %2582 = vmatprep.mubr.bf16.mxu1 %v7613_v5  ;;  %8707 = vst [vmem:[#allocation72_spill] sm:$0xff] %v7632_v48 }
 0x348   :  { %2583 = vmatmul.mubr.bf16.gmra.mxu1 %v7619_v45 }
 0x349   :  { %2590 = vmatprep.mubr.bf16.mxu1 %v7632_v48 }
 0x350   :  { %2591 = vmatmul.mubr.bf16.gmra.mxu1 %v7638_v16 }
 0x351   :  { %2598 = vmatprep.mubr.bf16.mxu1 %v7656_v7  ;;  %v7682_v7 = vld [vmem:[%s6786_s4 + $0xec] ss:$16 sps:$4 sm:$0xff]  }
 0x352   :  { %8720 = vst [vmem:[#allocation81_spill] sm:$0xff] %v7682_v7 }
 0x358   :  { %2599 = vmatmul.mubr.bf16.gmra.mxu1 %v7662_v27 }
 0x359   :  { %2606 = vmatprep.mubr.bf16.mxu1 %v7682_v7 }
 0x368   :  { %v6013_v3 = vpop.f32.mrf.mxu1 }
 0x369   :  { %v1919_v5 = vadd.f32 %v6013_v3, %v7626_v39  ;;  %v7653_v3 = vld [vmem:[%s6786_s4 + $0xc4] ss:$16 sps:$4 sm:$0xff]  }
 0x36a   :  { %v7643_v45 = vpop.f32.mrf.mxu1  ;;  %8714 = vst [vmem:[#allocation21_spill] sm:$0xff] %v7653_v3  ;;  %2501 = vmatprep.mubr.bf16.mxu0 %v7653_v3  ;;  %v7679_v3 = vld [vmem:[%s6786_s4 + $0xe4] ss:$16 sps:$4 sm:$0xff]  }
 0x36b   :  { %8710 = vst [vmem:[#allocation75_spill] sm:$0xff] %v7643_v45  ;;  %v2167_v40 = vadd.f32 %v1919_v5, %v8711_v31  ;;  %2502 = vmatmul.mubr.bf16.gmra.mxu0 %v7659_v8  ;;  %8719 = vst [vmem:[#allocation80_spill] sm:$0xff] %v7679_v3  ;;  %v7688_v8 = vld [vmem:[%s6786_s4 + $0xe8] ss:$16 sps:$4 sm:$0xff]  }
 0x36c   :  { %v6014_v54 = vpop.f32.mrf.mxu1  ;;  %8722 = vst [vmem:[#allocation83_spill] sm:$0xff] %v7688_v8  ;;  %2509 = vmatprep.mubr.bf16.mxu0 %v7679_v3  ;;  %2607 = vmatmul.mubr.bf16.gmra.mxu1 %v7688_v8 }
 0x36d   :  { %v1922_v17 = vadd.f32 %v6014_v54, %v7626_v39  ;;  %v2641_v16 = vmax.f32 %v2167_v40, 0.0  ;;  %2864 = vmatprep.mubr.bf16.mxu1 %v7561_v6 }
 0x36e   :  { %v7649_v41 = vpop.f32.mrf.mxu1 }
 0x36f   :  { %8712 = vst [vmem:[#allocation19_spill] sm:$0xff] %v7649_v41  ;;  %v2168_v36 = vadd.f32 %v1922_v17, %v8713_v37 }
 0x370   :  { %v6017_v48 = vpop.f32.mrf.mxu1 }
 0x371   :  { %v2642_v15 = vmax.f32 %v2168_v36, 0.0  ;;  %v1935_v31 = vadd.f32 %v6017_v48, %v7626_v39 }
 0x372   :  { %v7667_v37 = vpop.f32.mrf.mxu1 }
 0x373   :  { %v7671_v54 = vpack.c.bf16 %v2642_v15, %v2641_v16  ;;  %v2171_v40 = vadd.f32 %v1935_v31, %v7259_v28  ;;  %2510 = vmatmul.mubr.bf16.gmra.mxu0 %v7685_v12 }
 0x374   :  { %v6018_v5 = vpop.f32.mrf.mxu1  ;;  %2767 = vmatprep.mubr.bf16.mxu0 %v7465_v24 }
 0x375   :  { %8718 = vst [vmem:[#allocation79_spill] sm:$0xff] %v7671_v54  ;;  %v1938_v36 = vadd.f32 %v6018_v5, %v7626_v39  ;;  %v2645_v15 = vmax.f32 %v2171_v40, 0.0 }
 0x376   :  { %v7675_v17 = vpop.f32.mrf.mxu1 }
 0x377   :  { %v2172_v48 = vadd.f32 %v1938_v36, %v7265_v19 }
 0x378   :  { %v6021_v35 = vpop.f32.mrf.mxu1 }
 0x379   :  { %v2646_v16 = vmax.f32 %v2172_v48, 0.0  ;;  %v1951_v38 = vadd.f32 %v6021_v35, %v7626_v39 }
 0x37a   :  { %v7692_v28 = vpop.f32.mrf.mxu1 }
 0x37b   :  { %v7696_v19 = vpack.c.bf16 %v2646_v16, %v2645_v15  ;;  %v7726_v35 = vadd.f32 %v1951_v38, %v7279_v50 }
 0x37c   :  { %v6022_v31 = vpop.f32.mrf.mxu1 }
 0x37d   :  { %8723 = vst [vmem:[#allocation84_spill] sm:$0xff] %v7696_v19  ;;  %v1954_v25 = vadd.f32 %v6022_v31, %v7626_v39 }
 0x37e   :  { %v1945_v5 = vpop.f32.mrf.mxu1 }
 0x380   :  { %v6025_v40 = vpop.f32.mrf.mxu1 }
 0x381   :  { %v1967_v56 = vadd.f32 %v6025_v40, %v7626_v39 }
 0x382   :  { %v1958_v36 = vpop.f32.mrf.mxu1 }
 0x383   :  { %v2179_v40 = vadd.f32 %v1967_v56, %v7301_v4  ;;  %v1959_v31 = vadd.f32 %v7626_v39, %v1958_v36 }
 0x384   :  { %v6026_v48 = vpop.f32.mrf.mxu1 }
 0x385   :  { %v1970_v32 = vadd.f32 %v6026_v48, %v7626_v39 }
 0x386   :  { %v1961_v27 = vpop.f32.mrf.mxu1 }
 0x387   :  { %v2180_v61 = vadd.f32 %v1970_v32, %v7307_v23  ;;  %v1962_v19 = vadd.f32 %v7626_v39, %v1961_v27  ;;  %v7732_v23 = vadd.f32 %v1954_v25, %v7285_v21  ;;  %v2653_v25 = vmax.f32 %v2179_v40, 0.0 }
 0x388   :  { %v7700_v3 = vpop.f32.mrf.mxu1 }
 0x389   :  { %v2178_v50 = vadd.f32 %v1962_v19, %v7315_v62  ;;  %v2650_v40 = vmax.f32 %v7732_v23, 0.0 }
 0x38a   :  { %v7702_v7 = vpop.f32.mrf.mxu1 }
 0x38c   :  { %v7704_v55 = vpop.f32.mrf.mxu1 }
 0x38e   :  { %v7706_v12 = vpop.f32.mrf.mxu1 }
 0x390   :  { %v7708_v15 = vpop.f32.mrf.mxu1 }
 0x392   :  { %v7710_v16 = vpop.f32.mrf.mxu1 }
 0x394   :  { %v6034_v24 = vpop.f32.mrf.mxu1 }
 0x395   :  { %v2002_v19 = vadd.f32 %v6034_v24, %v7626_v39 }
 0x396   :  { %v7712_v6 = vpop.f32.mrf.mxu1 }
 0x397   :  { %v2188_v23 = vadd.f32 %v2002_v19, %v7351_v18 }
 0x398   :  { %v6037_v8 = vpop.f32.mrf.mxu1 }
 0x39a   :  { %v2006_v9 = vpop.f32.mrf.mxu1 }
 0x39b   :  { %v2007_v62 = vadd.f32 %v7626_v39, %v2006_v9 }
 0x39c   :  { %v6038_v63 = vpop.f32.mrf.mxu1 }
 0x39d   :  { %v2018_v45 = vadd.f32 %v6038_v63, %v7626_v39 }
 0x39e   :  { %v2009_v51 = vpop.f32.mrf.mxu1 }
 0x39f   :  { %v2192_v38 = vadd.f32 %v2018_v45, %v7370_v44  ;;  %v2010_v4 = vadd.f32 %v7626_v39, %v2009_v51 }
 0x3a0   :  { %v6041_v43 = vpop.f32.mrf.mxu1 }
 0x3a1   :  { %v2031_v22 = vadd.f32 %v6041_v43, %v7626_v39 }
 0x3a2   :  { %v2022_v34 = vpop.f32.mrf.mxu1 }
 0x3a3   :  { %v2023_v54 = vadd.f32 %v7626_v39, %v2022_v34  ;;  %v2195_v48 = vadd.f32 %v2031_v22, %v7382_v11  ;;  %v2015_v34 = vadd.f32 %v6037_v8, %v7626_v39 }
 0x3a4   :  { %v6042_v49 = vpop.f32.mrf.mxu1 }
 0x3a5   :  { %v2034_v43 = vadd.f32 %v6042_v49, %v7626_v39  ;;  %v2193_v32 = vadd.f32 %v2023_v54, %v7385_v13  ;;  %v2654_v49 = vmax.f32 %v2180_v61, 0.0  ;;  %v2669_v22 = vmax.f32 %v2195_v48, 0.0 }
 0x3a6   :  { %v2025_v41 = vpop.f32.mrf.mxu1  ;;  %v1946_v13 = vadd.f32 %v7626_v39, %v1945_v5  ;;  %v2191_v61 = vadd.f32 %v2015_v34, %v7364_v14  ;;  %v2190_v5 = vadd.f32 %v2010_v4, %v7376_v57  ;;  %v2666_v48 = vmax.f32 %v2192_v38, 0.0 }
 0x3a7   :  { %v2196_v27 = vadd.f32 %v2034_v43, %v7388_v26  ;;  %v2026_v11 = vadd.f32 %v7626_v39, %v2025_v41  ;;  %v2177_v26 = vadd.f32 %v1959_v31, %v7304_v52  ;;  %v2667_v44 = vmax.f32 %v2193_v32, 0.0 }
 0x3a8   :  { %v6045_v56 = vpop.f32.mrf.mxu1  ;;  %v7750_v54 = vpack.c.bf16 %v2654_v49, %v2653_v25  ;;  %v1943_v43 = vadd.f32 %v7626_v39, %v7692_v28  ;;  %v2174_v31 = vadd.f32 %v1946_v13, %v7293_v30  ;;  %v1999_v57 = vadd.f32 %v7708_v15, %v7626_v39 }
 0x3a9   :  { %v2670_v8 = vmax.f32 %v2196_v27, 0.0  ;;  %v2194_v63 = vadd.f32 %v2026_v11, %v7394_v0  ;;  %v2047_v21 = vadd.f32 %v6045_v56, %v7626_v39  ;;  %v2652_v0 = vmax.f32 %v2178_v50, 0.0 }
 0x3aa   :  { %v7745_v41 = vpop.f32.mrf.mxu1  ;;  %v2651_v24 = vmax.f32 %v2177_v26, 0.0  ;;  %v2189_v32 = vadd.f32 %v2007_v62, %v7367_v46  ;;  %v1994_v30 = vadd.f32 %v7626_v39, %v7712_v6  ;;  %v2664_v11 = vmax.f32 %v2190_v5, 0.0 }
 0x3ab   :  { %v2668_v51 = vmax.f32 %v2194_v63, 0.0  ;;  %v7748_v45 = vpack.c.bf16 %v2670_v8, %v2669_v22  ;;  %v2199_v52 = vadd.f32 %v2047_v21, %v7400_v42  ;;  %v2665_v42 = vmax.f32 %v2191_v61, 0.0 }
 0x3ac   :  { %v6046_v36 = vpop.f32.mrf.mxu1  ;;  %v7771_v28 = vpack.c.bf16 %v2652_v0, %v2651_v24  ;;  %v1930_v46 = vadd.f32 %v7626_v39, %v7675_v17  ;;  %v2173_v56 = vadd.f32 %v1943_v43, %v7282_v47  ;;  %v2187_v18 = vadd.f32 %v1999_v57, %v7345_v2 }
 0x3ad   :  { %v2050_v14 = vadd.f32 %v6046_v36, %v7626_v39  ;;  %5391 = vmatprep.subr.bf16.mxu0 %v7748_v45  ;;  %v7757_v9 = vpack.c.bf16 %v2668_v51, %v2667_v44  ;;  %v2673_v50 = vmax.f32 %v2199_v52, 0.0  ;;  %v7777_v4 = vpack.c.bf16 %v2666_v48, %v2665_v42  ;;  %v8732_v42 = vld [vmem:[#allocation24_spill] sm:$0xff] }
 0x3ae   :  { %v7763_v34 = vpop.f32.mrf.mxu1  ;;  %5392 = vmatpush3.bf16.msra.mxu0 %v7750_v54  ;;  %v1991_v6 = vadd.f32 %v7626_v39, %v7710_v16  ;;  %v2663_v8 = vmax.f32 %v2189_v32, 0.0  ;;  %v2648_v17 = vmax.f32 %v2174_v31, 0.0  ;;  %v1986_v47 = vadd.f32 %v7704_v55, %v7626_v39 }
 0x3af   :  { %v2200_v27 = vadd.f32 %v2050_v14, %v7406_v33  ;;  %5393 = vmatprep.subr.bf16.mxu0 %v7757_v9  ;;  %8724 = vst [vmem:[#allocation85_spill] sm:$0xff] %v7777_v4  ;;  %v2649_v33 = vmax.f32 %v7726_v35, 0.0  ;;  %v2662_v35 = vmax.f32 %v2188_v23, 0.0  ;;  %v2186_v25 = vadd.f32 %v1994_v30, %v7358_v53 }
 0x3b0   :  { %v6049_v49 = vpop.f32.mrf.mxu1  ;;  %v7799_v16 = vpack.c.bf16 %v2664_v11, %v2663_v8  ;;  %v1927_v61 = vadd.f32 %v7626_v39, %v7667_v37  ;;  %v2647_v62 = vmax.f32 %v2173_v56, 0.0  ;;  %v1983_v55 = vadd.f32 %v7700_v3, %v7626_v39  ;;  %v8735_v11 = vld [vmem:[#allocation84_spill] sm:$0xff] }
 0x3b1   :  { %v2674_v38 = vmax.f32 %v2200_v27, 0.0  ;;  %v2063_v15 = vadd.f32 %v6049_v49, %v7626_v39  ;;  %v7792_v21 = vpack.c.bf16 %v2650_v40, %v2649_v33  ;;  %v2661_v51 = vmax.f32 %v2187_v18, 0.0  ;;  %v8731_v40 = vld [vmem:[#allocation19_spill] sm:$0xff]  ;;  %v8740_v8 = vld [vmem:[#allocation20_spill] sm:$0xff] }
 0x3b2   :  { %v7783_v22 = vpop.f32.mrf.mxu1  ;;  %5394 = vmatpush3.bf16.msra.mxu0 %v7771_v28  ;;  %8727 = vst [vmem:[#allocation88_spill] sm:$0xff] %v7799_v16  ;;  %v2185_v53 = vadd.f32 %v1991_v6, %v7348_v20  ;;  %v2170_v0 = vadd.f32 %v1930_v46, %v7271_v60  ;;  %v7812_v19 = vpack.c.bf16 %v2648_v17, %v2647_v62  ;;  %v2660_v48 = vmax.f32 %v2186_v25, 0.0  ;;  %v8742_v62 = vld [vmem:[#allocation79_spill] sm:$0xff] }
 0x3b3   :  { %v7789_v63 = vpack.c.bf16 %v2674_v38, %v2673_v50  ;;  %5395 = vmatprep.subr.bf16.mxu0 %v7777_v4  ;;  %8726 = vst [vmem:[#allocation87_spill] sm:$0xff] %v7792_v21  ;;  %v2203_v2 = vadd.f32 %v2063_v15, %v7418_v58  ;;  %v2184_v37 = vadd.f32 %v1986_v47, %v7329_v1  ;;  %v8736_v50 = vld [vmem:[#allocation23_spill] sm:$0xff]  ;;  %v8737_v15 = vld [vmem:[#allocation22_spill] sm:$0xff]  ;;  %v8813_v4 = vld [vmem:[#allocation81_spill] sm:$0xff] }
 0x3b4   :  { %v6050_v13 = vpop.f32.mrf.mxu1  ;;  %8728 = vst [vmem:[#allocation89_spill] sm:$0xff] %v7812_v19  ;;  %v1978_v5 = vadd.f32 %v7626_v39, %v7706_v12  ;;  %v7819_v14 = vpack.c.bf16 %v2662_v35, %v2661_v51  ;;  %v2169_v20 = vadd.f32 %v1927_v61, %v7262_v29  ;;  %v2183_v60 = vadd.f32 %v1983_v55, %v7323_v10  ;;  %v8734_v10 = vld [vmem:[#allocation75_spill] sm:$0xff] }
 0x3b5   :  { %8725 = vst [vmem:[#allocation86_spill] sm:$0xff] %v7789_v63  ;;  %v2066_v26 = vadd.f32 %v6050_v13, %v7626_v39  ;;  %v2677_v3 = vmax.f32 %v2203_v2, 0.0  ;;  %v1975_v1 = vadd.f32 %v7626_v39, %v7702_v7  ;;  %v2659_v43 = vmax.f32 %v2185_v53, 0.0 }
 0x3b6   :  { %v7803_v44 = vpop.f32.mrf.mxu1  ;;  %5396 = vmatpush3.bf16.msra.mxu0 %v7792_v21  ;;  %8729 = vst [vmem:[#allocation90_spill] sm:$0xff] %v7819_v14  ;;  %v1914_v31 = vadd.f32 %v7626_v39, %v8731_v40  ;;  %v2644_v24 = vmax.f32 %v2170_v0, 0.0  ;;  %v2658_v29 = vmax.f32 %v2184_v37, 0.0  ;;  %v2182_v32 = vadd.f32 %v1978_v5, %v8732_v42  ;;  %v8744_v0 = vld [vmem:[#allocation37_spill] sm:$0xff]  ;;  %v8749_v42 = vld [vmem:[#allocation63_spill] sm:$0xff] }
 0x3b7   :  { %v2204_v58 = vadd.f32 %v2066_v26, %v7424_v59  ;;  %5397 = vmatprep.subr.bf16.mxu0 %v7799_v16  ;;  %v7836_v27 = vpack.c.bf16 %v2660_v48, %v2659_v43  ;;  %v1911_v23 = vadd.f32 %v7626_v39, %v8734_v10  ;;  %v2643_v7 = vmax.f32 %v2169_v20, 0.0  ;;  %v8745_v5 = vld [vmem:[#allocation41_spill] sm:$0xff]  ;;  %v8746_v20 = vld [vmem:[#allocation43_spill] sm:$0xff] }
 0x3b8   :  { %v7817_v36 = vpop.f32.mrf.mxu1  ;;  %v2657_v49 = vmax.f32 %v2183_v60, 0.0  ;;  %v2181_v38 = vadd.f32 %v1975_v1, %v8736_v50  ;;  %v2166_v46 = vadd.f32 %v1914_v31, %v8737_v15  ;;  %v2656_v18 = vmax.f32 %v2182_v32, 0.0  ;;  %v8747_v1 = vld [vmem:[#allocation59_spill] sm:$0xff] }
 0x3b9   :  { %v2678_v52 = vmax.f32 %v2204_v58, 0.0  ;;  %8733 = vst [vmem:[#allocation19_spill] sm:$0xff] %v7836_v27  ;;  %v7846_v33 = vpack.c.bf16 %v2644_v24, %v2643_v7  ;;  %v2165_v17 = vadd.f32 %v1911_v23, %v8740_v8  ;;  %v8748_v24 = vld [vmem:[#allocation61_spill] sm:$0xff] }
 0x3ba   :  { %v7822_v59 = vpop.f32.mrf.mxu1  ;;  %5398 = vmatpush3.bf16.msra.mxu0 %v7812_v19  ;;  %v7848_v6 = vpack.c.bf16 %v2658_v29, %v2657_v49  ;;  %v2655_v35 = vmax.f32 %v2181_v38, 0.0  ;;  %v2640_v13 = vmax.f32 %v2166_v46, 0.0  ;;  %v8750_v38 = vld [vmem:[#allocation35_spill] sm:$0xff] }
 0x3bb   :  { %v7828_v12 = vpack.c.bf16 %v2678_v52, %v2677_v3  ;;  %5399 = vmatprep.subr.bf16.mxu0 %v7819_v14  ;;  %8738 = vst [vmem:[#allocation24_spill] sm:$0xff] %v7846_v33  ;;  %v2639_v26 = vmax.f32 %v2165_v17, 0.0  ;;  %v8751_v17 = vld [vmem:[#allocation52_spill] sm:$0xff] }
 0x3bc   :  { %v7833_v57 = vpop.f32.mrf.mxu1  ;;  %8739 = vst [vmem:[#allocation75_spill] sm:$0xff] %v7848_v6  ;;  %v7853_v2 = vpack.c.bf16 %v2656_v18, %v2655_v35 }
 0x3bd   :  { %8730 = vst [vmem:[#allocation91_spill] sm:$0xff] %v7828_v12  ;;  %v7857_v55 = vpack.c.bf16 %v2640_v13, %v2639_v26  ;;  %v8753_v26 = vld [vmem:[#allocation33_spill] sm:$0xff] }
 0x3be   :  { %v7840_v30 = vpop.f32.mrf.mxu1  ;;  %5400 = vmatpush3.bf16.msra.mxu0 %v8735_v11  ;;  %8741 = vst [vmem:[#allocation23_spill] sm:$0xff] %v7853_v2 }
 0x3bf   :  { %5401 = vmatprep.subr.bf16.mxu0 %v7836_v27  ;;  %8743 = vst [vmem:[#allocation22_spill] sm:$0xff] %v7857_v55 }
 0x3c0   :  { %v6057_v56 = vpop.f32.mrf.mxu1 }
 0x3c1   :  { %v2095_v7 = vadd.f32 %v6057_v56, %v7626_v39 }
 0x3c2   :  { %v2086_v47 = vpop.f32.mrf.mxu1  ;;  %5402 = vmatpush3.bf16.msra.mxu0 %v7846_v33 }
 0x3c3   :  { %5403 = vmatprep.subr.bf16.mxu0 %v7848_v6  ;;  %v2087_v56 = vadd.f32 %v7626_v39, %v2086_v47  ;;  %v8810_v6 = vld [vmem:[#allocation74_spill] sm:$0xff] }
 0x3c4   :  { %v6058_v25 = vpop.f32.mrf.mxu1 }
 0x3c5   :  { %v2098_v32 = vadd.f32 %v6058_v25, %v7626_v39  ;;  %v8752_v25 = vld [vmem:[#allocation65_spill] sm:$0xff] }
 0x3c6   :  { %v2089_v61 = vpop.f32.mrf.mxu1  ;;  %5404 = vmatpush3.bf16.msra.mxu0 %v8742_v62 }
 0x3c7   :  { %5405 = vmatprep.subr.bf16.mxu0 %v7853_v2  ;;  %v2212_v15 = vadd.f32 %v2098_v32, %v8750_v38  ;;  %v2090_v46 = vadd.f32 %v7626_v39, %v2089_v61  ;;  %v8758_v38 = vld [vmem:[#allocation50_spill] sm:$0xff] }
 0x3c8   :  { %v7859_v51 = vpop.f32.mrf.mxu1 }
 0x3ca   :  { %v7861_v53 = vpop.f32.mrf.mxu1  ;;  %5406 = vmatpush3.bf16.msra.mxu0 %v7857_v55  ;;  %v8808_v55 = vld [vmem:[#allocation70_spill] sm:$0xff] }
 0x3cc   :  { %v7864_v58 = vpop.f32.mrf.mxu1 }
 0x3cd   :  { %2768 = vmatmul.mubr.bf16.vlgmr.msra.gmra.mxu0 %v8744_v0  ;;  %v2211_v0 = vadd.f32 %v2095_v7, %v8753_v26 }
 0x3ce   :  { %v7867_v37 = vpop.f32.mrf.mxu1  ;;  %2775 = vmatprep.mubr.bf16.mxu0 %v8745_v5 }
 0x3d0   :  { %v7870_v48 = vpop.f32.mrf.mxu1 }
 0x3d2   :  { %v7872_v3 = vpop.f32.mrf.mxu1 }
 0x3d4   :  { %v6066_v52 = vpop.f32.mrf.mxu1 }
 0x3d5   :  { %2776 = vmatmul.mubr.bf16.gmra.mxu0 %v8746_v20 }
 0x3d6   :  { %v7875_v60 = vpop.f32.mrf.mxu1  ;;  %2783 = vmatprep.mubr.bf16.mxu0 %v8747_v1  ;;  %v8754_v1 = vld [vmem:[#allocation67_spill] sm:$0xff] }
 0x3d8   :  { %v6069_v43 = vpop.f32.mrf.mxu1 }
 0x3d9   :  { %v2143_v5 = vadd.f32 %v6069_v43, %v7626_v39 }
 0x3da   :  { %v2134_v40 = vpop.f32.mrf.mxu1 }
 0x3dc   :  { %v6070_v31 = vpop.f32.mrf.mxu1 }
 0x3dd   :  { %2784 = vmatmul.mubr.bf16.gmra.mxu0 %v8748_v24  ;;  %v2146_v18 = vadd.f32 %v6070_v31, %v7626_v39  ;;  %v8755_v24 = vld [vmem:[#allocation53_spill] sm:$0xff] }
 0x3de   :  { %v2137_v29 = vpop.f32.mrf.mxu1  ;;  %2791 = vmatprep.mubr.bf16.mxu0 %v8749_v42  ;;  %v8756_v42 = vld [vmem:[#allocation54_spill] sm:$0xff] }
 0x3df   :  { %v2224_v47 = vadd.f32 %v2146_v18, %v8758_v38  ;;  %v2138_v43 = vadd.f32 %v7626_v39, %v2137_v29  ;;  %v6507_v29 = vld [vmem:[%s6726_s6 + $0x38] sm:$0xff]  }
 0x3e0   :  { %v6073_v10 = vpop.f32.mrf.mxu1  ;;  %6075 = vmatprep.subr.bf16.mxu0 %v6507_v29 }
 0x3e1   :  { %v2159_v23 = vadd.f32 %v6073_v10, %v7626_v39  ;;  %v2082_v10 = vadd.f32 %v7833_v57, %v7626_v39  ;;  %6076 = vmatpush3.bf16.msra.mxu0 %v6507_v29  ;;  %v2119_v29 = vadd.f32 %v7626_v39, %v7872_v3 }
 0x3e2   :  { %v2150_v49 = vpop.f32.mrf.mxu1 }
 0x3e3   :  { %v2151_v50 = vadd.f32 %v7626_v39, %v2150_v49  ;;  %v2227_v35 = vadd.f32 %v2159_v23, %v8751_v17  ;;  %v2686_v23 = vmax.f32 %v2212_v15, 0.0  ;;  %v8757_v49 = vld [vmem:[#allocation36_spill] sm:$0xff]  ;;  %v2135_v15 = vadd.f32 %v7626_v39, %v2134_v40 }
 0x3e4   :  { %v6074_v8 = vpop.f32.mrf.mxu1  ;;  %v2210_v7 = vadd.f32 %v2090_v46, %v8757_v49 }
 0x3e5   :  { %v2162_v13 = vadd.f32 %v6074_v8, %v7626_v39  ;;  %2792 = vmatmul.mubr.bf16.gmra.mxu0 %v8752_v25  ;;  %v2225_v61 = vadd.f32 %v2151_v50, %v8755_v24  ;;  %v2701_v8 = vmax.f32 %v2227_v35, 0.0  ;;  %v8759_v25 = vld [vmem:[#allocation55_spill] sm:$0xff]  ;;  %v2079_v50 = vadd.f32 %v7817_v36, %v7626_v39  ;;  %v8761_v24 = vld [vmem:[#allocation48_spill] sm:$0xff] }
 0x3e6   :  { %v2153_v20 = vpop.f32.mrf.mxu1  ;;  %2799 = vmatprep.mubr.bf16.mxu0 %v8754_v1  ;;  %v2223_v57 = vadd.f32 %v2143_v5, %v8761_v24  ;;  %v8762_v35 = vld [vmem:[#allocation31_spill] sm:$0xff]  ;;  %v2684_v36 = vmax.f32 %v2210_v7, 0.0  ;;  %v2122_v24 = vadd.f32 %v7626_v39, %v7875_v60  ;;  %v2058_v60 = vadd.f32 %v7626_v39, %v7803_v44 }
 0x3e7   :  { %v2228_v31 = vadd.f32 %v2162_v13, %v8756_v42  ;;  %v2154_v32 = vadd.f32 %v7626_v39, %v2153_v20  ;;  %v2685_v13 = vmax.f32 %v2211_v0, 0.0  ;;  %v8760_v20 = vld [vmem:[#allocation34_spill] sm:$0xff]  ;;  %v2699_v46 = vmax.f32 %v2225_v61, 0.0  ;;  %v8764_v5 = vld [vmem:[#allocation51_spill] sm:$0xff]  ;;  %v8766_v61 = vld [vmem:[#allocation69_spill] sm:$0xff] }
 0x3e8   :  { %v2209_v1 = vadd.f32 %v2087_v56, %v8760_v20  ;;  %v2130_v0 = vadd.f32 %v6066_v52, %v7626_v39  ;;  %v2698_v56 = vmax.f32 %v2224_v47, 0.0  ;;  %v2222_v38 = vadd.f32 %v2138_v43, %v8764_v5  ;;  %v8768_v7 = vld [vmem:[#allocation71_spill] sm:$0xff]  ;;  %v8769_v43 = vld [vmem:[#allocation49_spill] sm:$0xff]  ;;  %v7951_v5 = vpop.f32.mrf.mxu0 }
 0x3e9   :  { %v2702_v17 = vmax.f32 %v2228_v31, 0.0  ;;  %v2226_v26 = vadd.f32 %v2154_v32, %v8759_v25  ;;  %v2208_v31 = vadd.f32 %v2082_v10, %v8762_v35  ;;  %v2074_v32 = vadd.f32 %v7626_v39, %v7840_v30 }
 0x3ea   :  { %v7914_v49 = vpack.c.bf16 %v2686_v23, %v2685_v13  ;;  %v2071_v30 = vadd.f32 %v7626_v39, %v7822_v59  ;;  %v2683_v23 = vmax.f32 %v2209_v1, 0.0  ;;  %v2127_v52 = vadd.f32 %v7870_v48, %v7626_v39  ;;  %v8772_v59 = vld [vmem:[#allocation46_spill] sm:$0xff]  ;;  %v6509_v48 = vld [vmem:[%s6726_s6 + $0x28] sm:$0xff]  }
 0x3eb   :  { %v2700_v42 = vmax.f32 %v2226_v26, 0.0  ;;  %v7908_v18 = vpack.c.bf16 %v2702_v17, %v2701_v8  ;;  %v6508_v8 = vld [vmem:[%s6726_s6 + $0x30] sm:$0xff]   ;;  %v2697_v47 = vmax.f32 %v2223_v57, 0.0  ;;  %v2221_v25 = vadd.f32 %v2135_v15, %v8769_v43  ;;  %v8774_v15 = vld [vmem:[#allocation30_spill] sm:$0xff] }
 0x3ec   :  { %8763 = vst [vmem:[#allocation20_spill] sm:$0xff] %v7914_v49  ;;  %v8767_v17 = vld [vmem:[#allocation29_spill] sm:$0xff]  ;;  %v2682_v26 = vmax.f32 %v2208_v31, 0.0  ;;  %v7933_v20 = vpack.c.bf16 %v2684_v36, %v2683_v23  ;;  %v2220_v1 = vadd.f32 %v2130_v0, %v8772_v59  ;;  %6077 = vmatprep.subr.bf16.mxu0 %v6508_v8  ;;  %v2205_v35 = vadd.f32 %v2071_v30, %v8774_v15  ;;  %v8775_v31 = vld [vmem:[#allocation44_spill] sm:$0xff] }
 0x3ed   :  { %5455 = vmatprep.subr.bf16.mxu1 %v7908_v18  ;;  %v7919_v40 = vpack.c.bf16 %v2700_v42, %v2699_v46  ;;  %2800 = vmatmul.mubr.bf16.gmra.mxu0 %v8766_v61  ;;  %v2207_v10 = vadd.f32 %v2079_v50, %v8767_v17  ;;  %v8770_v50 = vld [vmem:[#allocation32_spill] sm:$0xff]  ;;  %v2696_v46 = vmax.f32 %v2222_v38, 0.0  ;;  %v7938_v42 = vpack.c.bf16 %v2698_v56, %v2697_v47  ;;  %v7953_v38 = vpop.f32.mrf.mxu1  ;;  %v8779_v23 = vld [vmem:[#allocation73_spill] sm:$0xff] }
 0x3ee   :  { %5456 = vmatpush3.bf16.msra.mxu1 %v7914_v49  ;;  %2807 = vmatprep.mubr.bf16.mxu0 %v8768_v7  ;;  %v2206_v13 = vadd.f32 %v2074_v32, %v8770_v50  ;;  %8771 = vst [vmem:[#allocation41_spill] sm:$0xff] %v7933_v20  ;;  %v2219_v32 = vadd.f32 %v2127_v52, %v8775_v31  ;;  %v2695_v36 = vmax.f32 %v2221_v25, 0.0  ;;  %v2694_v17 = vmax.f32 %v2220_v1, 0.0  ;;  %v8780_v52 = vld [vmem:[#allocation21_spill] sm:$0xff]  ;;  %v8782_v25 = vld [vmem:[#allocation28_spill] sm:$0xff] }
 0x3ef   :  { %8765 = vst [vmem:[#allocation37_spill] sm:$0xff] %v7919_v40  ;;  %5457 = vmatprep.subr.bf16.mxu1 %v7919_v40  ;;  %8773 = vst [vmem:[#allocation43_spill] sm:$0xff] %v7938_v42  ;;  %v2681_v57 = vmax.f32 %v2207_v10, 0.0  ;;  %6078 = vmatpush3.bf16.msra.mxu0 %v6508_v8  ;;  %v2114_v61 = vadd.f32 %v7864_v58, %v7626_v39  ;;  %v8777_v10 = vld [vmem:[#allocation47_spill] sm:$0xff]  ;;  %v2055_v44 = vadd.f32 %v7626_v39, %v7783_v22  ;;  %v8781_v47 = vld [vmem:[#allocation45_spill] sm:$0xff]  ;;  %v7974_v22 = vpop.f32.mrf.mxu1 }
 0x3f0   :  { %v2680_v56 = vmax.f32 %v2206_v13, 0.0  ;;  %v2218_v3 = vadd.f32 %v2122_v24, %v8777_v10  ;;  %v7958_v30 = vpack.c.bf16 %v2696_v46, %v2695_v36  ;;  %6079 = vmatprep.subr.bf16.mxu0 %v6509_v48  ;;  %v2679_v7 = vmax.f32 %v2205_v35, 0.0  ;;  %v7972_v13 = vpop.f32.mrf.mxu0  ;;  %v8784_v59 = vld [vmem:[#allocation40_spill] sm:$0xff]  ;;  %v8787_v35 = vld [vmem:[#allocation38_spill] sm:$0xff] }
 0x3f1   :  { %v7949_v0 = vpack.c.bf16 %v2682_v26, %v2681_v57  ;;  %v2111_v8 = vadd.f32 %v7859_v51, %v7626_v39  ;;  %v2693_v58 = vmax.f32 %v2219_v32, 0.0  ;;  %v2217_v43 = vadd.f32 %v2119_v29, %v8781_v47  ;;  %v8786_v57 = vld [vmem:[#allocation27_spill] sm:$0xff] }
 0x3f2   :  { %5458 = vmatpush3.bf16.msra.mxu1 %v7933_v20  ;;  %8778 = vst [vmem:[#allocation61_spill] sm:$0xff] %v7958_v30  ;;  %v2202_v26 = vadd.f32 %v2058_v60, %v8782_v25  ;;  %v7970_v50 = vpack.c.bf16 %v2680_v56, %v2679_v7  ;;  %v2216_v1 = vadd.f32 %v2114_v61, %v8784_v59  ;;  %v2692_v51 = vmax.f32 %v2218_v3, 0.0  ;;  %v7991_v60 = vpop.f32.mrf.mxu1  ;;  %v8788_v61 = vld [vmem:[#allocation42_spill] sm:$0xff]  ;;  %v8790_v3 = vld [vmem:[#allocation77_spill] sm:$0xff]  ;;  %v8792_v7 = vld [vmem:[#allocation39_spill] sm:$0xff] }
 0x3f3   :  { %5459 = vmatprep.subr.bf16.mxu1 %v7938_v42  ;;  %8776 = vst [vmem:[#allocation59_spill] sm:$0xff] %v7949_v0  ;;  %6080 = vmatpush3.bf16.msra.mxu0 %v6509_v48  ;;  %v2106_v24 = vadd.f32 %v7626_v39, %v7867_v37  ;;  %v7979_v46 = vpack.c.bf16 %v2694_v17, %v2693_v58  ;;  %v2691_v29 = vmax.f32 %v2217_v43, 0.0  ;;  %v7989_v37 = vpop.f32.mrf.mxu0  ;;  %v8092_v42 = vld [vmem:[%s6716_s24 + $0x38] sm:$0xff]  }
 0x3f4   :  { %8783 = vst [vmem:[#allocation63_spill] sm:$0xff] %v7970_v50  ;;  %v2201_v15 = vadd.f32 %v2055_v44, %v8786_v57  ;;  %v2215_v31 = vadd.f32 %v2111_v8, %v8787_v35  ;;  %v2103_v32 = vadd.f32 %v7626_v39, %v7861_v53  ;;  %v2042_v48 = vadd.f32 %v7626_v39, %v7763_v34  ;;  %v8791_v44 = vld [vmem:[#allocation80_spill] sm:$0xff]  ;;  %v8793_v8 = vld [vmem:[#allocation26_spill] sm:$0xff]  ;;  %v8008_v25 = vpop.f32.mrf.mxu1 }
 0x3f5   :  { %2808 = vmatmul.mubr.bf16.gmra.mxu0 %v8779_v23  ;;  %8785 = vst [vmem:[#allocation35_spill] sm:$0xff] %v7979_v46  ;;  %v2676_v36 = vmax.f32 %v2202_v26, 0.0  ;;  %v2690_v56 = vmax.f32 %v2216_v1, 0.0  ;;  %v2214_v17 = vadd.f32 %v2106_v24, %v8788_v61  ;;  %v7994_v10 = vpack.c.bf16 %v2692_v51, %v2691_v29  ;;  %v8006_v43 = vpop.f32.mrf.mxu0  ;;  %v8796_v26 = vld [vmem:[#allocation25_spill] sm:$0xff]  ;;  %v8798_v35 = vld [vmem:[#allocation82_spill] sm:$0xff] }
 0x3f6   :  { %5460 = vmatpush3.bf16.msra.mxu1 %v7949_v0  ;;  %2815 = vmatprep.mubr.bf16.mxu0 %v8780_v52  ;;  %v2039_v53 = vadd.f32 %v7626_v39, %v7745_v41  ;;  %v2675_v23 = vmax.f32 %v2201_v15, 0.0  ;;  %v2689_v34 = vmax.f32 %v2215_v31, 0.0  ;;  %v2213_v52 = vadd.f32 %v2103_v32, %v8792_v7  ;;  %v8017_v57 = vpop.f32.mrf.mxu1  ;;  %v6491_v32 = vld [vmem:[%s6721_s30 + $0x38] sm:$0xff]  }
 0x3f7   :  { %5461 = vmatprep.subr.bf16.mxu1 %v7958_v30  ;;  %8789 = vst [vmem:[#allocation52_spill] sm:$0xff] %v7994_v10  ;;  %v2198_v58 = vadd.f32 %v2042_v48, %v8793_v8  ;;  %v2688_v39 = vmax.f32 %v2214_v17, 0.0  ;;  %v8015_v51 = vpop.f32.mrf.mxu0  ;;  %v6494_v8 = vld [vmem:[%s6721_s30 + $0x20] sm:$0xff]   ;;  %v5281_v11 = vadd.f32 %v7972_v13, %v7951_v5  ;;  %v5348_v14 = vadd.f32 %v8008_v25, %v7991_v60 }
 0x3f8   :  { %v8004_v47 = vpack.c.bf16 %v2676_v36, %v2675_v23  ;;  %v8010_v41 = vpack.c.bf16 %v2690_v56, %v2689_v34  ;;  %v2197_v59 = vadd.f32 %v2039_v53, %v8796_v26  ;;  %v2687_v1 = vmax.f32 %v2213_v52, 0.0  ;;  %v8029_v36 = vpop.f32.mrf.mxu1  ;;  %v6492_v56 = vld [vmem:[%s6721_s30 + $0x30] sm:$0xff]   ;;  %v6493_v23 = vld [vmem:[%s6721_s30 + $0x28] sm:$0xff]   ;;  %v8802_v26 = vld [vmem:[#allocation58_spill] sm:$0xff] }
 0x3f9   :  { %v2672_v24 = vmax.f32 %v2198_v58, 0.0  ;;  %v8027_v48 = vpop.f32.mrf.mxu0  ;;  %v8801_v53 = vld [vmem:[#allocation57_spill] sm:$0xff] }
 0x3fa   :  { %5462 = vmatpush3.bf16.msra.mxu1 %v7970_v50  ;;  %8794 = vst [vmem:[#allocation65_spill] sm:$0xff] %v8004_v47  ;;  %8795 = vst [vmem:[#allocation33_spill] sm:$0xff] %v8010_v41  ;;  %v8019_v15 = vpack.c.bf16 %v2688_v39, %v2687_v1  ;;  %v2671_v31 = vmax.f32 %v2197_v59, 0.0  ;;  %v8035_v17 = vpop.f32.mrf.mxu1  ;;  %v8803_v59 = vld [vmem:[#allocation60_spill] sm:$0xff] }
 0x3fb   :  { %5463 = vmatprep.subr.bf16.mxu1 %v7979_v46  ;;  %v8033_v61 = vpop.f32.mrf.mxu0  ;;  %v8806_v46 = vld [vmem:[#allocation66_spill] sm:$0xff]  ;;  %v8807_v50 = vld [vmem:[#allocation68_spill] sm:$0xff] }
 0x3fc   :  { %8797 = vst [vmem:[#allocation67_spill] sm:$0xff] %v8019_v15  ;;  %v8025_v29 = vpack.c.bf16 %v2672_v24, %v2671_v31  ;;  %v8042_v34 = vpop.f32.mrf.mxu1 }
 0x3fd   :  { %2816 = vmatmul.mubr.bf16.gmra.mxu0 %v8790_v3  ;;  %v8800_v3 = vld [vmem:[#allocation56_spill] sm:$0xff]  ;;  %v5354_v60 = vadd.f32 %v8042_v34, %v8035_v17 }
 0x3fe   :  { %5464 = vmatpush3.bf16.msra.mxu1 %v7828_v12  ;;  %2823 = vmatprep.mubr.bf16.mxu0 %v8791_v44  ;;  %8799 = vst [vmem:[#allocation53_spill] sm:$0xff] %v8025_v29  ;;  %v8040_v44 = vpop.f32.mrf.mxu0  ;;  %v8046_v52 = vpop.f32.mrf.mxu1 }
 0x3ff   :  { %5465 = vmatprep.subr.bf16.mxu1 %v7994_v10 }
 0x400   :  { %v8044_v7 = vpop.f32.mrf.mxu0  ;;  %v8051_v39 = vpop.f32.mrf.mxu1 }
 0x402   :  { %5466 = vmatpush3.bf16.msra.mxu1 %v8004_v47  ;;  %v8049_v58 = vpop.f32.mrf.mxu0  ;;  %v8057_v24 = vpop.f32.mrf.mxu1 }
 0x403   :  { %5467 = vmatprep.subr.bf16.mxu1 %v8010_v41 }
 0x404   :  { %v8055_v1 = vpop.f32.mrf.mxu0 }
 0x405   :  { %2824 = vmatmul.mubr.bf16.gmra.mxu0 %v8798_v35  ;;  %v6495_v35 = vld [vmem:[%s6721_s30 + $0x18] sm:$0xff]  }
 0x406   :  { %5468 = vmatpush3.bf16.msra.mxu1 %v7789_v63  ;;  %v8060_v31 = vpop.f32.mrf.mxu0 }
 0x407   :  { %5469 = vmatprep.subr.bf16.mxu1 %v8019_v15 }
 0x40a   :  { %5470 = vmatpush3.bf16.msra.mxu1 %v8025_v29  ;;  %v8805_v29 = vld [vmem:[#allocation64_spill] sm:$0xff] }
 0x40b   :  { %6107 = vmatprep.subr.bf16.mxu1 %v6491_v32 }
 0x40d   :  { %2865 = vmatmul.mubr.bf16.vlgmr.msra.gmra.mxu1 %v8800_v3 }
 0x40e   :  { %2872 = vmatprep.mubr.bf16.mxu1 %v8801_v53  ;;  %6108 = vmatpush3.bf16.msra.mxu1 %v6491_v32  ;;  %v8062_v32 = vpop.f32.mrf.mxu1  ;;  %v6496_v53 = vld [vmem:[%s6721_s30 + $0x10] sm:$0xff]  }
 0x40f   :  { %6109 = vmatprep.subr.bf16.mxu1 %v6492_v56 }
 0x410   :  { %v8066_v3 = vpop.f32.mrf.mxu1 }
 0x412   :  { %6110 = vmatpush3.bf16.msra.mxu1 %v6492_v56  ;;  %v8064_v56 = vpop.f32.mrf.mxu0 }
 0x413   :  { %6111 = vmatprep.subr.bf16.mxu1 %v6493_v23 }
 0x415   :  { %2873 = vmatmul.mubr.bf16.gmra.mxu1 %v8802_v26  ;;  %v8071_v26 = vpop.f32.mrf.mxu1 }
 0x416   :  { %2880 = vmatprep.mubr.bf16.mxu1 %v8803_v59  ;;  %6112 = vmatpush3.bf16.msra.mxu1 %v6493_v23  ;;  %v8069_v23 = vpop.f32.mrf.mxu0  ;;  %v8804_v59 = vld [vmem:[#allocation62_spill] sm:$0xff] }
 0x417   :  { %6113 = vmatprep.subr.bf16.mxu1 %v6494_v8  ;;  %v8077_v63 = vpop.f32.mrf.mxu1 }
 0x418   :  { %v8075_v15 = vpop.f32.mrf.mxu0 }
 0x419   :  { %v8082_v47 = vpop.f32.mrf.mxu1 }
 0x41a   :  { %6114 = vmatpush3.bf16.msra.mxu1 %v6494_v8  ;;  %v6497_v8 = vld [vmem:[%s6721_s30 + $0x8] sm:$0xff]   ;;  %v8080_v41 = vpop.f32.mrf.mxu0 }
 0x41b   :  { %6115 = vmatprep.subr.bf16.mxu1 %v6495_v35  ;;  %v8086_v12 = vpop.f32.mrf.mxu1 }
 0x41c   :  { %v8084_v10 = vpop.f32.mrf.mxu0 }
 0x41d   :  { %2881 = vmatmul.mubr.bf16.gmra.mxu1 %v8804_v59  ;;  %v6498_v59 = vld [vmem:[%s6721_s30] sm:$0xff]   ;;  %s8854_s30 = sld [smem:[#allocation5_spill]] }
 0x41e   :  { %2888 = vmatprep.mubr.bf16.mxu1 %v8805_v29  ;;  %6116 = vmatpush3.bf16.msra.mxu1 %v6495_v35  ;;  %v5304_v29 = vpop.f32.mrf.mxu0  ;;  %v5368_v35 = vpop.f32.mrf.mxu1 }
 0x41f   :  { %6117 = vmatprep.subr.bf16.mxu1 %v6496_v53 }
 0x420   :  { %v5306_v30 = vpop.f32.mrf.mxu0  ;;  %v5370_v0 = vpop.f32.mrf.mxu1 }
 0x422   :  { %6118 = vmatpush3.bf16.msra.mxu1 %v6496_v53  ;;  %v5307_v20 = vpop.f32.mrf.mxu0  ;;  %v5371_v53 = vpop.f32.mrf.mxu1 }
 0x423   :  { %6119 = vmatprep.subr.bf16.mxu1 %v6497_v8 }
 0x424   :  { %v8094_v40 = vpop.f32.mrf.mxu0  ;;  %v8096_v49 = vpop.f32.mrf.mxu1 }
 0x425   :  { %2889 = vmatmul.mubr.bf16.gmra.mxu1 %v8806_v46  ;;  %v8809_v46 = vld [vmem:[#allocation72_spill] sm:$0xff] }
 0x426   :  { %2896 = vmatprep.mubr.bf16.mxu1 %v8807_v50  ;;  %6120 = vmatpush3.bf16.msra.mxu1 %v6497_v8  ;;  %v8101_v50 = vpop.f32.mrf.mxu0  ;;  %v8103_v8 = vpop.f32.mrf.mxu1 }
 0x427   :  { %6121 = vmatprep.subr.bf16.mxu1 %v6498_v59 }
 0x428   :  { %v8105_v2 = vpop.f32.mrf.mxu0  ;;  %v8107_v62 = vpop.f32.mrf.mxu1 }
 0x42a   :  { %6122 = vmatpush3.bf16.msra.mxu1 %v6498_v59  ;;  %v8811_v59 = vld [vmem:[#allocation76_spill] sm:$0xff]  ;;  %v5313_v33 = vpop.f32.mrf.mxu0  ;;  %v5377_v27 = vpop.f32.mrf.mxu1 }
 0x42b   :  { %6171 = vmatprep.subr.bf16.mxu1 %v8092_v42 }
 0x42c   :  { %v8119_v19 = vpop.f32.mrf.mxu0  ;;  %v8121_v16 = vpop.f32.mrf.mxu1 }
 0x42d   :  { %2897 = vmatmul.mubr.bf16.gmra.mxu1 %v8808_v55  ;;  %v5345_v55 = vadd.f32 %v7974_v22, %v7953_v38  ;;  %v5287_v38 = vadd.f32 %v8027_v48, %v8015_v51  ;;  %v5351_v22 = vadd.f32 %v8029_v36, %v8017_v57 }
 0x42e   :  { %2904 = vmatprep.mubr.bf16.mxu1 %v8809_v46  ;;  %v5284_v46 = vadd.f32 %v8006_v43, %v7989_v37  ;;  %v5316_v5 = vpop.f32.mrf.mxu0  ;;  %v5380_v13 = vpop.f32.mrf.mxu1  ;;  %v5290_v37 = vadd.f32 %v8040_v44, %v8033_v61  ;;  %v5360_v43 = vadd.f32 %v8062_v32, %v8057_v24  ;;  %v8814_v61 = vld [vmem:[#allocation83_spill] sm:$0xff]  ;;  %v5369_v32 = vadd.f32 %v5368_v35, %v8086_v12 }
 0x42f   :  { %v2561_v48 = vadd.f32 %v5351_v22, %v5287_v38  ;;  %v6501_v12 = vld [vmem:[%s6716_s24 + $0x28] sm:$0xff]   ;;  %v6502_v22 = vld [vmem:[%s6716_s24 + $0x20] sm:$0xff]  }
 0x430   :  { %v2556_v21 = vadd.f32 %v5348_v14, %v5284_v46  ;;  %v5296_v14 = vadd.f32 %v8060_v31, %v8055_v1  ;;  %v5318_v51 = vpop.f32.mrf.mxu0  ;;  %v5382_v57 = vpop.f32.mrf.mxu1  ;;  %v2564_v36 = vadd.f32 %v5354_v60, %v5290_v37  ;;  %v5366_v1 = vadd.f32 %v8082_v47, %v8077_v63  ;;  %v6503_v60 = vld [vmem:[%s6716_s24 + $0x18] sm:$0xff]  }
 0x431   :  { %v5305_v31 = vadd.f32 %v5304_v29, %v8084_v10  ;;  %v5372_v46 = vadd.f32 %v5371_v53, %v5370_v0  ;;  %v5375_v0 = vadd.f32 %v8103_v8, %v8096_v49  ;;  %v5381_v49 = vadd.f32 %v5380_v13, %v8121_v16 }
 0x432   :  { %v2572_v44 = vadd.f32 %v5360_v43, %v5296_v14  ;;  %v5319_v34 = vpop.f32.mrf.mxu0 }
 0x435   :  { %2905 = vmatmul.mubr.bf16.gmra.mxu1 %v8810_v6  ;;  %v8812_v6 = vld [vmem:[#allocation78_spill] sm:$0xff] }
 0x436   :  { %2912 = vmatprep.mubr.bf16.mxu1 %v8811_v59  ;;  %v2553_v59 = vadd.f32 %v5345_v55, %v5281_v11  ;;  %v5293_v11 = vadd.f32 %v8049_v58, %v8044_v7  ;;  %v5383_v7 = vpop.f32.mrf.mxu1  ;;  %v5299_v58 = vadd.f32 %v8069_v23, %v8064_v56  ;;  %v5308_v55 = vadd.f32 %v5307_v20, %v5306_v30  ;;  %v6500_v56 = vld [vmem:[%s6716_s24 + $0x30] sm:$0xff]   ;;  %v6510_v23 = vld [vmem:[%s6726_s6 + $0x20] sm:$0xff]  }
 0x437   :  { %6081 = vmatprep.subr.bf16.mxu0 %v6510_v23  ;;  %v5311_v20 = vadd.f32 %v8101_v50, %v8094_v40  ;;  %v5314_v30 = vadd.f32 %v5313_v33, %v8105_v2  ;;  %v5317_v40 = vadd.f32 %v5316_v5, %v8119_v19  ;;  %v5320_v50 = vadd.f32 %v5319_v34, %v5318_v51  ;;  %v6513_v5 = vld [vmem:[%s6726_s6 + $0x8] sm:$0xff]   ;;  %v6506_v34 = vld [vmem:[%s6716_s24] sm:$0xff]  }
 0x438   :  { %v2615_v25 = vpack.c.bf16 %v2556_v21, %v2553_v59  ;;  %v5363_v21 = vadd.f32 %v8071_v26, %v8066_v3  ;;  %v5385_v59 = vpop.f32.mrf.mxu1  ;;  %v2588_v63 = vadd.f32 %v5372_v46, %v5308_v55  ;;  %6082 = vmatpush3.bf16.msra.mxu0 %v6510_v23  ;;  %v5384_v33 = vadd.f32 %v5383_v7, %v5382_v57  ;;  %v6514_v57 = vld [vmem:[%s6726_s6] sm:$0xff]  }
 0x439   :  { %v2593_v2 = vadd.f32 %v5375_v0, %v5311_v20 }
 0x43a   :  { %v2577_v3 = vadd.f32 %v5363_v21, %v5299_v58  ;;  %v5386_v10 = vpop.f32.mrf.mxu1  ;;  %v2604_v19 = vadd.f32 %v5384_v33, %v5320_v50 }
 0x43c   :  { %v5388_v53 = vpop.f32.mrf.mxu1 }
 0x43d   :  { %2913 = vmatmul.mubr.bf16.gmra.mxu1 %v8812_v6  ;;  %v5321_v6 = vpop.f32.mrf.mxu0 }
 0x43e   :  { %2920 = vmatprep.mubr.bf16.mxu1 %v8813_v4  ;;  %v5357_v4 = vadd.f32 %v8051_v39, %v8046_v52  ;;  %v2616_v52 = vpack.c.bf16 %v2564_v36, %v2561_v48  ;;  %v5302_v39 = vadd.f32 %v8080_v41, %v8075_v15  ;;  %v2585_v41 = vadd.f32 %v5369_v32, %v5305_v31  ;;  %v5389_v37 = vpop.f32.mrf.mxu1 }
 0x43f   :  { %v5322_v47 = vpop.f32.mrf.mxu0  ;;  %v5378_v15 = vadd.f32 %v5377_v27, %v8107_v62  ;;  %v6512_v62 = vld [vmem:[%s6726_s6 + $0x10] sm:$0xff]   ;;  %v5390_v43 = vadd.f32 %v5389_v37, %v5388_v53 }
 0x440   :  { %v2569_v17 = vadd.f32 %v5357_v4, %v5293_v11  ;;  %v2580_v26 = vadd.f32 %v5366_v1, %v5302_v39  ;;  %v2619_v38 = vpack.c.bf16 %v2588_v63, %v2585_v41  ;;  %v2601_v11 = vadd.f32 %v5381_v49, %v5317_v40 }
 0x441   :  { %v5324_v35 = vpop.f32.mrf.mxu0  ;;  %v2596_v27 = vadd.f32 %v5378_v15, %v5314_v30  ;;  %v5323_v13 = vadd.f32 %v5322_v47, %v5321_v6  ;;  %v5387_v4 = vadd.f32 %v5386_v10, %v5385_v59 }
 0x442   :  { %v2617_v24 = vpack.c.bf16 %v2572_v44, %v2569_v17  ;;  %v2618_v29 = vpack.c.bf16 %v2580_v26, %v2577_v3  ;;  %v2621_v51 = vpack.c.bf16 %v2604_v19, %v2601_v11  ;;  %v6515_v17 = vld [vmem:[%s6706_s14 + $0x38] sm:$0xff]  }
 0x443   :  { %v5325_v8 = vpop.f32.mrf.mxu0  ;;  %v2620_v16 = vpack.c.bf16 %v2596_v27, %v2593_v2  ;;  %v2609_v48 = vadd.f32 %v5387_v4, %v5323_v13 }
 0x444   :  { %v5326_v14 = vadd.f32 %v5325_v8, %v5324_v35 }
 0x445   :  { %2921 = vmatmul.mubr.bf16.gmra.mxu1 %v8814_v61  ;;  %v6505_v61 = vld [vmem:[%s6716_s24 + $0x8] sm:$0xff]  }
 0x446   :  { %6123 = vmatprep.mubr.bf16.mxu1 %v2615_v25  ;;  %v6504_v25 = vld [vmem:[%s6716_s24 + $0x10] sm:$0xff]   ;;  %v2612_v36 = vadd.f32 %v5390_v43, %v5326_v14  ;;  %s8853_s24 = sld [smem:[#allocation10_spill]] }
 0x448   :  { %v2622_v44 = vpack.c.bf16 %v2612_v36, %v2609_v48  ;;  %v6517_v48 = vld [vmem:[%s6706_s14 + $0x28] sm:$0xff]  }
 0x44d   :  { %6124 = vmatmul.mubr.bf16.vlgmr.msra.gmra.mxu1 %v2616_v52 }
 0x44e   :  { %6172 = vmatpush3.bf16.msra.mxu1 %v8092_v42  ;;  %6127 = vmatprep.mubr.bf16.mxu1 %v2617_v24  ;;  %v6511_v42 = vld [vmem:[%s6726_s6 + $0x18] sm:$0xff]   ;;  %s8855_s6 = sld [smem:[#allocation16_spill]] }
 0x44f   :  { %6173 = vmatprep.subr.bf16.mxu1 %v6500_v56  ;;  %6083 = vmatprep.subr.bf16.mxu0 %v6511_v42 }
 0x450   :  { %6084 = vmatpush3.bf16.msra.mxu0 %v6511_v42 }
 0x451   :  { %6085 = vmatprep.subr.bf16.mxu0 %v6512_v62 }
 0x452   :  { %6174 = vmatpush3.bf16.msra.mxu1 %v6500_v56 }
 0x453   :  { %6175 = vmatprep.subr.bf16.mxu1 %v6501_v12 }
 0x454   :  { %6086 = vmatpush3.bf16.msra.mxu0 %v6512_v62 }
 0x455   :  { %6128 = vmatmul.mubr.bf16.gmra.mxu1 %v2618_v29  ;;  %6087 = vmatprep.subr.bf16.mxu0 %v6513_v5 }
 0x456   :  { %6176 = vmatpush3.bf16.msra.mxu1 %v6501_v12  ;;  %6131 = vmatprep.mubr.bf16.mxu1 %v2619_v38 }
 0x457   :  { %6177 = vmatprep.subr.bf16.mxu1 %v6502_v22 }
 0x458   :  { %6088 = vmatpush3.bf16.msra.mxu0 %v6513_v5  ;;  %v6516_v5 = vld [vmem:[%s6706_s14 + $0x30] sm:$0xff]  }
 0x459   :  { %6089 = vmatprep.subr.bf16.mxu0 %v6514_v57 }
 0x45a   :  { %6178 = vmatpush3.bf16.msra.mxu1 %v6502_v22 }
 0x45b   :  { %6179 = vmatprep.subr.bf16.mxu1 %v6503_v60 }
 0x45c   :  { %6090 = vmatpush3.bf16.msra.mxu0 %v6514_v57 }
 0x45d   :  { %6132 = vmatmul.mubr.bf16.gmra.mxu1 %v2620_v16  ;;  %6139 = vmatprep.subr.bf16.mxu0 %v6515_v17 }
 0x45e   :  { %6180 = vmatpush3.bf16.msra.mxu1 %v6503_v60  ;;  %6135 = vmatprep.mubr.bf16.mxu1 %v2621_v51 }
 0x45f   :  { %6181 = vmatprep.subr.bf16.mxu1 %v6504_v25 }
 0x462   :  { %6182 = vmatpush3.bf16.msra.mxu1 %v6504_v25 }
 0x463   :  { %6183 = vmatprep.subr.bf16.mxu1 %v6505_v61 }
 0x465   :  { %6136 = vmatmul.mubr.bf16.gmra.mxu1 %v2622_v44 }
 0x466   :  { %6184 = vmatpush3.bf16.msra.mxu1 %v6505_v61 }
 0x467   :  { %6185 = vmatprep.subr.bf16.mxu1 %v6506_v34 }
 0x46a   :  { %6186 = vmatpush3.bf16.msra.mxu1 %v6506_v34 }
 0x46b   :  { %5611 = vmatprep.subr.bf16.mxu1 %v7908_v18 }
 0x48d   :  { %v5407_v7 = vpop.f32.mrf.mxu0 }
 0x48f   :  { %v5408_v52 = vpop.f32.mrf.mxu0 }
 0x490   :  { %v5409_v0 = vadd.f32 %v5408_v52, %v5407_v7  ;;  %v6518_v52 = vld [vmem:[%s6706_s14 + $0x20] sm:$0xff]  }
 0x491   :  { %v5410_v58 = vpop.f32.mrf.mxu0 }
 0x493   :  { %v5411_v21 = vpop.f32.mrf.mxu0 }
 0x494   :  { %v5412_v30 = vadd.f32 %v5411_v21, %v5410_v58 }
 0x495   :  { %v5413_v39 = vpop.f32.mrf.mxu0 }
 0x497   :  { %v5414_v1 = vpop.f32.mrf.mxu0 }
 0x498   :  { %v5415_v2 = vadd.f32 %v5414_v1, %v5413_v39 }
 0x499   :  { %v5416_v24 = vpop.f32.mrf.mxu0 }
 0x49b   :  { %v5417_v31 = vpop.f32.mrf.mxu0 }
 0x49c   :  { %v5418_v27 = vadd.f32 %v5417_v31, %v5416_v24 }
 0x49d   :  { %v5419_v32 = vpop.f32.mrf.mxu0 }
 0x49f   :  { %v5420_v55 = vpop.f32.mrf.mxu0 }
 0x4a0   :  { %v5421_v25 = vadd.f32 %v5420_v55, %v5419_v32  ;;  %v6519_v55 = vld [vmem:[%s6706_s14 + $0x18] sm:$0xff]  }
 0x4a1   :  { %v5422_v46 = vpop.f32.mrf.mxu0 }
 0x4a3   :  { %v5423_v6 = vpop.f32.mrf.mxu0 }
 0x4a4   :  { %v5424_v51 = vadd.f32 %v5423_v6, %v5422_v46 }
 0x4a5   :  { %v5425_v59 = vpop.f32.mrf.mxu0 }
 0x4a7   :  { %v5426_v56 = vpop.f32.mrf.mxu0 }
 0x4a8   :  { %v5427_v24 = vadd.f32 %v5426_v56, %v5425_v59 }
 0x4a9   :  { %v5428_v23 = vpop.f32.mrf.mxu0 }
 0x4ab   :  { %v5429_v3 = vpop.f32.mrf.mxu0 }
 0x4ac   :  { %v5430_v31 = vadd.f32 %v5429_v3, %v5428_v23 }
 0x4ad   :  { %v8175_v41 = vpop.f32.mrf.mxu0 }
 0x4af   :  { %v8177_v10 = vpop.f32.mrf.mxu0 }
 0x4b0   :  { %v5433_v56 = vadd.f32 %v8177_v10, %v8175_v41 }
 0x4b1   :  { %v8179_v29 = vpop.f32.mrf.mxu0 }
 0x4b3   :  { %v5435_v49 = vpop.f32.mrf.mxu0 }
 0x4b4   :  { %v5436_v23 = vadd.f32 %v5435_v49, %v8179_v29 }
 0x4b5   :  { %v8181_v37 = vpop.f32.mrf.mxu0 }
 0x4b7   :  { %v8184_v4 = vpop.f32.mrf.mxu0 }
 0x4b8   :  { %v5439_v10 = vadd.f32 %v8184_v4, %v8181_v37 }
 0x4b9   :  { %v5440_v61 = vpop.f32.mrf.mxu0 }
 0x4bb   :  { %v5441_v39 = vpop.f32.mrf.mxu0 }
 0x4bc   :  { %v5442_v29 = vadd.f32 %v5441_v39, %v5440_v61 }
 0x4bd   :  { %v5443_v6 = vpop.f32.mrf.mxu0 }
 0x4cd   :  { %v5471_v26 = vpop.f32.mrf.mxu1 }
 0x4cf   :  { %v5472_v63 = vpop.f32.mrf.mxu1 }
 0x4d0   :  { %v5473_v12 = vadd.f32 %v5472_v63, %v5471_v26 }
 0x4d1   :  { %v5474_v47 = vpop.f32.mrf.mxu1 }
 0x4d2   :  { %v2867_v35 = vadd.f32 %v5473_v12, %v5409_v0 }
 0x4d3   :  { %v5475_v20 = vpop.f32.mrf.mxu1 }
 0x4d4   :  { %v5476_v15 = vadd.f32 %v5475_v20, %v5474_v47  ;;  %v6520_v20 = vld [vmem:[%s6706_s14 + $0x10] sm:$0xff]  }
 0x4d5   :  { %v5477_v42 = vpop.f32.mrf.mxu1 }
 0x4d6   :  { %v2870_v53 = vadd.f32 %v5476_v15, %v5412_v30  ;;  %v5444_v30 = vpop.f32.mrf.mxu0 }
 0x4d7   :  { %v5478_v38 = vpop.f32.mrf.mxu1 }
 0x4d8   :  { %v2929_v22 = vpack.c.bf16 %v2870_v53, %v2867_v35  ;;  %v5479_v50 = vadd.f32 %v5478_v38, %v5477_v42  ;;  %v6521_v42 = vld [vmem:[%s6706_s14 + $0x8] sm:$0xff]   ;;  %v5446_v53 = vpop.f32.mrf.mxu0 }
 0x4d9   :  { %v5480_v40 = vpop.f32.mrf.mxu1 }
 0x4da   :  { %6091 = vmatprep.mubr.bf16.mxu0 %v2929_v22  ;;  %v2875_v60 = vadd.f32 %v5479_v50, %v5415_v2  ;;  %v6522_v50 = vld [vmem:[%s6706_s14] sm:$0xff]   ;;  %s8852_s14 = sld [smem:[#allocation17_spill]] }
 0x4db   :  { %v5481_v33 = vpop.f32.mrf.mxu1 }
 0x4dc   :  { %v5482_v62 = vadd.f32 %v5481_v33, %v5480_v40 }
 0x4dd   :  { %v5483_v8 = vpop.f32.mrf.mxu1 }
 0x4de   :  { %v2878_v11 = vadd.f32 %v5482_v62, %v5418_v27  ;;  %v5447_v27 = vpop.f32.mrf.mxu0 }
 0x4df   :  { %v5484_v19 = vpop.f32.mrf.mxu1 }
 0x4e0   :  { %v2930_v16 = vpack.c.bf16 %v2878_v11, %v2875_v60  ;;  %v5485_v14 = vadd.f32 %v5484_v19, %v5483_v8  ;;  %v5449_v60 = vpop.f32.mrf.mxu0 }
 0x4e1   :  { %v5486_v13 = vpop.f32.mrf.mxu1 }
 0x4e2   :  { %6092 = vmatmul.mubr.bf16.vlgmr.msra.gmra.mxu0 %v2930_v16  ;;  %v2883_v44 = vadd.f32 %v5485_v14, %v5421_v25  ;;  %v5450_v14 = vpop.f32.mrf.mxu0 }
 0x4e3   :  { %6140 = vmatpush3.bf16.msra.mxu0 %v6515_v17  ;;  %v5487_v43 = vpop.f32.mrf.mxu1  ;;  %v5451_v39 = vadd.f32 %v5450_v14, %v5449_v60 }
 0x4e4   :  { %v5488_v57 = vadd.f32 %v5487_v43, %v5486_v13  ;;  %6141 = vmatprep.subr.bf16.mxu0 %v6516_v5 }
 0x4e5   :  { %v5489_v36 = vpop.f32.mrf.mxu1 }
 0x4e6   :  { %v2886_v34 = vadd.f32 %v5488_v57, %v5424_v51  ;;  %v5445_v51 = vadd.f32 %v5444_v30, %v5443_v6  ;;  %v5448_v57 = vadd.f32 %v5447_v27, %v5446_v53 }
 0x4e7   :  { %6142 = vmatpush3.bf16.msra.mxu0 %v6516_v5  ;;  %v5490_v7 = vpop.f32.mrf.mxu1 }
 0x4e8   :  { %6143 = vmatprep.subr.bf16.mxu0 %v6517_v48  ;;  %v2931_v58 = vpack.c.bf16 %v2886_v34, %v2883_v44  ;;  %v5491_v1 = vadd.f32 %v5490_v7, %v5489_v36 }
 0x4e9   :  { %v5492_v21 = vpop.f32.mrf.mxu1 }
 0x4ea   :  { %6095 = vmatprep.mubr.bf16.mxu0 %v2931_v58  ;;  %v2891_v26 = vadd.f32 %v5491_v1, %v5427_v24 }
 0x4eb   :  { %6144 = vmatpush3.bf16.msra.mxu0 %v6517_v48  ;;  %v5493_v17 = vpop.f32.mrf.mxu1  ;;  %v5452_v48 = vpop.f32.mrf.mxu0 }
 0x4ec   :  { %v5494_v32 = vadd.f32 %v5493_v17, %v5492_v21  ;;  %6145 = vmatprep.subr.bf16.mxu0 %v6518_v52 }
 0x4ed   :  { %v5495_v46 = vpop.f32.mrf.mxu1 }
 0x4ee   :  { %v2894_v63 = vadd.f32 %v5494_v32, %v5430_v31 }
 0x4ef   :  { %6146 = vmatpush3.bf16.msra.mxu0 %v6518_v52  ;;  %v5496_v47 = vpop.f32.mrf.mxu1  ;;  %v5453_v52 = vpop.f32.mrf.mxu0 }
 0x4f0   :  { %v2932_v12 = vpack.c.bf16 %v2894_v63, %v2891_v26  ;;  %6147 = vmatprep.subr.bf16.mxu0 %v6519_v55  ;;  %v5497_v15 = vadd.f32 %v5496_v47, %v5495_v46  ;;  %v5454_v1 = vadd.f32 %v5453_v52, %v5452_v48 }
 0x4f1   :  { %v5498_v0 = vpop.f32.mrf.mxu1 }
 0x4f2   :  { %6096 = vmatmul.mubr.bf16.gmra.mxu0 %v2932_v12  ;;  %v2899_v38 = vadd.f32 %v5497_v15, %v5433_v56 }
 0x4f3   :  { %6148 = vmatpush3.bf16.msra.mxu0 %v6519_v55  ;;  %v5499_v59 = vpop.f32.mrf.mxu1 }
 0x4f4   :  { %v5500_v3 = vadd.f32 %v5499_v59, %v5498_v0  ;;  %6149 = vmatprep.subr.bf16.mxu0 %v6520_v20  ;;  %v8199_v0 = vld [vmem:[%s6731_s12] ss:$0 sm:$0xff]  ;;  %s6652_s12 = smov [#allocation2]  }
 0x4f5   :  { %v5501_v35 = vpop.f32.mrf.mxu1 }
 0x4f6   :  { %v2902_v22 = vadd.f32 %v5500_v3, %v5436_v23 }
 0x4f7   :  { %6150 = vmatpush3.bf16.msra.mxu0 %v6520_v20  ;;  %v5502_v40 = vpop.f32.mrf.mxu1 }
 0x4f8   :  { %6151 = vmatprep.subr.bf16.mxu0 %v6521_v42  ;;  %v2933_v33 = vpack.c.bf16 %v2902_v22, %v2899_v38  ;;  %v5503_v62 = vadd.f32 %v5502_v40, %v5501_v35 }
 0x4f9   :  { %v5504_v2 = vpop.f32.mrf.mxu1 }
 0x4fa   :  { %6099 = vmatprep.mubr.bf16.mxu0 %v2933_v33  ;;  %v2907_v11 = vadd.f32 %v5503_v62, %v5439_v10 }
 0x4fb   :  { %6152 = vmatpush3.bf16.msra.mxu0 %v6521_v42  ;;  %v5505_v41 = vpop.f32.mrf.mxu1 }
 0x4fc   :  { %v5506_v49 = vadd.f32 %v5505_v41, %v5504_v2  ;;  %6153 = vmatprep.subr.bf16.mxu0 %v6522_v50 }
 0x4fd   :  { %v5507_v8 = vpop.f32.mrf.mxu1 }
 0x4fe   :  { %v2910_v19 = vadd.f32 %v5506_v49, %v5442_v29 }
 0x4ff   :  { %6154 = vmatpush3.bf16.msra.mxu0 %v6522_v50  ;;  %v5508_v16 = vpop.f32.mrf.mxu1 }
 0x500   :  { %v2934_v5 = vpack.c.bf16 %v2910_v19, %v2907_v11  ;;  %5583 = vmatprep.subr.bf16.mxu0 %v7748_v45  ;;  %v5509_v43 = vadd.f32 %v5508_v16, %v5507_v8  ;;  %v8815_v19 = vld [vmem:[#allocation85_spill] sm:$0xff] }
 0x501   :  { %v5510_v13 = vpop.f32.mrf.mxu1 }
 0x502   :  { %6100 = vmatmul.mubr.bf16.gmra.mxu0 %v2934_v5  ;;  %v2915_v36 = vadd.f32 %v5509_v43, %v5445_v51  ;;  %v8816_v51 = vld [vmem:[#allocation87_spill] sm:$0xff] }
 0x503   :  { %v5511_v25 = vpop.f32.mrf.mxu1 }
 0x504   :  { %v5512_v37 = vadd.f32 %v5511_v25, %v5510_v13 }
 0x505   :  { %v5513_v4 = vpop.f32.mrf.mxu1 }
 0x506   :  { %v2918_v61 = vadd.f32 %v5512_v37, %v5448_v57 }
 0x507   :  { %v5514_v44 = vpop.f32.mrf.mxu1 }
 0x508   :  { %v2935_v34 = vpack.c.bf16 %v2918_v61, %v2915_v36  ;;  %v5515_v58 = vadd.f32 %v5514_v44, %v5513_v4  ;;  %v8817_v4 = vld [vmem:[#allocation88_spill] sm:$0xff]  ;;  %v8818_v44 = vld [vmem:[#allocation89_spill] sm:$0xff] }
 0x509   :  { %v5516_v7 = vpop.f32.mrf.mxu1 }
 0x50a   :  { %6103 = vmatprep.mubr.bf16.mxu0 %v2935_v34  ;;  %v2923_v24 = vadd.f32 %v5515_v58, %v5451_v39  ;;  %v8819_v58 = vld [vmem:[#allocation90_spill] sm:$0xff]  ;;  %v8820_v39 = vld [vmem:[#allocation84_spill] sm:$0xff] }
 0x50b   :  { %v5517_v21 = vpop.f32.mrf.mxu1 }
 0x50c   :  { %v5518_v17 = vadd.f32 %v5517_v21, %v5516_v7 }
 0x50d   :  { %v6125_v55 = vpop.f32.mrf.mxu1 }
 0x50e   :  { %v2926_v31 = vadd.f32 %v5518_v17, %v5454_v1  ;;  %v8821_v17 = vld [vmem:[#allocation19_spill] sm:$0xff] }
 0x50f   :  { %v3180_v46 = vpop.f32.mrf.mxu1 }
 0x510   :  { %v2936_v32 = vpack.c.bf16 %v2926_v31, %v2923_v24 }
 0x511   :  { %v6126_v26 = vpop.f32.mrf.mxu1 }
 0x512   :  { %6104 = vmatmul.mubr.bf16.gmra.mxu0 %v2936_v32 }
 0x513   :  { %v3183_v15 = vpop.f32.mrf.mxu1 }
 0x515   :  { %v6129_v53 = vpop.f32.mrf.mxu1 }
 0x517   :  { %v3196_v2 = vpop.f32.mrf.mxu1 }
 0x519   :  { %v6130_v41 = vpop.f32.mrf.mxu1 }
 0x51b   :  { %v3199_v11 = vpop.f32.mrf.mxu1 }
 0x51d   :  { %v6133_v57 = vpop.f32.mrf.mxu1 }
 0x51f   :  { %v3212_v7 = vpop.f32.mrf.mxu1 }
 0x521   :  { %v6134_v1 = vpop.f32.mrf.mxu1 }
 0x5a2   :  { %v6093_v6 = vpop.f32.mrf.mxu0 }
 0x5a3   :  { %v3189_v12 = vadd.f32 %v6125_v55, %v6093_v6  ;;  %v8822_v6 = vld [vmem:[#allocation24_spill] sm:$0xff] }
 0x5a4   :  { %v3035_v63 = vpop.f32.mrf.mxu0 }
 0x5a5   :  { %v3181_v47 = vadd.f32 %v3180_v46, %v3035_v63  ;;  %v3252_v42 = vadd.f32 %v8199_v0, %v3189_v12  ;;  %v8823_v63 = vld [vmem:[#allocation75_spill] sm:$0xff] }
 0x5a6   :  { %v6094_v20 = vpop.f32.mrf.mxu0 }
 0x5a7   :  { %v3192_v30 = vadd.f32 %v6126_v26, %v6094_v20  ;;  %v3250_v56 = vadd.f32 %v8199_v0, %v3181_v47  ;;  %v3268_v50 = vmax.f32 %v3252_v42, 0.0  ;;  %v3215_v26 = vpop.f32.mrf.mxu1  ;;  %v8825_v42 = vld [vmem:[#allocation23_spill] sm:$0xff] }
 0x5a8   :  { %v3038_v59 = vpop.f32.mrf.mxu0 }
 0x5a9   :  { %v3253_v23 = vadd.f32 %v8199_v0, %v3192_v30  ;;  %v3184_v3 = vadd.f32 %v3183_v15, %v3038_v59  ;;  %v3266_v22 = vmax.f32 %v3250_v56, 0.0  ;;  %v8824_v56 = vld [vmem:[#allocation79_spill] sm:$0xff] }
 0x5ab   :  { %v3251_v35 = vadd.f32 %v8199_v0, %v3184_v3  ;;  %v3269_v38 = vmax.f32 %v3253_v23, 0.0  ;;  %v6137_v23 = vpop.f32.mrf.mxu1 }
 0x5ad   :  { %v3267_v40 = vmax.f32 %v3251_v35, 0.0  ;;  %v8207_v27 = vpack.c.bf16 %v3269_v38, %v3268_v50  ;;  %v3228_v50 = vpop.f32.mrf.mxu1 }
 0x5af   :  { %v8205_v33 = vpack.c.bf16 %v3267_v40, %v3266_v22  ;;  %v8826_v22 = vld [vmem:[#allocation22_spill] sm:$0xff] }
 0x5b1   :  { %6155 = vmatprep.mubr.bf16.mxu0 %v8205_v33 }
 0x5b2   :  { %v6097_v62 = vpop.f32.mrf.mxu0  ;;  %6156 = vmatmul.mubr.bf16.vlgmr.msra.gmra.mxu0 %v8207_v27 }
 0x5b3   :  { %5584 = vmatpush3.bf16.msra.mxu0 %v7750_v54  ;;  %v3205_v49 = vadd.f32 %v6129_v53, %v6097_v62 }
 0x5b4   :  { %5585 = vmatprep.subr.bf16.mxu0 %v7757_v9  ;;  %v3051_v10 = vpop.f32.mrf.mxu0 }
 0x5b5   :  { %v3197_v29 = vadd.f32 %v3196_v2, %v3051_v10  ;;  %v3256_v43 = vadd.f32 %v8199_v0, %v3205_v49 }
 0x5b6   :  { %v6098_v8 = vpop.f32.mrf.mxu0 }
 0x5b7   :  { %v3208_v60 = vadd.f32 %v6130_v41, %v6098_v8  ;;  %5586 = vmatpush3.bf16.msra.mxu0 %v7771_v28  ;;  %v3254_v5 = vadd.f32 %v8199_v0, %v3197_v29  ;;  %v3272_v61 = vmax.f32 %v3256_v43, 0.0  ;;  %v6138_v41 = vpop.f32.mrf.mxu1 }
 0x5b8   :  { %5587 = vmatprep.subr.bf16.mxu0 %v8815_v19  ;;  %v3054_v16 = vpop.f32.mrf.mxu0 }
 0x5b9   :  { %v3257_v13 = vadd.f32 %v8199_v0, %v3208_v60  ;;  %v3200_v14 = vadd.f32 %v3199_v11, %v3054_v16  ;;  %v3270_v48 = vmax.f32 %v3254_v5, 0.0  ;;  %v3231_v11 = vpop.f32.mrf.mxu1 }
 0x5bb   :  { %v3255_v25 = vadd.f32 %v8199_v0, %v3200_v14  ;;  %5588 = vmatpush3.bf16.msra.mxu0 %v8816_v51  ;;  %v3273_v37 = vmax.f32 %v3257_v13, 0.0 }
 0x5bc   :  { %5589 = vmatprep.subr.bf16.mxu0 %v8817_v4 }
 0x5bd   :  { %v3271_v36 = vmax.f32 %v3255_v25, 0.0  ;;  %v8224_v52 = vpack.c.bf16 %v3273_v37, %v3272_v61  ;;  %v6525_v61 = vld [vmem:[%s6791_s9 + $0x4] ss:$16 sps:$4 sm:$0xff]  }
 0x5bf   :  { %5590 = vmatpush3.bf16.msra.mxu0 %v8818_v44  ;;  %v8222_v34 = vpack.c.bf16 %v3271_v36, %v3270_v48 }
 0x5c0   :  { %5591 = vmatprep.subr.bf16.mxu0 %v8819_v58 }
 0x5c1   :  { %6159 = vmatprep.mubr.bf16.mxu0 %v8222_v34 }
 0x5c2   :  { %v6101_v21 = vpop.f32.mrf.mxu0  ;;  %6160 = vmatmul.mubr.bf16.gmra.mxu0 %v8224_v52 }
 0x5c3   :  { %5592 = vmatpush3.bf16.msra.mxu0 %v8820_v39  ;;  %v3221_v32 = vadd.f32 %v6133_v57, %v6101_v21  ;;  %v6523_v21 = vld [vmem:[%s6791_s9] ss:$16 sps:$4 sm:$0xff]  }
 0x5c4   :  { %5593 = vmatprep.subr.bf16.mxu0 %v8821_v17  ;;  %v3067_v24 = vpop.f32.mrf.mxu0 }
 0x5c5   :  { %v3213_v31 = vadd.f32 %v3212_v7, %v3067_v24  ;;  %v3260_v15 = vadd.f32 %v8199_v0, %v3221_v32 }
 0x5c6   :  { %v6102_v55 = vpop.f32.mrf.mxu0 }
 0x5c7   :  { %v3224_v46 = vadd.f32 %v6134_v1, %v6102_v55  ;;  %5594 = vmatpush3.bf16.msra.mxu0 %v8822_v6  ;;  %v3258_v12 = vadd.f32 %v8199_v0, %v3213_v31  ;;  %v3276_v38 = vmax.f32 %v3260_v15, 0.0  ;;  %v8829_v15 = vld [vmem:[#allocation20_spill] sm:$0xff] }
 0x5c8   :  { %5595 = vmatprep.subr.bf16.mxu0 %v8823_v63  ;;  %v3070_v47 = vpop.f32.mrf.mxu0 }
 0x5c9   :  { %v3261_v20 = vadd.f32 %v8199_v0, %v3224_v46  ;;  %v3216_v30 = vadd.f32 %v3215_v26, %v3070_v47  ;;  %v3274_v35 = vmax.f32 %v3258_v12, 0.0 }
 0x5cb   :  { %v3259_v59 = vadd.f32 %v8199_v0, %v3216_v30  ;;  %5596 = vmatpush3.bf16.msra.mxu0 %v8824_v56  ;;  %v3277_v3 = vmax.f32 %v3261_v20, 0.0 }
 0x5cc   :  { %5597 = vmatprep.subr.bf16.mxu0 %v8825_v42 }
 0x5cd   :  { %v3275_v53 = vmax.f32 %v3259_v59, 0.0  ;;  %v8242_v2 = vpack.c.bf16 %v3277_v3, %v3276_v38  ;;  %v8830_v59 = vld [vmem:[#allocation37_spill] sm:$0xff] }
 0x5cf   :  { %5598 = vmatpush3.bf16.msra.mxu0 %v8826_v22  ;;  %v8240_v40 = vpack.c.bf16 %v3275_v53, %v3274_v35 }
 0x5d0   :  { %5639 = vmatprep.subr.bf16.mxu0 %v7748_v45 }
 0x5d1   :  { %6163 = vmatprep.mubr.bf16.mxu0 %v8240_v40 }
 0x5d2   :  { %v6105_v62 = vpop.f32.mrf.mxu0  ;;  %6164 = vmatmul.mubr.bf16.gmra.mxu0 %v8242_v2 }
 0x5d3   :  { %v3237_v49 = vadd.f32 %v6137_v23, %v6105_v62 }
 0x5d4   :  { %v3083_v10 = vpop.f32.mrf.mxu0 }
 0x5d5   :  { %v3229_v29 = vadd.f32 %v3228_v50, %v3083_v10  ;;  %v3264_v14 = vadd.f32 %v8199_v0, %v3237_v49  ;;  %v8833_v10 = vld [vmem:[#allocation59_spill] sm:$0xff]  ;;  %v8834_v49 = vld [vmem:[#allocation61_spill] sm:$0xff] }
 0x5d6   :  { %v6106_v8 = vpop.f32.mrf.mxu0 }
 0x5d7   :  { %v3240_v60 = vadd.f32 %v6138_v41, %v6106_v8  ;;  %v3262_v5 = vadd.f32 %v8199_v0, %v3229_v29  ;;  %v3280_v48 = vmax.f32 %v3264_v14, 0.0  ;;  %v8838_v14 = vld [vmem:[#allocation52_spill] sm:$0xff] }
 0x5d8   :  { %v3086_v16 = vpop.f32.mrf.mxu0 }
 0x5d9   :  { %v3265_v13 = vadd.f32 %v8199_v0, %v3240_v60  ;;  %v3232_v45 = vadd.f32 %v3231_v11, %v3086_v16  ;;  %v3278_v57 = vmax.f32 %v3262_v5, 0.0  ;;  %v8835_v60 = vld [vmem:[#allocation63_spill] sm:$0xff] }
 0x5da   :  { %v8836_v5 = vld [vmem:[#allocation35_spill] sm:$0xff] }
 0x5db   :  { %v3263_v43 = vadd.f32 %v8199_v0, %v3232_v45  ;;  %v3281_v25 = vmax.f32 %v3265_v13, 0.0  ;;  %v6535_v0 = vld [vmem:[%s8827_s0] ss:$16 sps:$4 sm:$0xff]  }
 0x5dc   :  { %v8837_v45 = vld [vmem:[#allocation91_spill] sm:$0xff] }
 0x5dd   :  { %v3279_v37 = vmax.f32 %v3263_v43, 0.0  ;;  %v8254_v7 = vpack.c.bf16 %v3281_v25, %v3280_v48  ;;  %v8840_v48 = vld [vmem:[#allocation33_spill] sm:$0xff] }
 0x5df   :  { %v8251_v36 = vpack.c.bf16 %v3279_v37, %v3278_v57 }
 0x5e1   :  { %6167 = vmatprep.mubr.bf16.mxu0 %v8251_v36 }
 0x5e2   :  { %6168 = vmatmul.mubr.bf16.gmra.mxu0 %v8254_v7 }
 0x5e3   :  { %3754 = vmatprep.mubr.bf16.mxu0 %v6525_v61 }
 0x5ea   :  { %3755 = vmatmul.mubr.bf16.vlgmr.msra.gmra.mxu0 %v6523_v21 }
 0x5eb   :  { %5640 = vmatpush3.bf16.msra.mxu0 %v7750_v54  ;;  %v6531_v54 = vld [vmem:[%s6791_s9 + $0x24] ss:$16 sps:$4 sm:$0xff]  }
 0x5ec   :  { %5641 = vmatprep.subr.bf16.mxu0 %v7757_v9  ;;  %v6529_v9 = vld [vmem:[%s6791_s9 + $0x20] ss:$16 sps:$4 sm:$0xff]   ;;  %3762 = vmatprep.mubr.bf16.mxu0 %v6531_v54 }
 0x5ef   :  { %5642 = vmatpush3.bf16.msra.mxu0 %v7771_v28  ;;  %v6537_v28 = vld [vmem:[%s8827_s0 + $0x4] ss:$16 sps:$4 sm:$0xff]  }
 0x5f0   :  { %5643 = vmatprep.subr.bf16.mxu0 %v8815_v19  ;;  %v6543_v19 = vld [vmem:[%s8827_s0 + $0x24] ss:$16 sps:$4 sm:$0xff]  }
 0x5f2   :  { %3763 = vmatmul.mubr.bf16.gmra.mxu0 %v6529_v9 }
 0x5f3   :  { %5644 = vmatpush3.bf16.msra.mxu0 %v8816_v51  ;;  %3918 = vmatprep.mubr.bf16.mxu0 %v6537_v28  ;;  %v6541_v51 = vld [vmem:[%s8827_s0 + $0x20] ss:$16 sps:$4 sm:$0xff]  }
 0x5f4   :  { %5645 = vmatprep.subr.bf16.mxu0 %v8817_v4 }
 0x5f7   :  { %5646 = vmatpush3.bf16.msra.mxu0 %v8818_v44  ;;  %v8281_v44 = vld [vmem:[%s8828_s5] ss:$0 sm:$0xff] }
 0x5f8   :  { %5647 = vmatprep.subr.bf16.mxu0 %v8819_v58 }
 0x5fb   :  { %5648 = vmatpush3.bf16.msra.mxu0 %v8820_v39 }
 0x5fc   :  { %5649 = vmatprep.subr.bf16.mxu0 %v8821_v17 }
 0x5ff   :  { %5650 = vmatpush3.bf16.msra.mxu0 %v8822_v6 }
 0x600   :  { %5651 = vmatprep.subr.bf16.mxu0 %v8823_v63 }
 0x603   :  { %5652 = vmatpush3.bf16.msra.mxu0 %v8824_v56 }
 0x604   :  { %5653 = vmatprep.subr.bf16.mxu0 %v8825_v42 }
 0x607   :  { %5654 = vmatpush3.bf16.msra.mxu0 %v8826_v22 }
 0x60a   :  { %3919 = vmatmul.mubr.bf16.vlgmr.msra.gmra.mxu0 %v6535_v0 }
 0x60b   :  { %3926 = vmatprep.mubr.bf16.mxu0 %v6543_v19  ;;  %v8841_v19 = vld [vmem:[#allocation86_spill] sm:$0xff] }
 0x612   :  { %3927 = vmatmul.mubr.bf16.gmra.mxu0 %v6541_v51 }
 0x672   :  { %v6157_v4 = vpop.f32.mrf.mxu0 }
 0x673   :  { %v8284_v39 = vadd.f32 %v6157_v4, %v8281_v44  ;;  %v8842_v4 = vld [vmem:[#allocation67_spill] sm:$0xff] }
 0x674   :  { %v3395_v58 = vpop.f32.mrf.mxu0 }
 0x675   :  { %v8287_v17 = vadd.f32 %v8281_v44, %v3395_v58  ;;  %v3460_v46 = vmax.f32 %v8284_v39, 0.0 }
 0x676   :  { %v6158_v1 = vpop.f32.mrf.mxu0 }
 0x677   :  { %v8290_v24 = vadd.f32 %v6158_v1, %v8281_v44  ;;  %v3458_v6 = vmax.f32 %v8287_v17, 0.0  ;;  %v8843_v1 = vld [vmem:[#allocation53_spill] sm:$0xff] }
 0x678   :  { %v3398_v31 = vpop.f32.mrf.mxu0 }
 0x679   :  { %v3461_v32 = vmax.f32 %v8290_v24, 0.0  ;;  %v8294_v55 = vadd.f32 %v8281_v44, %v3398_v31 }
 0x67b   :  { %v3459_v26 = vmax.f32 %v8294_v55, 0.0  ;;  %v3475_v63 = vpack.c.bf16 %v3461_v32, %v3460_v46 }
 0x67d   :  { %v3474_v47 = vpack.c.bf16 %v3459_v26, %v3458_v6  ;;  %v3483_v20 = vadd.bf16 %v3475_v63, %v8207_v27  ;;  %v8832_v27 = vld [vmem:[#allocation43_spill] sm:$0xff] }
 0x67f   :  { %v3482_v12 = vadd.bf16 %v3474_v47, %v8205_v33  ;;  %v8831_v33 = vld [vmem:[#allocation41_spill] sm:$0xff] }
 0x681   :  { %6187 = vmatprep.mubr.bf16.mxu1 %v3482_v12 }
 0x682   :  { %v6161_v30 = vpop.f32.mrf.mxu0  ;;  %6188 = vmatmul.mubr.bf16.vlgmr.msra.gmra.mxu1 %v3483_v20 }
 0x683   :  { %5612 = vmatpush3.bf16.msra.mxu1 %v8829_v15  ;;  %v8304_v23 = vadd.f32 %v6161_v30, %v8281_v44 }
 0x684   :  { %5613 = vmatprep.subr.bf16.mxu1 %v8830_v59  ;;  %v3411_v56 = vpop.f32.mrf.mxu0 }
 0x685   :  { %v8307_v42 = vadd.f32 %v8281_v44, %v3411_v56  ;;  %v3464_v50 = vmax.f32 %v8304_v23, 0.0 }
 0x686   :  { %v6162_v3 = vpop.f32.mrf.mxu0 }
 0x687   :  { %v8310_v35 = vadd.f32 %v6162_v3, %v8281_v44  ;;  %5614 = vmatpush3.bf16.msra.mxu1 %v8831_v33  ;;  %v3462_v62 = vmax.f32 %v8307_v42, 0.0 }
 0x688   :  { %5615 = vmatprep.subr.bf16.mxu1 %v8832_v27  ;;  %v3414_v53 = vpop.f32.mrf.mxu0 }
 0x689   :  { %v3465_v38 = vmax.f32 %v8310_v35, 0.0  ;;  %v8316_v22 = vadd.f32 %v8281_v44, %v3414_v53 }
 0x68b   :  { %v3463_v41 = vmax.f32 %v8316_v22, 0.0  ;;  %5616 = vmatpush3.bf16.msra.mxu1 %v8833_v10  ;;  %v3477_v29 = vpack.c.bf16 %v3465_v38, %v3464_v50  ;;  %v6528_v50 = vld [vmem:[%s6791_s9 + $0xc] ss:$16 sps:$4 sm:$0xff]  }
 0x68c   :  { %5617 = vmatprep.subr.bf16.mxu1 %v8834_v49 }
 0x68d   :  { %v3476_v8 = vpack.c.bf16 %v3463_v41, %v3462_v62  ;;  %v3485_v16 = vadd.bf16 %v3477_v29, %v8224_v52  ;;  %v8839_v52 = vld [vmem:[#allocation65_spill] sm:$0xff]  ;;  %v6534_v41 = vld [vmem:[%s6791_s9 + $0x2c] ss:$16 sps:$4 sm:$0xff]  }
 0x68e   :  { %v6532_v29 = vld [vmem:[%s6791_s9 + $0x28] ss:$16 sps:$4 sm:$0xff]  }
 0x68f   :  { %5618 = vmatpush3.bf16.msra.mxu1 %v8835_v60  ;;  %v3484_v11 = vadd.bf16 %v3476_v8, %v8222_v34  ;;  %v6540_v8 = vld [vmem:[%s8827_s0 + $0xc] ss:$16 sps:$4 sm:$0xff]  }
 0x690   :  { %5619 = vmatprep.subr.bf16.mxu1 %v8836_v5 }
 0x691   :  { %6191 = vmatprep.mubr.bf16.mxu1 %v3484_v11  ;;  %v6552_v11 = vld [vmem:[%s8844_s13 + $0x10] sm:$0xff]  }
 0x692   :  { %v6165_v13 = vpop.f32.mrf.mxu0  ;;  %6192 = vmatmul.mubr.bf16.gmra.mxu1 %v3485_v16 }
 0x693   :  { %5620 = vmatpush3.bf16.msra.mxu1 %v8837_v45  ;;  %v8330_v25 = vadd.f32 %v6165_v13, %v8281_v44 }
 0x694   :  { %5621 = vmatprep.subr.bf16.mxu1 %v8838_v14  ;;  %v3427_v43 = vpop.f32.mrf.mxu0 }
 0x695   :  { %v8333_v37 = vadd.f32 %v8281_v44, %v3427_v43  ;;  %v3468_v9 = vmax.f32 %v8330_v25, 0.0 }
 0x696   :  { %v6166_v57 = vpop.f32.mrf.mxu0 }
 0x697   :  { %v8336_v34 = vadd.f32 %v6166_v57, %v8281_v44  ;;  %5622 = vmatpush3.bf16.msra.mxu1 %v8839_v52  ;;  %v3466_v28 = vmax.f32 %v8333_v37, 0.0 }
 0x698   :  { %5623 = vmatprep.subr.bf16.mxu1 %v8840_v48  ;;  %v3430_v61 = vpop.f32.mrf.mxu0 }
 0x699   :  { %v3469_v21 = vmax.f32 %v8336_v34, 0.0  ;;  %v8342_v54 = vadd.f32 %v8281_v44, %v3430_v61  ;;  %v8411_v61 = vld [vmem:[%s8846_s17] ss:$0 sm:$0xff] }
 0x69b   :  { %v3467_v0 = vmax.f32 %v8342_v54, 0.0  ;;  %5624 = vmatpush3.bf16.msra.mxu1 %v8841_v19  ;;  %v3479_v51 = vpack.c.bf16 %v3469_v21, %v3468_v9 }
 0x69c   :  { %5625 = vmatprep.subr.bf16.mxu1 %v8842_v4 }
 0x69d   :  { %v3478_v58 = vpack.c.bf16 %v3467_v0, %v3466_v28  ;;  %v3487_v32 = vadd.bf16 %v3479_v51, %v8242_v2 }
 0x69f   :  { %5626 = vmatpush3.bf16.msra.mxu1 %v8843_v1  ;;  %v3486_v31 = vadd.bf16 %v3478_v58, %v8240_v40 }
 0x6a0   :  { %5667 = vmatprep.subr.bf16.mxu1 %v7908_v18 }
 0x6a1   :  { %6195 = vmatprep.mubr.bf16.mxu1 %v3486_v31 }
 0x6a2   :  { %v6169_v46 = vpop.f32.mrf.mxu0  ;;  %6196 = vmatmul.mubr.bf16.gmra.mxu1 %v3487_v32 }
 0x6a3   :  { %v8354_v26 = vadd.f32 %v6169_v46, %v8281_v44 }
 0x6a4   :  { %v3443_v6 = vpop.f32.mrf.mxu0 }
 0x6a5   :  { %v8357_v47 = vadd.f32 %v8281_v44, %v3443_v6  ;;  %v3472_v20 = vmax.f32 %v8354_v26, 0.0 }
 0x6a6   :  { %v6170_v63 = vpop.f32.mrf.mxu0 }
 0x6a7   :  { %v8360_v12 = vadd.f32 %v6170_v63, %v8281_v44  ;;  %v3470_v30 = vmax.f32 %v8357_v47, 0.0 }
 0x6a8   :  { %v3446_v40 = vpop.f32.mrf.mxu0 }
 0x6a9   :  { %v3473_v18 = vmax.f32 %v8360_v12, 0.0  ;;  %v8364_v2 = vadd.f32 %v8281_v44, %v3446_v40  ;;  %v6526_v44 = vld [vmem:[%s6791_s9 + $0x8] ss:$16 sps:$4 sm:$0xff]   ;;  %s8845_s9 = sld [smem:[#allocation12_spill]] }
 0x6ab   :  { %v3471_v56 = vmax.f32 %v8364_v2, 0.0  ;;  %v3481_v3 = vpack.c.bf16 %v3473_v18, %v3472_v20 }
 0x6ad   :  { %v3480_v53 = vpack.c.bf16 %v3471_v56, %v3470_v30  ;;  %v3489_v62 = vadd.bf16 %v3481_v3, %v8254_v7  ;;  %v6546_v7 = vld [vmem:[%s8827_s0 + $0x2c] ss:$16 sps:$4 sm:$0xff]  }
 0x6af   :  { %v3488_v38 = vadd.bf16 %v3480_v53, %v8251_v36  ;;  %v6538_v36 = vld [vmem:[%s8827_s0 + $0x8] ss:$16 sps:$4 sm:$0xff]   ;;  %v6556_v16 = vld [vmem:[%s8845_s9 + $0x30] sm:$0xff]  }
 0x6b0   :  { %v6557_v13 = vld [vmem:[%s8845_s9 + $0x28] sm:$0xff]   ;;  %v6559_v43 = vld [vmem:[%s8845_s9 + $0x18] sm:$0xff]   ;;  %v6560_v57 = vld [vmem:[%s8845_s9 + $0x10] sm:$0xff]  }
 0x6b1   :  { %6199 = vmatprep.mubr.bf16.mxu1 %v3488_v38 }
 0x6b2   :  { %6200 = vmatmul.mubr.bf16.gmra.mxu1 %v3489_v62 }
 0x6b3   :  { %3803 = vmatprep.mubr.bf16.mxu1 %v6528_v50 }
 0x6ba   :  { %3804 = vmatmul.mubr.bf16.vlgmr.msra.gmra.mxu1 %v6526_v44 }
 0x6bb   :  { %5668 = vmatpush3.bf16.msra.mxu1 %v8829_v15  ;;  %3811 = vmatprep.mubr.bf16.mxu1 %v6534_v41  ;;  %v6547_v15 = vld [vmem:[%s8844_s13 + $0x38] sm:$0xff]  }
 0x6bc   :  { %5669 = vmatprep.subr.bf16.mxu1 %v8830_v59  ;;  %v6544_v59 = vld [vmem:[%s8827_s0 + $0x28] ss:$16 sps:$4 sm:$0xff]   ;;  %6203 = vmatprep.subr.bf16.mxu0 %v6547_v15 }
 0x6bd   :  { %6204 = vmatpush3.bf16.msra.mxu0 %v6547_v15 }
 0x6bf   :  { %5670 = vmatpush3.bf16.msra.mxu1 %v8831_v33  ;;  %v6548_v33 = vld [vmem:[%s8844_s13 + $0x30] sm:$0xff]  }
 0x6c0   :  { %5671 = vmatprep.subr.bf16.mxu1 %v8832_v27  ;;  %6205 = vmatprep.subr.bf16.mxu0 %v6548_v33  ;;  %v6549_v27 = vld [vmem:[%s8844_s13 + $0x28] sm:$0xff]  }
 0x6c1   :  { %6206 = vmatpush3.bf16.msra.mxu0 %v6548_v33 }
 0x6c2   :  { %3812 = vmatmul.mubr.bf16.gmra.mxu1 %v6532_v29  ;;  %6207 = vmatprep.subr.bf16.mxu0 %v6549_v27 }
 0x6c3   :  { %5672 = vmatpush3.bf16.msra.mxu1 %v8833_v10  ;;  %3967 = vmatprep.mubr.bf16.mxu1 %v6540_v8  ;;  %v6550_v10 = vld [vmem:[%s8844_s13 + $0x20] sm:$0xff]  }
 0x6c4   :  { %5673 = vmatprep.subr.bf16.mxu1 %v8834_v49  ;;  %v6551_v49 = vld [vmem:[%s8844_s13 + $0x18] sm:$0xff]  }
 0x6c5   :  { %6208 = vmatpush3.bf16.msra.mxu0 %v6549_v27 }
 0x6c6   :  { %6209 = vmatprep.subr.bf16.mxu0 %v6550_v10 }
 0x6c7   :  { %5674 = vmatpush3.bf16.msra.mxu1 %v8835_v60  ;;  %v6555_v60 = vld [vmem:[%s8845_s9 + $0x38] sm:$0xff]  }
 0x6c8   :  { %5675 = vmatprep.subr.bf16.mxu1 %v8836_v5  ;;  %v6553_v5 = vld [vmem:[%s8844_s13 + $0x8] sm:$0xff]  }
 0x6c9   :  { %6210 = vmatpush3.bf16.msra.mxu0 %v6550_v10 }
 0x6ca   :  { %6211 = vmatprep.subr.bf16.mxu0 %v6551_v49 }
 0x6cb   :  { %5676 = vmatpush3.bf16.msra.mxu1 %v8837_v45  ;;  %v6554_v45 = vld [vmem:[%s8844_s13] sm:$0xff]  }
 0x6cc   :  { %5677 = vmatprep.subr.bf16.mxu1 %v8838_v14  ;;  %v6558_v14 = vld [vmem:[%s8845_s9 + $0x20] sm:$0xff]  }
 0x6cd   :  { %6212 = vmatpush3.bf16.msra.mxu0 %v6551_v49 }
 0x6ce   :  { %6213 = vmatprep.subr.bf16.mxu0 %v6552_v11 }
 0x6cf   :  { %5678 = vmatpush3.bf16.msra.mxu1 %v8839_v52  ;;  %v6561_v52 = vld [vmem:[%s8845_s9 + $0x8] sm:$0xff]  }
 0x6d0   :  { %5679 = vmatprep.subr.bf16.mxu1 %v8840_v48  ;;  %v6562_v48 = vld [vmem:[%s8845_s9] sm:$0xff]  }
 0x6d1   :  { %6214 = vmatpush3.bf16.msra.mxu0 %v6552_v11 }
 0x6d2   :  { %6215 = vmatprep.subr.bf16.mxu0 %v6553_v5 }
 0x6d3   :  { %5680 = vmatpush3.bf16.msra.mxu1 %v8841_v19 }
 0x6d4   :  { %5681 = vmatprep.subr.bf16.mxu1 %v8842_v4 }
 0x6d5   :  { %6216 = vmatpush3.bf16.msra.mxu0 %v6553_v5 }
 0x6d6   :  { %6217 = vmatprep.subr.bf16.mxu0 %v6554_v45 }
 0x6d7   :  { %5682 = vmatpush3.bf16.msra.mxu1 %v8843_v1 }
 0x6d8   :  { %6223 = vmatprep.subr.bf16.mxu1 %v6555_v60 }
 0x6d9   :  { %6218 = vmatpush3.bf16.msra.mxu0 %v6554_v45 }
 0x6da   :  { %3968 = vmatmul.mubr.bf16.vlgmr.msra.gmra.mxu1 %v6538_v36 }
 0x6db   :  { %3975 = vmatprep.mubr.bf16.mxu1 %v6546_v7  ;;  %6224 = vmatpush3.bf16.msra.mxu1 %v6555_v60  ;;  %v5599_v60 = vpop.f32.mrf.mxu0 }
 0x6dc   :  { %6225 = vmatprep.subr.bf16.mxu1 %v6556_v16 }
 0x6dd   :  { %v5600_v5 = vpop.f32.mrf.mxu0 }
 0x6df   :  { %6226 = vmatpush3.bf16.msra.mxu1 %v6556_v16 }
 0x6e0   :  { %6227 = vmatprep.subr.bf16.mxu1 %v6557_v13 }
 0x6e2   :  { %3976 = vmatmul.mubr.bf16.gmra.mxu1 %v6544_v59 }
 0x6e3   :  { %6228 = vmatpush3.bf16.msra.mxu1 %v6557_v13 }
 0x6e4   :  { %6229 = vmatprep.subr.bf16.mxu1 %v6558_v14 }
 0x6e7   :  { %6230 = vmatpush3.bf16.msra.mxu1 %v6558_v14  ;;  %v5602_v14 = vpop.f32.mrf.mxu0 }
 0x6e8   :  { %6231 = vmatprep.subr.bf16.mxu1 %v6559_v43 }
 0x6eb   :  { %6232 = vmatpush3.bf16.msra.mxu1 %v6559_v43 }
 0x6ec   :  { %6233 = vmatprep.subr.bf16.mxu1 %v6560_v57 }
 0x6ef   :  { %6234 = vmatpush3.bf16.msra.mxu1 %v6560_v57 }
 0x6f0   :  { %6235 = vmatprep.subr.bf16.mxu1 %v6561_v52 }
 0x6f3   :  { %6236 = vmatpush3.bf16.msra.mxu1 %v6561_v52 }
 0x6f4   :  { %6237 = vmatprep.subr.bf16.mxu1 %v6562_v48 }
 0x6f7   :  { %6238 = vmatpush3.bf16.msra.mxu1 %v6562_v48  ;;  %v5603_v48 = vpop.f32.mrf.mxu0 }
 0x742   :  { %v6189_v21 = vpop.f32.mrf.mxu1 }
 0x743   :  { %v3604_v9 = vadd.f32 %v6189_v21, %v8411_v61 }
 0x744   :  { %v3595_v28 = vpop.f32.mrf.mxu1 }
 0x745   :  { %v3596_v0 = vadd.f32 %v8411_v61, %v3595_v28  ;;  %v3660_v51 = vadd.f32 %v3604_v9, %v8284_v39  ;;  %v5605_v28 = vpop.f32.mrf.mxu0 }
 0x746   :  { %v6190_v19 = vpop.f32.mrf.mxu1 }
 0x747   :  { %v3607_v4 = vadd.f32 %v6190_v19, %v8411_v61  ;;  %v3658_v1 = vadd.f32 %v3596_v0, %v8287_v17  ;;  %v4198_v46 = vmax.f32 %v3660_v51, 0.0 }
 0x748   :  { %v3598_v58 = vpop.f32.mrf.mxu1 }
 0x749   :  { %v3661_v31 = vadd.f32 %v3607_v4, %v8290_v24  ;;  %v3599_v32 = vadd.f32 %v8411_v61, %v3598_v58  ;;  %v4196_v40 = vmax.f32 %v3658_v1, 0.0  ;;  %v5606_v58 = vpop.f32.mrf.mxu0 }
 0x74b   :  { %v4199_v6 = vmax.f32 %v3661_v31, 0.0  ;;  %v3659_v63 = vadd.f32 %v3599_v32, %v8294_v55 }
 0x74d   :  { %v4197_v18 = vmax.f32 %v3659_v63, 0.0  ;;  %v8421_v20 = vpack.c.bf16 %v4199_v6, %v4198_v46  ;;  %v5608_v6 = vpop.f32.mrf.mxu0  ;;  %v5604_v63 = vadd.f32 %v5603_v48, %v5602_v14 }
 0x74f   :  { %v8423_v30 = vpack.c.bf16 %v4197_v18, %v4196_v40 }
 0x752   :  { %v6193_v39 = vpop.f32.mrf.mxu1 }
 0x753   :  { %v3620_v56 = vadd.f32 %v6193_v39, %v8411_v61 }
 0x754   :  { %v3611_v3 = vpop.f32.mrf.mxu1 }
 0x755   :  { %v3612_v17 = vadd.f32 %v8411_v61, %v3611_v3  ;;  %v3664_v24 = vadd.f32 %v3620_v56, %v8304_v23  ;;  %v5609_v3 = vpop.f32.mrf.mxu0 }
 0x756   :  { %v6194_v53 = vpop.f32.mrf.mxu1 }
 0x757   :  { %v3623_v38 = vadd.f32 %v6194_v53, %v8411_v61  ;;  %v3662_v55 = vadd.f32 %v3612_v17, %v8307_v42  ;;  %v4202_v41 = vmax.f32 %v3664_v24, 0.0  ;;  %v5607_v17 = vadd.f32 %v5606_v58, %v5605_v28 }
 0x758   :  { %v3614_v50 = vpop.f32.mrf.mxu1 }
 0x759   :  { %v3665_v62 = vadd.f32 %v3623_v38, %v8310_v35  ;;  %v3615_v44 = vadd.f32 %v8411_v61, %v3614_v50  ;;  %v4200_v36 = vmax.f32 %v3662_v55, 0.0  ;;  %v5610_v50 = vadd.f32 %v5609_v3, %v5608_v6 }
 0x75b   :  { %v4203_v29 = vmax.f32 %v3665_v62, 0.0  ;;  %v3663_v8 = vadd.f32 %v3615_v44, %v8316_v22 }
 0x75d   :  { %v4201_v7 = vmax.f32 %v3663_v8, 0.0  ;;  %v8433_v15 = vpack.c.bf16 %v4203_v29, %v4202_v41  ;;  %v5655_v41 = vpop.f32.mrf.mxu0 }
 0x75f   :  { %v8435_v59 = vpack.c.bf16 %v4201_v7, %v4200_v36  ;;  %v5656_v36 = vpop.f32.mrf.mxu0 }
 0x761   :  { %v5658_v7 = vpop.f32.mrf.mxu0 }
 0x762   :  { %v8437_v23 = vpop.f32.mrf.mxu1 }
 0x764   :  { %v3627_v33 = vpop.f32.mrf.mxu1 }
 0x765   :  { %v3628_v27 = vadd.f32 %v8411_v61, %v3627_v33  ;;  %v5659_v33 = vpop.f32.mrf.mxu0 }
 0x766   :  { %v8440_v42 = vpop.f32.mrf.mxu1 }
 0x767   :  { %v3666_v10 = vadd.f32 %v3628_v27, %v8333_v37 }
 0x768   :  { %v3630_v35 = vpop.f32.mrf.mxu1 }
 0x769   :  { %v3631_v49 = vadd.f32 %v8411_v61, %v3630_v35  ;;  %v4204_v11 = vmax.f32 %v3666_v10, 0.0  ;;  %v5661_v35 = vpop.f32.mrf.mxu0 }
 0x76b   :  { %v3667_v22 = vadd.f32 %v3631_v49, %v8342_v54 }
 0x76d   :  { %v4205_v16 = vmax.f32 %v3667_v22, 0.0 }
 0x76f   :  { %v8445_v13 = vpack.c.bf16 %v4205_v16, %v4204_v11  ;;  %v5657_v16 = vadd.f32 %v5656_v36, %v5655_v41 }
 0x772   :  { %v6201_v45 = vpop.f32.mrf.mxu1 }
 0x773   :  { %v3652_v43 = vadd.f32 %v6201_v45, %v8411_v61 }
 0x774   :  { %v3643_v57 = vpop.f32.mrf.mxu1 }
 0x775   :  { %v3672_v21 = vadd.f32 %v3652_v43, %v8354_v26  ;;  %v5601_v26 = vadd.f32 %v5600_v5, %v5599_v60  ;;  %v5662_v60 = vpop.f32.mrf.mxu0  ;;  %v5660_v5 = vadd.f32 %v5659_v33, %v5658_v7  ;;  %v3644_v28 = vadd.f32 %v8411_v61, %v3643_v57 }
 0x776   :  { %v6202_v52 = vpop.f32.mrf.mxu1 }
 0x777   :  { %v3655_v37 = vadd.f32 %v6202_v52, %v8411_v61  ;;  %v4210_v19 = vmax.f32 %v3672_v21, 0.0  ;;  %v5664_v43 = vpop.f32.mrf.mxu0 }
 0x778   :  { %v3646_v9 = vpop.f32.mrf.mxu1 }
 0x779   :  { %v3673_v54 = vadd.f32 %v3655_v37, %v8360_v12  ;;  %v3647_v52 = vadd.f32 %v8411_v61, %v3646_v9  ;;  %v3636_v9 = vadd.f32 %v8437_v23, %v8411_v61  ;;  %v6567_v23 = vld [vmem:[%s8847_s21 + $0x28] sm:$0xff]  }
 0x77a   :  { %v5627_v0 = vpop.f32.mrf.mxu1 }
 0x77b   :  { %v4211_v51 = vmax.f32 %v3673_v54, 0.0 }
 0x77c   :  { %v5628_v4 = vpop.f32.mrf.mxu1 }
 0x77d   :  { %v8451_v1 = vpack.c.bf16 %v4211_v51, %v4210_v19  ;;  %v5629_v32 = vadd.f32 %v5628_v4, %v5627_v0  ;;  %v5665_v19 = vpop.f32.mrf.mxu0  ;;  %v3639_v51 = vadd.f32 %v8440_v42, %v8411_v61  ;;  %v3671_v4 = vadd.f32 %v3647_v52, %v8364_v2 }
 0x77e   :  { %v5630_v31 = vpop.f32.mrf.mxu1  ;;  %v5666_v6 = vadd.f32 %v5665_v19, %v5664_v43  ;;  %v3668_v42 = vadd.f32 %v3636_v9, %v8330_v25  ;;  %v6564_v25 = vld [vmem:[%s6801_s20 + $0x8] sm:$0xff]  }
 0x77f   :  { %6243 = vmatprep.subr.bf16.mxu0 %v8451_v1  ;;  %v3806_v39 = vadd.f32 %v5629_v32, %v5601_v26  ;;  %v3669_v26 = vadd.f32 %v3639_v51, %v8336_v34  ;;  %v6565_v34 = vld [vmem:[%s8847_s21 + $0x38] sm:$0xff]  }
 0x780   :  { %v5631_v46 = vpop.f32.mrf.mxu1  ;;  %6263 = vmatprep.subr.bf16.mxu1 %v6565_v34 }
 0x781   :  { %v5632_v40 = vadd.f32 %v5631_v46, %v5630_v31  ;;  %v5663_v31 = vadd.f32 %v5662_v60, %v5661_v35  ;;  %v3670_v46 = vadd.f32 %v3644_v28, %v8357_v47  ;;  %v4206_v47 = vmax.f32 %v3668_v42, 0.0  ;;  %v6578_v35 = vld [vmem:[%s8848_s25 + $0x10] sm:$0xff]   ;;  %v6581_v60 = vld [vmem:[%s8849_s29 + $0x38] sm:$0xff]   ;;  %v5080_v28 = vld [vmem:[%s8850_s3] ss:$0 sm:$0xff] }
 0x782   :  { %v5633_v18 = vpop.f32.mrf.mxu1 }
 0x783   :  { %v3809_v56 = vadd.f32 %v5632_v40, %v5604_v63  ;;  %v4209_v63 = vmax.f32 %v3671_v4, 0.0  ;;  %v4208_v2 = vmax.f32 %v3670_v46, 0.0 }
 0x784   :  { %v5634_v12 = vpop.f32.mrf.mxu1 }
 0x785   :  { %v5635_v53 = vadd.f32 %v5634_v12, %v5633_v18  ;;  %v3820_v24 = vpack.c.bf16 %v3809_v56, %v3806_v39  ;;  %v6563_v39 = vld [vmem:[%s6801_s20] sm:$0xff]   ;;  %v4207_v12 = vmax.f32 %v3669_v26, 0.0  ;;  %v4218_v3 = vpack.c.bf16 %v4209_v63, %v4208_v2  ;;  %v6585_v2 = vld [vmem:[%s8849_s29 + $0x18] sm:$0xff]   ;;  %s4838_s20 = sshll.u32 %s6652_s12, 4  ;;  %s4839_s20 = int_to_ptr.vmem [resolvable:$true] %s4838_s20 }
 0x786   :  { %v5636_v38 = vpop.f32.mrf.mxu1  ;;  %s6597_s27 = scalar_lea.vmem %s4839_s20, 32  ;;  %p6602_p1 = scmp.lt.s32.totalorder %s4839_s20, %s4839_s20 }
 0x787   :  { %6239 = vmatprep.mubr.bf16.mxu1 %v3820_v24  ;;  %v3814_v62 = vadd.f32 %v5635_v53, %v5607_v17  ;;  %v4217_v61 = vpack.c.bf16 %v4207_v12, %v4206_v47  ;;  %v6573_v17 = vld [vmem:[%s8848_s25 + $0x38] sm:$0xff]   ;;  %v6574_v53 = vld [vmem:[%s8848_s25 + $0x30] sm:$0xff]   ;;  %v6575_v24 = vld [vmem:[%s8848_s25 + $0x28] sm:$0xff]   ;;  %p6598_p0 = scmp.ne.s32.totalorder %s4839_s20, %s6597_s27  ;;  %p6603_p2 = scmp.lt.s32.totalorder %s6597_s27, %s6597_s27 }
 0x788   :  { %v5637_v55 = vpop.f32.mrf.mxu1  ;;  %v6587_v12 = vld [vmem:[%s8849_s29 + $0x8] sm:$0xff]  }
 0x789   :  { %v5638_v44 = vadd.f32 %v5637_v55, %v5636_v38  ;;  %v6576_v38 = vld [vmem:[%s8848_s25 + $0x20] sm:$0xff]   ;;  %p6604_p3 = por %p6603_p2, %p6602_p1 }
 0x78b   :  { %v3817_v29 = vadd.f32 %v5638_v44, %v5610_v50  ;;  %p6605_p4 = pnand %p6604_p3, %p6598_p0 }
 0x78d   :  { %v3821_v8 = vpack.c.bf16 %v3817_v29, %v3814_v62 }
 0x78f   :  { %6240 = vmatmul.mubr.bf16.vlgmr.msra.gmra.mxu1 %v3821_v8 }
 0x790   :  { %6264 = vmatpush3.bf16.msra.mxu1 %v6565_v34 }
 0x79a   :  { %v5683_v27 = vpop.f32.mrf.mxu1 }
 0x79c   :  { %v5684_v10 = vpop.f32.mrf.mxu1 }
 0x79d   :  { %v5685_v22 = vadd.f32 %v5684_v10, %v5683_v27  ;;  %v6577_v27 = vld [vmem:[%s8848_s25 + $0x18] sm:$0xff]   ;;  %v6579_v10 = vld [vmem:[%s8848_s25 + $0x8] sm:$0xff]  }
 0x79e   :  { %v5686_v49 = vpop.f32.mrf.mxu1 }
 0x79f   :  { %v3970_v48 = vadd.f32 %v5685_v22, %v5657_v16  ;;  %v6582_v22 = vld [vmem:[%s8849_s29 + $0x30] sm:$0xff]   ;;  %v6584_v16 = vld [vmem:[%s8849_s29 + $0x20] sm:$0xff]  }
 0x7a0   :  { %v5687_v11 = vpop.f32.mrf.mxu1 }
 0x7a1   :  { %v5688_v45 = vadd.f32 %v5687_v11, %v5686_v49  ;;  %v6580_v49 = vld [vmem:[%s8848_s25] sm:$0xff]   ;;  %v6583_v11 = vld [vmem:[%s8849_s29 + $0x28] sm:$0xff]  }
 0x7a2   :  { %v5689_v14 = vpop.f32.mrf.mxu1 }
 0x7a3   :  { %v3973_v21 = vadd.f32 %v5688_v45, %v5660_v5 }
 0x7a4   :  { %v5690_v37 = vpop.f32.mrf.mxu1 }
 0x7a5   :  { %v3984_v54 = vpack.c.bf16 %v3973_v21, %v3970_v48  ;;  %v5691_v58 = vadd.f32 %v5690_v37, %v5689_v14 }
 0x7a6   :  { %v5692_v0 = vpop.f32.mrf.mxu1 }
 0x7a7   :  { %6219 = vmatprep.mubr.bf16.mxu0 %v3984_v54  ;;  %v3978_v40 = vadd.f32 %v5691_v58, %v5663_v31 }
 0x7a8   :  { %v5693_v32 = vpop.f32.mrf.mxu1 }
 0x7a9   :  { %v5694_v57 = vadd.f32 %v5693_v32, %v5692_v0 }
 0x7ab   :  { %v3981_v18 = vadd.f32 %v5694_v57, %v5666_v6 }
 0x7ad   :  { %v3985_v56 = vpack.c.bf16 %v3981_v18, %v3978_v40 }
 0x7af   :  { %6220 = vmatmul.mubr.bf16.vlgmr.msra.gmra.mxu0 %v3985_v56  ;;  %v6586_v56 = vld [vmem:[%s8849_s29 + $0x10] sm:$0xff]  }
 0x7b0   :  { %6244 = vmatpush3.bf16.msra.mxu0 %v8451_v1  ;;  %6259 = vmatprep.mubr.bf16.mxu0 %v6563_v39  ;;  %v6572_v1 = vld [vmem:[%s8847_s21] sm:$0xff]  }
 0x7b1   :  { %6245 = vmatprep.subr.bf16.mxu0 %v4218_v3 }
 0x7b4   :  { %6246 = vmatpush3.bf16.msra.mxu0 %v4218_v3  ;;  %v6588_v3 = vld [vmem:[%s8849_s29] sm:$0xff]  }
 0x7b5   :  { %6247 = vmatprep.subr.bf16.mxu0 %v4217_v61 }
 0x7b8   :  { %6248 = vmatpush3.bf16.msra.mxu0 %v4217_v61  ;;  %v5081_v61 = vld [vmem:[%s8851_s8] ss:$0 sm:$0xff] }
 0x7b9   :  { %6249 = vmatprep.subr.bf16.mxu0 %v8445_v13 }
 0x7bc   :  { %6250 = vmatpush3.bf16.msra.mxu0 %v8445_v13  ;;  %v6571_v13 = vld [vmem:[%s8847_s21 + $0x8] sm:$0xff]  }
 0x7bd   :  { %6251 = vmatprep.subr.bf16.mxu0 %v8433_v15 }
 0x7c0   :  { %6252 = vmatpush3.bf16.msra.mxu0 %v8433_v15  ;;  %v6566_v15 = vld [vmem:[%s8847_s21 + $0x30] sm:$0xff]  }
 0x7c1   :  { %6253 = vmatprep.subr.bf16.mxu0 %v8435_v59  ;;  %6265 = vmatprep.subr.bf16.mxu1 %v6566_v15 }
 0x7c2   :  { %6266 = vmatpush3.bf16.msra.mxu1 %v6566_v15 }
 0x7c3   :  { %6267 = vmatprep.subr.bf16.mxu1 %v6567_v23 }
 0x7c4   :  { %6254 = vmatpush3.bf16.msra.mxu0 %v8435_v59  ;;  %v6568_v59 = vld [vmem:[%s8847_s21 + $0x20] sm:$0xff]  }
 0x7c5   :  { %6255 = vmatprep.subr.bf16.mxu0 %v8421_v20 }
 0x7c6   :  { %6268 = vmatpush3.bf16.msra.mxu1 %v6567_v23 }
 0x7c7   :  { %6269 = vmatprep.subr.bf16.mxu1 %v6568_v59 }
 0x7c8   :  { %6256 = vmatpush3.bf16.msra.mxu0 %v8421_v20  ;;  %v6569_v20 = vld [vmem:[%s8847_s21 + $0x18] sm:$0xff]  }
 0x7c9   :  { %6257 = vmatprep.subr.bf16.mxu0 %v8423_v30 }
 0x7ca   :  { %6270 = vmatpush3.bf16.msra.mxu1 %v6568_v59 }
 0x7cb   :  { %6271 = vmatprep.subr.bf16.mxu1 %v6569_v20 }
 0x7cc   :  { %6258 = vmatpush3.bf16.msra.mxu0 %v8423_v30  ;;  %v6570_v30 = vld [vmem:[%s8847_s21 + $0x10] sm:$0xff]  }
 0x7cd   :  { %6283 = vmatprep.subr.bf16.mxu0 %v6573_v17 }
 0x7ce   :  { %6272 = vmatpush3.bf16.msra.mxu1 %v6569_v20 }
 0x7cf   :  { %6260 = vmatmul.mubr.bf16.vlgmr.msra.gmra.mxu0 %v6564_v25  ;;  %6273 = vmatprep.subr.bf16.mxu1 %v6570_v30 }
 0x7d0   :  { %6284 = vmatpush3.bf16.msra.mxu0 %v6573_v17 }
 0x7d1   :  { %6285 = vmatprep.subr.bf16.mxu0 %v6574_v53 }
 0x7d2   :  { %6274 = vmatpush3.bf16.msra.mxu1 %v6570_v30 }
 0x7d3   :  { %6275 = vmatprep.subr.bf16.mxu1 %v6571_v13 }
 0x7d4   :  { %6286 = vmatpush3.bf16.msra.mxu0 %v6574_v53 }
 0x7d5   :  { %6287 = vmatprep.subr.bf16.mxu0 %v6575_v24 }
 0x7d6   :  { %6276 = vmatpush3.bf16.msra.mxu1 %v6571_v13 }
 0x7d7   :  { %6277 = vmatprep.subr.bf16.mxu1 %v6572_v1 }
 0x7d8   :  { %6288 = vmatpush3.bf16.msra.mxu0 %v6575_v24 }
 0x7d9   :  { %6289 = vmatprep.subr.bf16.mxu0 %v6576_v38 }
 0x7da   :  { %6278 = vmatpush3.bf16.msra.mxu1 %v6572_v1 }
 0x7db   :  { %6303 = vmatprep.subr.bf16.mxu1 %v6581_v60 }
 0x7dc   :  { %6290 = vmatpush3.bf16.msra.mxu0 %v6576_v38 }
 0x7dd   :  { %6291 = vmatprep.subr.bf16.mxu0 %v6577_v27 }
 0x7e0   :  { %6292 = vmatpush3.bf16.msra.mxu0 %v6577_v27 }
 0x7e1   :  { %6293 = vmatprep.subr.bf16.mxu0 %v6578_v35 }
 0x7e4   :  { %6294 = vmatpush3.bf16.msra.mxu0 %v6578_v35  ;;  %v5090_v35 = vld [vmem:[%s8853_s24] ss:$0 sm:$0xff] }
 0x7e5   :  { %6295 = vmatprep.subr.bf16.mxu0 %v6579_v10 }
 0x7e8   :  { %6296 = vmatpush3.bf16.msra.mxu0 %v6579_v10 }
 0x7e9   :  { %6297 = vmatprep.subr.bf16.mxu0 %v6580_v49 }
 0x7ec   :  { %6298 = vmatpush3.bf16.msra.mxu0 %v6580_v49 }
 0x84f   :  { %v6241_v5 = vpop.f32.mrf.mxu1 }
 0x851   :  { %v4181_v45 = vpop.f32.mrf.mxu1 }
 0x853   :  { %v6242_v14 = vpop.f32.mrf.mxu1 }
 0x855   :  { %v4184_v43 = vpop.f32.mrf.mxu1 }
 0x86f   :  { %v6221_v50 = vpop.f32.mrf.mxu0 }
 0x870   :  { %v4190_v52 = vadd.f32 %v6241_v5, %v6221_v50 }
 0x871   :  { %v4084_v55 = vpop.f32.mrf.mxu0 }
 0x872   :  { %v4182_v21 = vadd.f32 %v4181_v45, %v4084_v55 }
 0x873   :  { %v6222_v62 = vpop.f32.mrf.mxu0 }
 0x874   :  { %v4193_v0 = vadd.f32 %v6242_v14, %v6222_v62  ;;  %v6650_v62 = vmov 0.0  }
 0x875   :  { %v4087_v44 = vpop.f32.mrf.mxu0  ;;  %6331 = vmatprep.subr.bf16.mxu0 %v6650_v62 }
 0x876   :  { %v4185_v4 = vadd.f32 %v4184_v43, %v4087_v44  ;;  %v6589_v44 = vld [vmem:[%s8852_s14 + $0x38] sm:$0xff]  }
 0x88f   :  { %v6261_v41 = vpop.f32.mrf.mxu0 }
 0x891   :  { %v4270_v29 = vpop.f32.mrf.mxu0 }
 0x893   :  { %v6262_v8 = vpop.f32.mrf.mxu0 }
 0x894   :  { %v4286_v33 = vpack.c.bf16 %v6262_v8, %v6261_v41  ;;  %v6590_v41 = vld [vmem:[%s8852_s14 + $0x30] sm:$0xff]   ;;  %v6592_v8 = vld [vmem:[%s8852_s14 + $0x20] sm:$0xff]  }
 0x895   :  { %v4273_v36 = vpop.f32.mrf.mxu0 }
 0x896   :  { %v4285_v7 = vpack.c.bf16 %v4273_v36, %v4270_v29  ;;  %v6591_v29 = vld [vmem:[%s8852_s14 + $0x28] sm:$0xff]   ;;  %v6593_v36 = vld [vmem:[%s8852_s14 + $0x18] sm:$0xff]  }
 0x898   :  { %6279 = vmatprep.mubr.bf16.mxu1 %v4285_v7  ;;  %v6594_v7 = vld [vmem:[%s8852_s14 + $0x10] sm:$0xff]  }
 0x899   :  { %6280 = vmatmul.mubr.bf16.vlgmr.msra.gmra.mxu1 %v4286_v33  ;;  %v6595_v33 = vld [vmem:[%s8852_s14 + $0x8] sm:$0xff]  }
 0x89a   :  { %6304 = vmatpush3.bf16.msra.mxu1 %v6581_v60 }
 0x89b   :  { %6305 = vmatprep.subr.bf16.mxu1 %v6582_v22 }
 0x89e   :  { %6306 = vmatpush3.bf16.msra.mxu1 %v6582_v22 }
 0x89f   :  { %6307 = vmatprep.subr.bf16.mxu1 %v6583_v11 }
 0x8a2   :  { %6308 = vmatpush3.bf16.msra.mxu1 %v6583_v11 }
 0x8a3   :  { %6309 = vmatprep.subr.bf16.mxu1 %v6584_v16 }
 0x8a6   :  { %6310 = vmatpush3.bf16.msra.mxu1 %v6584_v16 }
 0x8a7   :  { %6311 = vmatprep.subr.bf16.mxu1 %v6585_v2 }
 0x8aa   :  { %6312 = vmatpush3.bf16.msra.mxu1 %v6585_v2 }
 0x8ab   :  { %6313 = vmatprep.subr.bf16.mxu1 %v6586_v56 }
 0x8ae   :  { %6314 = vmatpush3.bf16.msra.mxu1 %v6586_v56 }
 0x8af   :  { %6315 = vmatprep.subr.bf16.mxu1 %v6587_v12 }
 0x8b2   :  { %6316 = vmatpush3.bf16.msra.mxu1 %v6587_v12 }
 0x8b3   :  { %6317 = vmatprep.subr.bf16.mxu1 %v6588_v3 }
 0x8b6   :  { %6318 = vmatpush3.bf16.msra.mxu1 %v6588_v3 }
 0x8b7   :  { %6323 = vmatprep.subr.bf16.mxu1 %v6650_v62 }
 0x959   :  { %v6281_v48 = vpop.f32.mrf.mxu1 }
 0x95a   :  { %v4402_v37 = vadd.f32 %v6281_v48, %v4190_v52 }
 0x95b   :  { %v4385_v54 = vpop.f32.mrf.mxu1 }
 0x95c   :  { %v4400_v19 = vadd.f32 %v4385_v54, %v4182_v21  ;;  %v4413_v58 = vadd.f32 %v5080_v28, %v4402_v37  ;;  %v4673_v37 = vld [vmem:[%s8854_s30] sm:$0x1] }
 0x95d   :  { %v6282_v51 = vpop.f32.mrf.mxu1 }
 0x95e   :  { %v4403_v31 = vadd.f32 %v6282_v51, %v4193_v0  ;;  %v4411_v9 = vadd.f32 %v5080_v28, %v4400_v19  ;;  %v4417_v57 = vmax.f32 %v4413_v58, 0.0  ;;  %v5100_v58 = vld [vmem:[%s8855_s6] ss:$0 sm:$0xff] }
 0x95f   :  { %v4388_v32 = vpop.f32.mrf.mxu1 }
 0x960   :  { %v4414_v46 = vadd.f32 %v5080_v28, %v4403_v31  ;;  %v4401_v6 = vadd.f32 %v4388_v32, %v4185_v4  ;;  %v4415_v40 = vmax.f32 %v4411_v9, 0.0 }
 0x962   :  { %v4418_v26 = vmax.f32 %v4414_v46, 0.0  ;;  %v4412_v63 = vadd.f32 %v5080_v28, %v4401_v6  ;;  %v6596_v28 = vld [vmem:[%s8852_s14] sm:$0xff]  }
 0x964   :  { %v4420_v18 = vpack.c.bf16 %v4418_v26, %v4417_v57  ;;  %v4416_v39 = vmax.f32 %v4412_v63, 0.0 }
 0x966   :  { %v4419_v42 = vpack.c.bf16 %v4416_v39, %v4415_v40 }
 0x968   :  { %6299 = vmatprep.mubr.bf16.mxu0 %v4419_v42 }
 0x969   :  { %6300 = vmatmul.mubr.bf16.vlgmr.msra.gmra.mxu0 %v4420_v18 }
 0x96a   :  { %6347 = vmatprep.mubr.msk.bf16.mxu0 %vm6651_vm1, %v6650_v62  ;;  %6332 = vmatpush3.bf16.msra.mxu0 %v6589_v44 }
 0x96b   :  { %6333 = vmatprep.subr.bf16.mxu0 %v6650_v62 }
 0x96e   :  { %6334 = vmatpush3.bf16.msra.mxu0 %v6590_v41 }
 0x96f   :  { %6335 = vmatprep.subr.bf16.mxu0 %v6650_v62 }
 0x972   :  { %6336 = vmatpush3.bf16.msra.mxu0 %v6591_v29 }
 0x973   :  { %6337 = vmatprep.subr.bf16.mxu0 %v6650_v62 }
 0x976   :  { %6338 = vmatpush3.bf16.msra.mxu0 %v6592_v8 }
 0x977   :  { %6339 = vmatprep.subr.bf16.mxu0 %v6650_v62 }
 0x97a   :  { %6340 = vmatpush3.bf16.msra.mxu0 %v6593_v36 }
 0x97b   :  { %6341 = vmatprep.subr.bf16.mxu0 %v6650_v62 }
 0x97e   :  { %6342 = vmatpush3.bf16.msra.mxu0 %v6594_v7 }
 0x97f   :  { %6343 = vmatprep.subr.bf16.mxu0 %v6650_v62 }
 0x982   :  { %6344 = vmatpush3.bf16.msra.mxu0 %v6595_v33 }
 0x983   :  { %6345 = vmatprep.subr.bf16.mxu0 %v6650_v62 }
 0x986   :  { %6346 = vmatpush3.bf16.msra.mxu0 %v6596_v28 }
 0xa29   :  { %v6301_v47 = vpop.f32.mrf.mxu0 }
 0xa2a   :  { %v4535_v34 = vadd.f32 %v6301_v47, %v5081_v61 }
 0xa2b   :  { %v4526_v25 = vpop.f32.mrf.mxu0 }
 0xa2c   :  { %v4527_v23 = vadd.f32 %v5081_v61, %v4526_v25  ;;  %v4543_v1 = vmax.f32 %v4535_v34, 0.0 }
 0xa2d   :  { %v6302_v15 = vpop.f32.mrf.mxu0 }
 0xa2e   :  { %v4538_v59 = vadd.f32 %v6302_v15, %v5081_v61  ;;  %v4541_v17 = vmax.f32 %v4527_v23, 0.0 }
 0xa2f   :  { %v4529_v20 = vpop.f32.mrf.mxu0 }
 0xa30   :  { %v4544_v30 = vmax.f32 %v4538_v59, 0.0  ;;  %v4530_v13 = vadd.f32 %v5081_v61, %v4529_v20 }
 0xa32   :  { %v4542_v53 = vmax.f32 %v4530_v13, 0.0  ;;  %v4546_v24 = vpack.c.bf16 %v4544_v30, %v4543_v1 }
 0xa34   :  { %v4545_v38 = vpack.c.bf16 %v4542_v53, %v4541_v17  ;;  %v4548_v55 = vadd.bf16 %v4546_v24, %v4420_v18 }
 0xa36   :  { %v4547_v50 = vadd.bf16 %v4545_v38, %v4419_v42 }
 0xa38   :  { %6319 = vmatprep.mubr.bf16.mxu1 %v4547_v50 }
 0xa39   :  { %6320 = vmatmul.mubr.bf16.vlgmr.msra.gmra.mxu1 %v4548_v55 }
 0xa3a   :  { %6327 = vmatprep.mubr.msk.bf16.mxu1 %vm6651_vm1, %v6650_v62 }
 0xaf9   :  { %v6321_v27 = vpop.f32.mrf.mxu1 }
 0xafa   :  { %v4663_v49 = vadd.f32 %v6321_v27, %v5090_v35 }
 0xafb   :  { %v4654_v10 = vpop.f32.mrf.mxu1 }
 0xafc   :  { %v4671_v16 = vadd.f32 %v4663_v49, %v4535_v34  ;;  %v4655_v5 = vadd.f32 %v5090_v35, %v4654_v10 }
 0xafd   :  { %v6322_v60 = vpop.f32.mrf.mxu1 }
 0xafe   :  { %v4666_v22 = vadd.f32 %v6322_v60, %v5090_v35  ;;  %v4669_v48 = vadd.f32 %v4655_v5, %v4527_v23 }
 0xaff   :  { %v4657_v11 = vpop.f32.mrf.mxu1 }
 0xb00   :  { %v4672_v45 = vadd.f32 %v4666_v22, %v4538_v59  ;;  %v4658_v14 = vadd.f32 %v5090_v35, %v4657_v11 }
 0xb02   :  { %v4675_v43 = vpack.c.bf16 %v4672_v45, %v4671_v16  ;;  %v4670_v52 = vadd.f32 %v4658_v14, %v4530_v13 }
 0xb04   :  { %6324 = vmatpush3.bf16.msra.mxu1 %v4675_v43  ;;  %v4674_v21 = vpack.c.bf16 %v4670_v52, %v4669_v48 }
 0xb05   :  { %6325 = vmatprep.subr.bf16.mxu1 %v6650_v62 }
 0xb08   :  { %6326 = vmatpush3.bf16.msra.mxu1 %v4674_v21 }
 0xb0b   :  { %6328 = vmatmul.mubr.msk.bf16.vlgmr.msra.gmra.mxu1 %vm379_vm0, %v4673_v37 }
 0xbcb   :  { %v4713_v54 = vpop.f32.mrf.mxu1 }
 0xbcc   :  { %v4719_v0 = vpack.c.bf16 %v4713_v54, %v4713_v54 }
 0xbcd   :  { %v6329_v19 = vpop.f32.mrf.mxu1 }
 0xbce   :  { %6348 = vmatmul.mubr.bf16.vlgmr.msra.gmra.mxu0 %v4719_v0 }
 0xbcf   :  { %v4716_v51 = vpop.f32.mrf.mxu1 }
 0xbd1   :  { %v6330_v4 = vpop.f32.mrf.mxu1 }
 0xc8e   :  { %v4825_v31 = vpop.f32.mrf.mxu0 }
 0xc8f   :  { %v4826_v32 = vadd.f32 %v5100_v58, %v4825_v31 }
 0xc90   :  { %v6349_v9 = vpop.f32.mrf.mxu0 }
 0xc91   :  { %4831 = vst [vmem:[#allocation2] sm:$0x3] %v4826_v32 }
 0xc92   :  { %v4828_v46 = vpop.f32.mrf.mxu0 }
 0xc93   :  { %6608 = shalt.err (!%p6605_p4)
}
 0xc94   :  { %4841 = dma.vmem_to_hbm [thread:$0]  %s4839_s20, 32, %s6814_s19, [#allocation3]   ;;  %v6350_v6 = vpop.f32.mrf.mxu0 }
 0xc95   :  { %6617 = dma.done.wait [#allocation3], 32  }
 0xc96   :  { %6618 = vsyncadd [#allocation3], 4294967264 }
 0xc97   :  { %4845 = vsyncpa [#allocation3], 1 }

</bundles_post_ra>
